<compile_context>
chip_gen: v7x
topology: tpu7x:2x2x1
jax: 0.10.0
libtpu: 0.0.40
codegen_flags: <defaults>
</compile_context>

<pallas_src>
import functools

import numpy as np

import jax
import jax.numpy as jnp
from jax.experimental import pallas as pl
from jax.experimental.pallas import tpu as pltpu


# ---------------------------------------------------------------------------
# Pack-time constant builders (plain numpy -- run once, never in the kernel)
# ---------------------------------------------------------------------------
def _np_block_diag(w, tb):
    r, c = w.shape
    out = np.zeros((tb * r, tb * c), np.float32)
    for b in range(tb):
        out[b * r:(b + 1) * r, b * c:(b + 1) * c] = w
    return out


def _np_col_sel(n, parity):
    """(n, n//2): (H @ M)[:, j] == H[:, 2j + parity]."""
    m = np.zeros((n, n // 2), np.float32)
    m[2 * np.arange(n // 2) + parity, np.arange(n // 2)] = 1.0
    return m


def _np_row_sel(n, parity):
    """(n//2, n): (M @ H)[j, :] == H[2j + parity, :]."""
    m = np.zeros((n // 2, n), np.float32)
    m[np.arange(n // 2), 2 * np.arange(n // 2) + parity] = 1.0
    return m


def _np_pick_last(tb, length):
    """(tb, tb*L): picks the last time step of every folded batch element."""
    m = np.zeros((tb, tb * length), np.float32)
    m[np.arange(tb), np.arange(tb) * length + (length - 1)] = 1.0
    return m


def _np_block_rowsum(tb, rows):
    """(tb, tb*rows): sums each batch element's `rows` consecutive rows."""
    m = np.zeros((tb, tb * rows), np.float32)
    for b in range(tb):
        m[b, b * rows:(b + 1) * rows] = 1.0
    return m


def _np_causal_mask(tb, length, shift):
    """(tb*L, 1) 0/1 mask: zero the first `shift` rows of every batch block."""
    rows = np.arange(tb * length) % length
    return (rows >= shift).astype(np.float32).reshape(-1, 1)


def _np_shift_mat(length, shift):
    """(L, L) with (M @ Z)[l] = Z[l - shift]  (0 for l < shift)."""
    m = np.zeros((length, length), np.float32)
    idx = np.arange(shift, length)
    m[idx, idx - shift] = 1.0
    return m


class _SlabPacker:
    """Packs many small 2-D params into one (rows, width) slab; every entry
    starts on a row aligned to `row_align` so the in-kernel windows are tile
    aligned.  The kernel reads entries back with static pl.ds slices."""

    def __init__(self, width, row_align):
        self.width = width
        self.row_align = row_align
        self.rows = 0
        self.chunks = []
        self.index = {}

    def add(self, name, arr):
        arr = np.asarray(arr, np.float32)
        assert arr.ndim == 2 and arr.shape[1] <= self.width, (name, arr.shape)
        r, c = arr.shape
        rp = r + (-r) % self.row_align
        chunk = np.zeros((rp, self.width), np.float32)
        chunk[:r, :c] = arr
        self.index[name] = (self.rows, r, c)
        self.chunks.append(chunk)
        self.rows += rp

    def finalize(self, dtype):
        buf = np.concatenate(self.chunks, axis=0)
        return jnp.asarray(buf, dtype), self.index


# ---------------------------------------------------------------------------
# One-time probe of pltpu.roll (convention / availability) for a sublane roll
# ---------------------------------------------------------------------------
@functools.lru_cache(maxsize=None)
def _probe_roll_mode(rows, cols):
    """Returns 'np' (matches jnp.roll), 'flip' (opposite direction) or None
    (unsupported -> fall back to a precomputed shift-matrix matmul)."""

    def kern(x_ref, o_ref):
        o_ref[...] = pltpu.roll(x_ref[...], shift=1, axis=0)

    x = jnp.arange(rows * cols, dtype=jnp.float32).reshape(rows, cols)
    try:
        y = jax.block_until_ready(
            pl.pallas_call(
                kern, out_shape=jax.ShapeDtypeStruct((rows, cols), jnp.float32)
            )(x)
        )
    except Exception:  # lowering / compile failure on this shape+axis
        return None
    if bool(jnp.array_equal(y, jnp.roll(x, 1, axis=0))):
        return "np"
    if bool(jnp.array_equal(y, jnp.roll(x, -1, axis=0))):
        return "flip"
    return None


# ---------------------------------------------------------------------------
# Fused forward kernel.  One grid step == TB batch elements, fully VMEM
# resident.  Folded layout: activations are (TB*rows, cols) with batch blocks
# stacked along the sublane axis; all layouts are transposed w.r.t. PyTorch
# NCL so the wide feature axes are lane-dense.
# ---------------------------------------------------------------------------
def _tns_fused_kernel(x_ref, wb_ref, bb_ref, out_ref, *, lay_w, lay_b,
                      num_blocks, kernel_size, dilations, length, tb,
                      roll_mode):
    L = length
    TBL = tb * L

    def ld_w(name):                                    # bf16 weight/constant
        off, r, c = lay_w[name]
        return wb_ref[pl.ds(off, r), pl.ds(0, c)]

    def ld_b(name):                                    # f32 bias/mask/constant
        off, r, c = lay_b[name]
        return bb_ref[pl.ds(off, r), pl.ds(0, c)]

    def rmul(act, name):                               # act @ W  (MXU, f32 acc)
        return jnp.dot(act.astype(jnp.bfloat16), ld_w(name),
                       preferred_element_type=jnp.float32)

    def lmul(name, act):                               # W @ act  (MXU, f32 acc)
        return jnp.dot(ld_w(name), act.astype(jnp.bfloat16),
                       preferred_element_type=jnp.float32)

    def relu(v):
        return jnp.maximum(v, 0.0)

    def causal_shift(z, shift):
        """Per-batch causal shift along the folded time axis."""
        if roll_mode is None:                          # fallback: shift matmul
            return lmul(f"shift{shift}", z)
        amt = shift if roll_mode == "np" else (TBL - shift) % TBL
        return pltpu.roll(z, shift=amt, axis=0) * ld_b(f"mask{shift}")

    z0 = x_ref[0]                                      # (TB*L, C) f32, folded
    z = z0

    # ---- Temporal_and_Spatio_ConvNet stack ----
    for i in range(num_blocks):
        d = dilations[i]

        # temporal branch: causal dilated conv + bias -> relu -> dropout(id)
        t = ld_b(f"b{i}_conv_b")                       # (1, Cout)
        for tap in range(kernel_size):
            shift = (kernel_size - 1 - tap) * d
            zt = z if shift == 0 else causal_shift(z, shift)
            t = t + rmul(zt, f"b{i}_tap{tap}")
        t = relu(t)                                    # (TB*L, Cout)

        # spatio branch: net_a -> net_c -> net_e -> net_f -> relu
        s = rmul(z, f"b{i}_saT") + ld_b(f"b{i}_sa_b")          # (TB*L, 128)
        s = lmul(f"b{i}_scBD", s) + ld_b(f"b{i}_sc_b")         # (TB*128, 128)
        s = rmul(s, f"b{i}_seT") + ld_b(f"b{i}_se_b")          # (TB*128, Cin)
        s = relu(lmul(f"b{i}_sfBD", s) + ld_b(f"b{i}_sf_b"))   # (TB*L, Cin)

        z = relu(z + t + s)                            # residual

    # ---- linear head on the last time step of each batch element ----
    z_last = lmul("pick_last", z)                      # (TB, C_last)
    y1 = rmul(z_last, "linT") + ld_b("lin_b")          # (TB, O)

    # ---- standalone Spatio_ConvNet branch (consumes the raw input) ----
    h = rmul(z0, "sp_aT") + ld_b("sp_a_b")             # (TB*L, 128)
    h = rmul(h, "sp_bT") + ld_b("sp_b_b")              # (TB*L, 128)
    h = lmul("sp_cBD", h) + ld_b("sp_c_b")             # (TB*128, 128)
    h = relu(lmul("sp_dBD", h) + ld_b("sp_d_b"))       # (TB*128, 128)
    hc = jnp.maximum(rmul(h, "p1_c0"), rmul(h, "p1_c1"))       # pool1 cols
    h = jnp.maximum(lmul("p1_r0", hc), lmul("p1_r1", hc))      # pool1 rows
    h = rmul(h, "sp_eT") + ld_b("sp_e_b")              # (TB*64, 64)
    h = rmul(h, "sp_fT") + ld_b("sp_f_b")              # (TB*64, 32)
    h = lmul("sp_gBD", h) + ld_b("sp_g_b")             # (TB*64, 32)
    h = relu(lmul("sp_hBD", h) + ld_b("sp_h_b"))       # (TB*32, 32)
    hc = jnp.maximum(rmul(h, "p2_c0"), rmul(h, "p2_c1"))       # pool2 cols
    h = jnp.maximum(lmul("p2_r0", hc), lmul("p2_r1", hc))      # pool2 rows
    h = rmul(h, "sp_iT") + ld_b("sp_i_b")              # (TB*16, 16)
    h = rmul(h, "sp_jT") + ld_b("sp_j_b")              # (TB*16, 4)
    h = lmul("sp_kBD", h) + ld_b("sp_k_b")             # (TB*16, 4)
    h = lmul("sp_lBD", h) + ld_b("sp_l_b")             # (TB*4, 4)

    # fc(view(-1, 16)) + relu, per folded batch element
    hw = h * ld_b("fcT_tile")                          # (TB*4, 4)
    row_sum = jnp.sum(hw, axis=1, keepdims=True)       # (TB*4, 1)
    y2 = relu(lmul("fc_bsum", row_sum) + ld_b("fc_b")) # (TB, 1)

    out_ref[0] = jax.nn.sigmoid(y1 + y2)               # (TB, O)


# ---------------------------------------------------------------------------
# pallas_call wrapper
# ---------------------------------------------------------------------------
def tns_net_forward(wb, bb, cfg, x):
    """x: (B, C, L) float32 -> (B, output_channel) float32."""
    B, C, L = x.shape
    assert C == cfg["input_channel"] and L == cfg["input_length"]
    TB = cfg["batch_tile"]
    O = cfg["output_channel"]
    ntiles = (B + TB - 1) // TB
    Bpad = ntiles * TB

    # Layout-only host-side plumbing: time-major, batch folded onto sublanes.
    xt = jnp.transpose(x, (0, 2, 1))                   # (B, L, C)
    if Bpad != B:
        xt = jnp.pad(xt, ((0, Bpad - B), (0, 0), (0, 0)))
    xf = xt.reshape(ntiles, TB * L, C)

    kernel = functools.partial(
        _tns_fused_kernel,
        lay_w=cfg["lay_w"], lay_b=cfg["lay_b"],
        num_blocks=cfg["num_blocks"], kernel_size=cfg["kernel_size"],
        dilations=cfg["dilations"], length=L, tb=TB,
        roll_mode=cfg["roll_mode"],
    )

    out = pl.pallas_call(
        kernel,
        out_shape=jax.ShapeDtypeStruct((ntiles, TB, O), jnp.float32),
        grid=(ntiles,),
        in_specs=[
            pl.BlockSpec((1, TB * L, C), lambda g: (g, 0, 0)),   # batch tile
            pl.BlockSpec(wb.shape, lambda g: (0, 0)),            # bf16 weight slab
            pl.BlockSpec(bb.shape, lambda g: (0, 0)),            # f32 bias slab
        ],
        out_specs=pl.BlockSpec((1, TB, O), lambda g: (g, 0, 0)),
        compiler_params=pltpu.CompilerParams(
            # v7x: both TensorCores split the batch-tile grid when ntiles >= 2
            # (pick TB = B // 2 in that case); on v5e/v6e this is a short
            # sequential loop either way.
            dimension_semantics=("parallel",),
            # ~2 MiB of packed params (x2 pipelining) + temporaries; 16 MiB
            # keeps headroom while returning half of the previous 32 MiB
            # reservation (v7x only has 64 MiB VMEM per core).
            vmem_limit_bytes=16 * 1024 * 1024,
        ),
    )(xf, wb, bb)
    return out.reshape(Bpad, O)[:B]


# ---------------------------------------------------------------------------
# Parameter init (deterministic, synthetic; PyTorch layouts)
# ---------------------------------------------------------------------------
def init_tns_net_params(key, input_channel, input_length, output_channel,
                        num_channels, kernel_size):
    keys = iter(jax.random.split(key, 256))

    def w(shape):
        return 0.01 * jax.random.normal(next(keys), shape, dtype=jnp.float32)

    params = {"tns_blocks": []}
    for i, out_ch in enumerate(num_channels):
        in_ch = input_channel if i == 0 else num_channels[i - 1]
        params["tns_blocks"].append(dict(
            conv1_w=w((out_ch, in_ch, kernel_size)), conv1_b=w((out_ch,)),
            # Spatio_Block(in_ch, input_length) -- only net_a/c/e/f used in fwd
            sa_w=w((128, in_ch)), sa_b=w((128,)),
            sc_w=w((128, input_length)), sc_b=w((128,)),
            se_w=w((in_ch, 128)), se_b=w((in_ch,)),
            sf_w=w((input_length, 128)), sf_b=w((input_length,)),
        ))

    C = input_channel
    params["spatio"] = dict(
        a_w=w((128, C)), a_b=w((128,)),
        b_w=w((128, 128)), b_b=w((128,)),
        c_w=w((128, input_length)), c_b=w((128,)),
        d_w=w((128, 128)), d_b=w((128,)),
        e_w=w((64, 64)), e_b=w((64,)),
        f_w=w((32, 64)), f_b=w((32,)),
        g_w=w((64, 64)), g_b=w((64,)),
        h_w=w((32, 64)), h_b=w((32,)),
        i_w=w((16, 16)), i_b=w((16,)),
        j_w=w((4, 16)), j_b=w((4,)),
        k_w=w((16, 16)), k_b=w((16,)),
        l_w=w((4, 16)), l_b=w((4,)),
        fc_w=w((1, 16)), fc_b=w((1,)),
    )
    params["lin_w"] = w((output_channel, num_channels[-1]))
    params["lin_b"] = w((output_channel,))
    return params


# ---------------------------------------------------------------------------
# One-time repack into two kernel-ready slabs + static layout index
# ---------------------------------------------------------------------------
def pack_params(params, *, input_channel, input_length, num_channels,
                kernel_size, output_channel, batch_tile):
    TB = batch_tile
    L = input_length
    K = kernel_size
    nb = len(num_channels)
    dilations = tuple(2 ** i for i in range(nb))

    # Probe how / whether pltpu.roll works for the sublane roll we need.
    roll_mode = _probe_roll_mode(TB * L, input_channel)

    wpk = _SlabPacker(width=max(128, TB * 128), row_align=16)   # bf16 slab
    bpk = _SlabPacker(width=128, row_align=8)                   # f32 slab

    def A(a):
        return np.asarray(a, np.float32)

    def col(vec):                       # folded per-row ("column") bias
        return np.tile(A(vec).reshape(-1, 1), (TB, 1))

    def row(vec):                       # lane-dense per-column bias
        return A(vec).reshape(1, -1)

    for i, blk in enumerate(params["tns_blocks"]):
        in_ch = input_channel if i == 0 else num_channels[i - 1]
        assert num_channels[i] == in_ch, "residual add needs out_ch == in_ch"
        cw = A(blk["conv1_w"])                                   # (out, in, K)
        for t in range(K):
            wpk.add(f"b{i}_tap{t}", cw[:, :, t].T)
        bpk.add(f"b{i}_conv_b", row(blk["conv1_b"]))
        wpk.add(f"b{i}_saT", A(blk["sa_w"]).T)
        bpk.add(f"b{i}_sa_b", row(blk["sa_b"]))
        wpk.add(f"b{i}_scBD", _np_block_diag(A(blk["sc_w"]), TB))
        bpk.add(f"b{i}_sc_b", col(blk["sc_b"]))
        wpk.add(f"b{i}_seT", A(blk["se_w"]).T)
        bpk.add(f"b{i}_se_b", row(blk["se_b"]))
        wpk.add(f"b{i}_sfBD", _np_block_diag(A(blk["sf_w"]), TB))
        bpk.add(f"b{i}_sf_b", col(blk["sf_b"]))

    # Causal-shift helpers (deduped by shift amount).
    shifts = sorted({(K - 1 - t) * dilations[i]
                     for i in range(nb) for t in range(K)} - {0})
    for s in shifts:
        if roll_mode is None:
            wpk.add(f"shift{s}", _np_block_diag(_np_shift_mat(L, s), TB))
        else:
            bpk.add(f"mask{s}", _np_causal_mask(TB, L, s))

    # Linear head on the last time step.
    wpk.add("pick_last", _np_pick_last(TB, L))
    wpk.add("linT", A(params["lin_w"]).T)
    bpk.add("lin_b", row(params["lin_b"]))

    # Standalone Spatio_ConvNet branch.
    p = params["spatio"]
    wpk.add("sp_aT", A(p["a_w"]).T);   bpk.add("sp_a_b", row(p["a_b"]))
    wpk.add("sp_bT", A(p["b_w"]).T);   bpk.add("sp_b_b", row(p["b_b"]))
    wpk.add("sp_cBD", _np_block_diag(A(p["c_w"]), TB))
    bpk.add("sp_c_b", col(p["c_b"]))
    wpk.add("sp_dBD", _np_block_diag(A(p["d_w"]), TB))
    bpk.add("sp_d_b", col(p["d_b"]))
    wpk.add("p1_c0", _np_col_sel(128, 0))
    wpk.add("p1_c1", _np_col_sel(128, 1))
    wpk.add("p1_r0", _np_row_sel(TB * 128, 0))
    wpk.add("p1_r1", _np_row_sel(TB * 128, 1))
    wpk.add("sp_eT", A(p["e_w"]).T);   bpk.add("sp_e_b", row(p["e_b"]))
    wpk.add("sp_fT", A(p["f_w"]).T);   bpk.add("sp_f_b", row(p["f_b"]))
    wpk.add("sp_gBD", _np_block_diag(A(p["g_w"]), TB))
    bpk.add("sp_g_b", col(p["g_b"]))
    wpk.add("sp_hBD", _np_block_diag(A(p["h_w"]), TB))
    bpk.add("sp_h_b", col(p["h_b"]))
    wpk.add("p2_c0", _np_col_sel(32, 0))
    wpk.add("p2_c1", _np_col_sel(32, 1))
    wpk.add("p2_r0", _np_row_sel(TB * 32, 0))
    wpk.add("p2_r1", _np_row_sel(TB * 32, 1))
    wpk.add("sp_iT", A(p["i_w"]).T);   bpk.add("sp_i_b", row(p["i_b"]))
    wpk.add("sp_jT", A(p["j_w"]).T);   bpk.add("sp_j_b", row(p["j_b"]))
    wpk.add("sp_kBD", _np_block_diag(A(p["k_w"]), TB))
    bpk.add("sp_k_b", col(p["k_b"]))
    wpk.add("sp_lBD", _np_block_diag(A(p["l_w"]), TB))
    bpk.add("sp_l_b", col(p["l_b"]))
    # fc(view(-1, 16)): per-batch weighted sum of the final (4, 4) tile.
    fcT = A(p["fc_w"]).reshape(4, 4).T                 # [t, r] = fc_w[0, 4r+t]
    bpk.add("fcT_tile", np.tile(fcT, (TB, 1)))
    wpk.add("fc_bsum", _np_block_rowsum(TB, 4))
    bpk.add("fc_b", A(p["fc_b"]).reshape(1, 1))

    wb, lay_w = wpk.finalize(jnp.bfloat16)
    bb, lay_b = bpk.finalize(jnp.float32)

    cfg = dict(
        num_blocks=nb, dilations=dilations, kernel_size=K,
        input_channel=input_channel, input_length=L,
        output_channel=output_channel, batch_tile=TB,
        lay_w=lay_w, lay_b=lay_b, roll_mode=roll_mode,
    )
    return (wb, bb), cfg


# ---------------------------------------------------------------------------
# Pure-JAX f32 golden reference (PyTorch NCL semantics)
# ---------------------------------------------------------------------------
def tns_net_reference(params, dilations, x):
    relu = lambda v: jnp.maximum(v, 0.0)

    def conv1x1(v, w, b):          # v (B, Cin, N), w (Cout, Cin)
        return jnp.einsum("oc,bcn->bon", w, v) + b[None, :, None]

    def lin_last(v, w, b):         # nn.Linear over the last dim
        return jnp.einsum("pn,bmn->bmp", w, v) + b[None, None, :]

    def maxpool2(v):               # nn.MaxPool2d(2, 2) over the last two dims
        b_, h_, w_ = v.shape
        return jnp.max(v.reshape(b_, h_ // 2, 2, w_ // 2, 2), axis=(2, 4))

    def causal_conv(v, w, b, d):   # Conv1d(dilation=d, padding=(K-1)d) + Chomp
        _, _, L = v.shape
        K = w.shape[2]
        out = b[None, :, None]
        for k in range(K):
            s = (K - 1 - k) * d
            vs = jnp.pad(v, ((0, 0), (0, 0), (s, 0)))[:, :, :L]
            out = out + jnp.einsum("oc,bcl->bol", w[:, :, k], vs)
        return out

    z = x
    for i, blk in enumerate(params["tns_blocks"]):
        t = relu(causal_conv(z, blk["conv1_w"], blk["conv1_b"], dilations[i]))
        s = conv1x1(z, blk["sa_w"], blk["sa_b"])
        s = lin_last(s, blk["sc_w"], blk["sc_b"])
        s = conv1x1(s, blk["se_w"], blk["se_b"])
        s = relu(lin_last(s, blk["sf_w"], blk["sf_b"]))
        z = relu(z + t + s)
    y1 = z[:, :, -1] @ params["lin_w"].T + params["lin_b"]

    p = params["spatio"]
    h = conv1x1(x, p["a_w"], p["a_b"])
    h = conv1x1(h, p["b_w"], p["b_b"])
    h = lin_last(h, p["c_w"], p["c_b"])
    h = relu(lin_last(h, p["d_w"], p["d_b"]))
    h = maxpool2(h)
    h = conv1x1(h, p["e_w"], p["e_b"])
    h = conv1x1(h, p["f_w"], p["f_b"])
    h = lin_last(h, p["g_w"], p["g_b"])
    h = relu(lin_last(h, p["h_w"], p["h_b"]))
    h = maxpool2(h)
    h = conv1x1(h, p["i_w"], p["i_b"])
    h = conv1x1(h, p["j_w"], p["j_b"])
    h = lin_last(h, p["k_w"], p["k_b"])
    h = lin_last(h, p["l_w"], p["l_b"])                # (B, 4, 4)
    y2 = relu(h.reshape(h.shape[0], 16) @ p["fc_w"].T + p["fc_b"])
    return jax.nn.sigmoid(y1 + y2)


if __name__ == "__main__":
    B, C, L = 2, 4, 16          # batch, input_channel, input_length
    O = 3                       # output_channel
    num_channels = [C, C]       # residual add requires out_ch == in_ch
    kernel_size = 2
    batch_tile = 2              # fold the whole (small) batch into one grid step

    key = jax.random.PRNGKey(0)
    pkey, xkey = jax.random.split(key)
    params = init_tns_net_params(pkey, C, L, O, num_channels, kernel_size)
    (wb, bb), cfg = pack_params(
        params, input_channel=C, input_length=L, num_channels=num_channels,
        kernel_size=kernel_size, output_channel=O, batch_tile=batch_tile)
    x = jax.random.normal(xkey, (B, C, L), dtype=jnp.float32)

    fwd = jax.jit(lambda w_, b_, x_: tns_net_forward(w_, b_, cfg, x_))
    out = jax.block_until_ready(fwd(wb, bb, x))
    assert out.shape == (B, O), out.shape
    assert bool(jnp.all(jnp.isfinite(out)))

    # Golden-numerics check against a pure-JAX f32 reference of the PyTorch
    # forward (guards fc flatten order, pool orientation, shift direction).
    ref = tns_net_reference(params, cfg["dilations"], x)
    err = float(jnp.max(jnp.abs(out - ref)))
    assert err < 3e-3, f"kernel vs reference mismatch: max|diff| = {err}"
    print("KERNEL_OK")
</pallas_src>

<mosaic_0001>
module attributes {stable_mosaic.version = 11 : i64} {
  func.func @kern(%arg0: memref<32x4xf32, #tpu.memory_space<vmem>>, %arg1: memref<32x4xf32, #tpu.memory_space<vmem>>) attributes {dimension_semantics = [], scalar_prefetch = 0 : i64, scratch_operands = 0 : i64, tpu.core_type = #tpu.core_type<tc>} {
    %c0 = arith.constant 0 : index
    %c0_0 = arith.constant 0 : index
    %0 = vector.load %arg0[%c0, %c0_0] : memref<32x4xf32, #tpu.memory_space<vmem>>, vector<32x4xf32>
    %c1_i32 = arith.constant 1 : i32
    %1 = tpu.dynamic_rotate %0 by %c1_i32 dim 0 : vector<32x4xf32>, i32 -> vector<32x4xf32>
    %c0_1 = arith.constant 0 : index
    %c0_2 = arith.constant 0 : index
    %2 = vector.load %arg1[%c0_1, %c0_2] : memref<32x4xf32, #tpu.memory_space<vmem>>, vector<32x4xf32>
    tpu.vector_store %arg1[%c0_1, %c0_2], %1 {strides = array<i32>} : memref<32x4xf32, #tpu.memory_space<vmem>>, vector<32x4xf32>,
    return
  }
}

module attributes {stable_mosaic.version = 11 : i64} {
  func.func @_tns_fused_kernel(%arg0: i32, %arg1: memref<1x32x4xf32, #tpu.memory_space<vmem>>, %arg2: memref<2736x256xbf16, #tpu.memory_space<vmem>>, %arg3: memref<1440x128xf32, #tpu.memory_space<vmem>>, %arg4: memref<1x2x3xf32, #tpu.memory_space<vmem>>) attributes {dimension_semantics = [#tpu.dimension_semantics<parallel>], iteration_bounds = array<i64: 1>, scalar_prefetch = 0 : i64, scratch_operands = 0 : i64, tpu.core_type = #tpu.core_type<tc>, window_params = [{transform_indices = @transform_0, window_bounds = array<i64: 1, 32, 4>}, {pipeline_mode = #tpu.pipeline_mode<synchronous>, transform_indices = @transform_1, window_bounds = array<i64: 2736, 256>}, {pipeline_mode = #tpu.pipeline_mode<synchronous>, transform_indices = @transform_2, window_bounds = array<i64: 1440, 128>}, {transform_indices = @transform_3, window_bounds = array<i64: 1, 2, 3>}]} {
    %c0 = arith.constant 0 : index
    %c0_0 = arith.constant 0 : index
    %c0_1 = arith.constant 0 : index
    %0 = vector.load %arg1[%c0, %c0_0, %c0_1] : memref<1x32x4xf32, #tpu.memory_space<vmem>>, vector<1x32x4xf32>
    %1 = vector.shape_cast %0 : vector<1x32x4xf32> to vector<32x4xf32>
    %c0_2 = arith.constant 0 : index
    %c0_3 = arith.constant 0 : index
    %2 = vector.load %arg3[%c0_2, %c0_3] : memref<1440x128xf32, #tpu.memory_space<vmem>>, vector<1x4xf32>
    %c928 = arith.constant 928 : index
    %c0_4 = arith.constant 0 : index
    %3 = vector.load %arg2[%c928, %c0_4] : memref<2736x256xbf16, #tpu.memory_space<vmem>>, vector<32x32xbf16>
    %4 = arith.truncf %1 : vector<32x4xf32> to vector<32x4xbf16>
    %cst = arith.constant dense<0.000000e+00> : vector<32x4xf32>
    %5 = tpu.matmul %3, %4, %cst {dimension_numbers = #tpu.dot_dimension_numbers<[1], [0], [0], [1], [0, 0, 1, 1], [], []>} : vector<32x32xbf16>, vector<32x4xbf16>, vector<32x4xf32> -> vector<32x4xf32>
    %6 = arith.truncf %5 : vector<32x4xf32> to vector<32x4xbf16>
    %c0_5 = arith.constant 0 : index
    %c0_6 = arith.constant 0 : index
    %7 = vector.load %arg2[%c0_5, %c0_6] : memref<2736x256xbf16, #tpu.memory_space<vmem>>, vector<4x4xbf16>
    %cst_7 = arith.constant dense<0.000000e+00> : vector<32x4xf32>
    %8 = tpu.matmul %6, %7, %cst_7 {dimension_numbers = #tpu.dot_dimension_numbers<[1], [0], [0], [1], [0, 0, 1, 1], [], []>} : vector<32x4xbf16>, vector<4x4xbf16>, vector<32x4xf32> -> vector<32x4xf32>
    %9 = vector.broadcast %2 : vector<1x4xf32> to vector<32x4xf32>
    %10 = arith.addf %9, %8 : vector<32x4xf32>
    %11 = arith.truncf %1 : vector<32x4xf32> to vector<32x4xbf16>
    %c16 = arith.constant 16 : index
    %c0_8 = arith.constant 0 : index
    %12 = vector.load %arg2[%c16, %c0_8] : memref<2736x256xbf16, #tpu.memory_space<vmem>>, vector<4x4xbf16>
    %cst_9 = arith.constant dense<0.000000e+00> : vector<32x4xf32>
    %13 = tpu.matmul %11, %12, %cst_9 {dimension_numbers = #tpu.dot_dimension_numbers<[1], [0], [0], [1], [0, 0, 1, 1], [], []>} : vector<32x4xbf16>, vector<4x4xbf16>, vector<32x4xf32> -> vector<32x4xf32>
    %14 = arith.addf %10, %13 : vector<32x4xf32>
    %cst_10 = arith.constant 0.000000e+00 : f32
    %15 = vector.broadcast %cst_10 : f32 to vector<32x4xf32>
    %16 = arith.maximumf %14, %15 : vector<32x4xf32>
    %17 = arith.truncf %1 : vector<32x4xf32> to vector<32x4xbf16>
    %c32 = arith.constant 32 : index
    %c0_11 = arith.constant 0 : index
    %18 = vector.load %arg2[%c32, %c0_11] : memref<2736x256xbf16, #tpu.memory_space<vmem>>, vector<4x128xbf16>
    %cst_12 = arith.constant dense<0.000000e+00> : vector<32x128xf32>
    %19 = tpu.matmul %17, %18, %cst_12 {dimension_numbers = #tpu.dot_dimension_numbers<[1], [0], [0], [1], [0, 0, 1, 1], [], []>} : vector<32x4xbf16>, vector<4x128xbf16>, vector<32x128xf32> -> vector<32x128xf32>
    %c8 = arith.constant 8 : index
    %c0_13 = arith.constant 0 : index
    %20 = vector.load %arg3[%c8, %c0_13] : memref<1440x128xf32, #tpu.memory_space<vmem>>, vector<1x128xf32>
    %21 = vector.broadcast %20 : vector<1x128xf32> to vector<32x128xf32>
    %22 = arith.addf %19, %21 : vector<32x128xf32>
    %c48 = arith.constant 48 : index
    %c0_14 = arith.constant 0 : index
    %23 = vector.load %arg2[%c48, %c0_14] : memref<2736x256xbf16, #tpu.memory_space<vmem>>, vector<256x32xbf16>
    %24 = arith.truncf %22 : vector<32x128xf32> to vector<32x128xbf16>
    %cst_15 = arith.constant dense<0.000000e+00> : vector<256x128xf32>
    %25 = tpu.matmul %23, %24, %cst_15 {dimension_numbers = #tpu.dot_dimension_numbers<[1], [0], [0], [1], [0, 0, 1, 1], [], []>} : vector<256x32xbf16>, vector<32x128xbf16>, vector<256x128xf32> -> vector<256x128xf32>
    %c16_16 = arith.constant 16 : index
    %c0_17 = arith.constant 0 : index
    %26 = vector.load %arg3[%c16_16, %c0_17] : memref<1440x128xf32, #tpu.memory_space<vmem>>, vector<256x1xf32>
    %27 = vector.broadcast %26 : vector<256x1xf32> to vector<256x128xf32>
    %28 = arith.addf %25, %27 : vector<256x128xf32>
    %29 = arith.truncf %28 : vector<256x128xf32> to vector<256x128xbf16>
    %c304 = arith.constant 304 : index
    %c0_18 = arith.constant 0 : index
    %30 = vector.load %arg2[%c304, %c0_18] : memref<2736x256xbf16, #tpu.memory_space<vmem>>, vector<128x4xbf16>
    %cst_19 = arith.constant dense<0.000000e+00> : vector<256x4xf32>
    %31 = tpu.matmul %29, %30, %cst_19 {dimension_numbers = #tpu.dot_dimension_numbers<[1], [0], [0], [1], [0, 0, 1, 1], [], []>} : vector<256x128xbf16>, vector<128x4xbf16>, vector<256x4xf32> -> vector<256x4xf32>
    %c272 = arith.constant 272 : index
    %c0_20 = arith.constant 0 : index
    %32 = vector.load %arg3[%c272, %c0_20] : memref<1440x128xf32, #tpu.memory_space<vmem>>, vector<1x4xf32>
    %33 = vector.broadcast %32 : vector<1x4xf32> to vector<256x4xf32>
    %34 = arith.addf %31, %33 : vector<256x4xf32>
    %c432 = arith.constant 432 : index
    %c0_21 = arith.constant 0 : index
    %35 = vector.load %arg2[%c432, %c0_21] : memref<2736x256xbf16, #tpu.memory_space<vmem>>, vector<32x256xbf16>
    %36 = arith.truncf %34 : vector<256x4xf32> to vector<256x4xbf16>
    %cst_22 = arith.constant dense<0.000000e+00> : vector<32x4xf32>
    %37 = tpu.matmul %35, %36, %cst_22 {dimension_numbers = #tpu.dot_dimension_numbers<[1], [0], [0], [1], [0, 0, 1, 1], [], []>} : vector<32x256xbf16>, vector<256x4xbf16>, vector<32x4xf32> -> vector<32x4xf32>
    %c280 = arith.constant 280 : index
    %c0_23 = arith.constant 0 : index
    %38 = vector.load %arg3[%c280, %c0_23] : memref<1440x128xf32, #tpu.memory_space<vmem>>, vector<32x1xf32>
    %39 = vector.broadcast %38 : vector<32x1xf32> to vector<32x4xf32>
    %40 = arith.addf %37, %39 : vector<32x4xf32>
    %cst_24 = arith.constant 0.000000e+00 : f32
    %41 = vector.broadcast %cst_24 : f32 to vector<32x4xf32>
    %42 = arith.maximumf %40, %41 : vector<32x4xf32>
    %43 = arith.addf %1, %16 : vector<32x4xf32>
    %44 = arith.addf %43, %42 : vector<32x4xf32>
    %cst_25 = arith.constant 0.000000e+00 : f32
    %45 = vector.broadcast %cst_25 : f32 to vector<32x4xf32>
    %46 = arith.maximumf %44, %45 : vector<32x4xf32>
    %c312 = arith.constant 312 : index
    %c0_26 = arith.constant 0 : index
    %47 = vector.load %arg3[%c312, %c0_26] : memref<1440x128xf32, #tpu.memory_space<vmem>>, vector<1x4xf32>
    %c960 = arith.constant 960 : index
    %c0_27 = arith.constant 0 : index
    %48 = vector.load %arg2[%c960, %c0_27] : memref<2736x256xbf16, #tpu.memory_space<vmem>>, vector<32x32xbf16>
    %49 = arith.truncf %46 : vector<32x4xf32> to vector<32x4xbf16>
    %cst_28 = arith.constant dense<0.000000e+00> : vector<32x4xf32>
    %50 = tpu.matmul %48, %49, %cst_28 {dimension_numbers = #tpu.dot_dimension_numbers<[1], [0], [0], [1], [0, 0, 1, 1], [], []>} : vector<32x32xbf16>, vector<32x4xbf16>, vector<32x4xf32> -> vector<32x4xf32>
    %51 = arith.truncf %50 : vector<32x4xf32> to vector<32x4xbf16>
    %c464 = arith.constant 464 : index
    %c0_29 = arith.constant 0 : index
    %52 = vector.load %arg2[%c464, %c0_29] : memref<2736x256xbf16, #tpu.memory_space<vmem>>, vector<4x4xbf16>
    %cst_30 = arith.constant dense<0.000000e+00> : vector<32x4xf32>
    %53 = tpu.matmul %51, %52, %cst_30 {dimension_numbers = #tpu.dot_dimension_numbers<[1], [0], [0], [1], [0, 0, 1, 1], [], []>} : vector<32x4xbf16>, vector<4x4xbf16>, vector<32x4xf32> -> vector<32x4xf32>
    %54 = vector.broadcast %47 : vector<1x4xf32> to vector<32x4xf32>
    %55 = arith.addf %54, %53 : vector<32x4xf32>
    %56 = arith.truncf %46 : vector<32x4xf32> to vector<32x4xbf16>
    %c480 = arith.constant 480 : index
    %c0_31 = arith.constant 0 : index
    %57 = vector.load %arg2[%c480, %c0_31] : memref<2736x256xbf16, #tpu.memory_space<vmem>>, vector<4x4xbf16>
    %cst_32 = arith.constant dense<0.000000e+00> : vector<32x4xf32>
    %58 = tpu.matmul %56, %57, %cst_32 {dimension_numbers = #tpu.dot_dimension_numbers<[1], [0], [0], [1], [0, 0, 1, 1], [], []>} : vector<32x4xbf16>, vector<4x4xbf16>, vector<32x4xf32> -> vector<32x4xf32>
    %59 = arith.addf %55, %58 : vector<32x4xf32>
    %cst_33 = arith.constant 0.000000e+00 : f32
    %60 = vector.broadcast %cst_33 : f32 to vector<32x4xf32>
    %61 = arith.maximumf %59, %60 : vector<32x4xf32>
    %62 = arith.truncf %46 : vector<32x4xf32> to vector<32x4xbf16>
    %c496 = arith.constant 496 : index
    %c0_34 = arith.constant 0 : index
    %63 = vector.load %arg2[%c496, %c0_34] : memref<2736x256xbf16, #tpu.memory_space<vmem>>, vector<4x128xbf16>
    %cst_35 = arith.constant dense<0.000000e+00> : vector<32x128xf32>
    %64 = tpu.matmul %62, %63, %cst_35 {dimension_numbers = #tpu.dot_dimension_numbers<[1], [0], [0], [1], [0, 0, 1, 1], [], []>} : vector<32x4xbf16>, vector<4x128xbf16>, vector<32x128xf32> -> vector<32x128xf32>
    %c320 = arith.constant 320 : index
    %c0_36 = arith.constant 0 : index
    %65 = vector.load %arg3[%c320, %c0_36] : memref<1440x128xf32, #tpu.memory_space<vmem>>, vector<1x128xf32>
    %66 = vector.broadcast %65 : vector<1x128xf32> to vector<32x128xf32>
    %67 = arith.addf %64, %66 : vector<32x128xf32>
    %c512 = arith.constant 512 : index
    %c0_37 = arith.constant 0 : index
    %68 = vector.load %arg2[%c512, %c0_37] : memref<2736x256xbf16, #tpu.memory_space<vmem>>, vector<256x32xbf16>
    %69 = arith.truncf %67 : vector<32x128xf32> to vector<32x128xbf16>
    %cst_38 = arith.constant dense<0.000000e+00> : vector<256x128xf32>
    %70 = tpu.matmul %68, %69, %cst_38 {dimension_numbers = #tpu.dot_dimension_numbers<[1], [0], [0], [1], [0, 0, 1, 1], [], []>} : vector<256x32xbf16>, vector<32x128xbf16>, vector<256x128xf32> -> vector<256x128xf32>
    %c328 = arith.constant 328 : index
    %c0_39 = arith.constant 0 : index
    %71 = vector.load %arg3[%c328, %c0_39] : memref<1440x128xf32, #tpu.memory_space<vmem>>, vector<256x1xf32>
    %72 = vector.broadcast %71 : vector<256x1xf32> to vector<256x128xf32>
    %73 = arith.addf %70, %72 : vector<256x128xf32>
    %74 = arith.truncf %73 : vector<256x128xf32> to vector<256x128xbf16>
    %c768 = arith.constant 768 : index
    %c0_40 = arith.constant 0 : index
    %75 = vector.load %arg2[%c768, %c0_40] : memref<2736x256xbf16, #tpu.memory_space<vmem>>, vector<128x4xbf16>
    %cst_41 = arith.constant dense<0.000000e+00> : vector<256x4xf32>
    %76 = tpu.matmul %74, %75, %cst_41 {dimension_numbers = #tpu.dot_dimension_numbers<[1], [0], [0], [1], [0, 0, 1, 1], [], []>} : vector<256x128xbf16>, vector<128x4xbf16>, vector<256x4xf32> -> vector<256x4xf32>
    %c584 = arith.constant 584 : index
    %c0_42 = arith.constant 0 : index
    %77 = vector.load %arg3[%c584, %c0_42] : memref<1440x128xf32, #tpu.memory_space<vmem>>, vector<1x4xf32>
    %78 = vector.broadcast %77 : vector<1x4xf32> to vector<256x4xf32>
    %79 = arith.addf %76, %78 : vector<256x4xf32>
    %c896 = arith.constant 896 : index
    %c0_43 = arith.constant 0 : index
    %80 = vector.load %arg2[%c896, %c0_43] : memref<2736x256xbf16, #tpu.memory_space<vmem>>, vector<32x256xbf16>
    %81 = arith.truncf %79 : vector<256x4xf32> to vector<256x4xbf16>
    %cst_44 = arith.constant dense<0.000000e+00> : vector<32x4xf32>
    %82 = tpu.matmul %80, %81, %cst_44 {dimension_numbers = #tpu.dot_dimension_numbers<[1], [0], [0], [1], [0, 0, 1, 1], [], []>} : vector<32x256xbf16>, vector<256x4xbf16>, vector<32x4xf32> -> vector<32x4xf32>
    %c592 = arith.constant 592 : index
    %c0_45 = arith.constant 0 : index
    %83 = vector.load %arg3[%c592, %c0_45] : memref<1440x128xf32, #tpu.memory_space<vmem>>, vector<32x1xf32>
    %84 = vector.broadcast %83 : vector<32x1xf32> to vector<32x4xf32>
    %85 = arith.addf %82, %84 : vector<32x4xf32>
    %cst_46 = arith.constant 0.000000e+00 : f32
    %86 = vector.broadcast %cst_46 : f32 to vector<32x4xf32>
    %87 = arith.maximumf %85, %86 : vector<32x4xf32>
    %88 = arith.addf %46, %61 : vector<32x4xf32>
    %89 = arith.addf %88, %87 : vector<32x4xf32>
    %cst_47 = arith.constant 0.000000e+00 : f32
    %90 = vector.broadcast %cst_47 : f32 to vector<32x4xf32>
    %91 = arith.maximumf %89, %90 : vector<32x4xf32>
    %c992 = arith.constant 992 : index
    %c0_48 = arith.constant 0 : index
    %92 = vector.load %arg2[%c992, %c0_48] : memref<2736x256xbf16, #tpu.memory_space<vmem>>, vector<2x32xbf16>
    %93 = arith.truncf %91 : vector<32x4xf32> to vector<32x4xbf16>
    %cst_49 = arith.constant dense<0.000000e+00> : vector<2x4xf32>
    %94 = tpu.matmul %92, %93, %cst_49 {dimension_numbers = #tpu.dot_dimension_numbers<[1], [0], [0], [1], [0, 0, 1, 1], [], []>} : vector<2x32xbf16>, vector<32x4xbf16>, vector<2x4xf32> -> vector<2x4xf32>
    %95 = arith.truncf %94 : vector<2x4xf32> to vector<2x4xbf16>
    %c1008 = arith.constant 1008 : index
    %c0_50 = arith.constant 0 : index
    %96 = vector.load %arg2[%c1008, %c0_50] : memref<2736x256xbf16, #tpu.memory_space<vmem>>, vector<4x3xbf16>
    %cst_51 = arith.constant dense<0.000000e+00> : vector<2x3xf32>
    %97 = tpu.matmul %95, %96, %cst_51 {dimension_numbers = #tpu.dot_dimension_numbers<[1], [0], [0], [1], [0, 0, 1, 1], [], []>} : vector<2x4xbf16>, vector<4x3xbf16>, vector<2x3xf32> -> vector<2x3xf32>
    %c624 = arith.constant 624 : index
    %c0_52 = arith.constant 0 : index
    %98 = vector.load %arg3[%c624, %c0_52] : memref<1440x128xf32, #tpu.memory_space<vmem>>, vector<1x3xf32>
    %99 = vector.broadcast %98 : vector<1x3xf32> to vector<2x3xf32>
    %100 = arith.addf %97, %99 : vector<2x3xf32>
    %101 = arith.truncf %1 : vector<32x4xf32> to vector<32x4xbf16>
    %c1024 = arith.constant 1024 : index
    %c0_53 = arith.constant 0 : index
    %102 = vector.load %arg2[%c1024, %c0_53] : memref<2736x256xbf16, #tpu.memory_space<vmem>>, vector<4x128xbf16>
    %cst_54 = arith.constant dense<0.000000e+00> : vector<32x128xf32>
    %103 = tpu.matmul %101, %102, %cst_54 {dimension_numbers = #tpu.dot_dimension_numbers<[1], [0], [0], [1], [0, 0, 1, 1], [], []>} : vector<32x4xbf16>, vector<4x128xbf16>, vector<32x128xf32> -> vector<32x128xf32>
    %c632 = arith.constant 632 : index
    %c0_55 = arith.constant 0 : index
    %104 = vector.load %arg3[%c632, %c0_55] : memref<1440x128xf32, #tpu.memory_space<vmem>>, vector<1x128xf32>
    %105 = vector.broadcast %104 : vector<1x128xf32> to vector<32x128xf32>
    %106 = arith.addf %103, %105 : vector<32x128xf32>
    %107 = arith.truncf %106 : vector<32x128xf32> to vector<32x128xbf16>
    %c1040 = arith.constant 1040 : index
    %c0_56 = arith.constant 0 : index
    %108 = vector.load %arg2[%c1040, %c0_56] : memref<2736x256xbf16, #tpu.memory_space<vmem>>, vector<128x128xbf16>
    %cst_57 = arith.constant dense<0.000000e+00> : vector<32x128xf32>
    %109 = tpu.matmul %107, %108, %cst_57 {dimension_numbers = #tpu.dot_dimension_numbers<[1], [0], [0], [1], [0, 0, 1, 1], [], []>} : vector<32x128xbf16>, vector<128x128xbf16>, vector<32x128xf32> -> vector<32x128xf32>
    %c640 = arith.constant 640 : index
    %c0_58 = arith.constant 0 : index
    %110 = vector.load %arg3[%c640, %c0_58] : memref<1440x128xf32, #tpu.memory_space<vmem>>, vector<1x128xf32>
    %111 = vector.broadcast %110 : vector<1x128xf32> to vector<32x128xf32>
    %112 = arith.addf %109, %111 : vector<32x128xf32>
    %c1168 = arith.constant 1168 : index
    %c0_59 = arith.constant 0 : index
    %113 = vector.load %arg2[%c1168, %c0_59] : memref<2736x256xbf16, #tpu.memory_space<vmem>>, vector<256x32xbf16>
    %114 = arith.truncf %112 : vector<32x128xf32> to vector<32x128xbf16>
    %cst_60 = arith.constant dense<0.000000e+00> : vector<256x128xf32>
    %115 = tpu.matmul %113, %114, %cst_60 {dimension_numbers = #tpu.dot_dimension_numbers<[1], [0], [0], [1], [0, 0, 1, 1], [], []>} : vector<256x32xbf16>, vector<32x128xbf16>, vector<256x128xf32> -> vector<256x128xf32>
    %c648 = arith.constant 648 : index
    %c0_61 = arith.constant 0 : index
    %116 = vector.load %arg3[%c648, %c0_61] : memref<1440x128xf32, #tpu.memory_space<vmem>>, vector<256x1xf32>
    %117 = vector.broadcast %116 : vector<256x1xf32> to vector<256x128xf32>
    %118 = arith.addf %115, %117 : vector<256x128xf32>
    %c1424 = arith.constant 1424 : index
    %c0_62 = arith.constant 0 : index
    %119 = vector.load %arg2[%c1424, %c0_62] : memref<2736x256xbf16, #tpu.memory_space<vmem>>, vector<256x256xbf16>
    %120 = arith.truncf %118 : vector<256x128xf32> to vector<256x128xbf16>
    %cst_63 = arith.constant dense<0.000000e+00> : vector<256x128xf32>
    %121 = tpu.matmul %119, %120, %cst_63 {dimension_numbers = #tpu.dot_dimension_numbers<[1], [0], [0], [1], [0, 0, 1, 1], [], []>} : vector<256x256xbf16>, vector<256x128xbf16>, vector<256x128xf32> -> vector<256x128xf32>
    %c904 = arith.constant 904 : index
    %c0_64 = arith.constant 0 : index
    %122 = vector.load %arg3[%c904, %c0_64] : memref<1440x128xf32, #tpu.memory_space<vmem>>, vector<256x1xf32>
    %123 = vector.broadcast %122 : vector<256x1xf32> to vector<256x128xf32>
    %124 = arith.addf %121, %123 : vector<256x128xf32>
    %cst_65 = arith.constant 0.000000e+00 : f32
    %125 = vector.broadcast %cst_65 : f32 to vector<256x128xf32>
    %126 = arith.maximumf %124, %125 : vector<256x128xf32>
    %127 = arith.truncf %126 : vector<256x128xf32> to vector<256x128xbf16>
    %c1680 = arith.constant 1680 : index
    %c0_66 = arith.constant 0 : index
    %128 = vector.load %arg2[%c1680, %c0_66] : memref<2736x256xbf16, #tpu.memory_space<vmem>>, vector<128x64xbf16>
    %cst_67 = arith.constant dense<0.000000e+00> : vector<256x64xf32>
    %129 = tpu.matmul %127, %128, %cst_67 {dimension_numbers = #tpu.dot_dimension_numbers<[1], [0], [0], [1], [0, 0, 1, 1], [], []>} : vector<256x128xbf16>, vector<128x64xbf16>, vector<256x64xf32> -> vector<256x64xf32>
    %130 = arith.truncf %126 : vector<256x128xf32> to vector<256x128xbf16>
    %c1808 = arith.constant 1808 : index
    %c0_68 = arith.constant 0 : index
    %131 = vector.load %arg2[%c1808, %c0_68] : memref<2736x256xbf16, #tpu.memory_space<vmem>>, vector<128x64xbf16>
    %cst_69 = arith.constant dense<0.000000e+00> : vector<256x64xf32>
    %132 = tpu.matmul %130, %131, %cst_69 {dimension_numbers = #tpu.dot_dimension_numbers<[1], [0], [0], [1], [0, 0, 1, 1], [], []>} : vector<256x128xbf16>, vector<128x64xbf16>, vector<256x64xf32> -> vector<256x64xf32>
    %133 = arith.maximumf %129, %132 : vector<256x64xf32>
    %c1936 = arith.constant 1936 : index
    %c0_70 = arith.constant 0 : index
    %134 = vector.load %arg2[%c1936, %c0_70] : memref<2736x256xbf16, #tpu.memory_space<vmem>>, vector<128x256xbf16>
    %135 = arith.truncf %133 : vector<256x64xf32> to vector<256x64xbf16>
    %cst_71 = arith.constant dense<0.000000e+00> : vector<128x64xf32>
    %136 = tpu.matmul %134, %135, %cst_71 {dimension_numbers = #tpu.dot_dimension_numbers<[1], [0], [0], [1], [0, 0, 1, 1], [], []>} : vector<128x256xbf16>, vector<256x64xbf16>, vector<128x64xf32> -> vector<128x64xf32>
    %c2064 = arith.constant 2064 : index
    %c0_72 = arith.constant 0 : index
    %137 = vector.load %arg2[%c2064, %c0_72] : memref<2736x256xbf16, #tpu.memory_space<vmem>>, vector<128x256xbf16>
    %138 = arith.truncf %133 : vector<256x64xf32> to vector<256x64xbf16>
    %cst_73 = arith.constant dense<0.000000e+00> : vector<128x64xf32>
    %139 = tpu.matmul %137, %138, %cst_73 {dimension_numbers = #tpu.dot_dimension_numbers<[1], [0], [0], [1], [0, 0, 1, 1], [], []>} : vector<128x256xbf16>, vector<256x64xbf16>, vector<128x64xf32> -> vector<128x64xf32>
    %140 = arith.maximumf %136, %139 : vector<128x64xf32>
    %141 = arith.truncf %140 : vector<128x64xf32> to vector<128x64xbf16>
    %c2192 = arith.constant 2192 : index
    %c0_74 = arith.constant 0 : index
    %142 = vector.load %arg2[%c2192, %c0_74] : memref<2736x256xbf16, #tpu.memory_space<vmem>>, vector<64x64xbf16>
    %cst_75 = arith.constant dense<0.000000e+00> : vector<128x64xf32>
    %143 = tpu.matmul %141, %142, %cst_75 {dimension_numbers = #tpu.dot_dimension_numbers<[1], [0], [0], [1], [0, 0, 1, 1], [], []>} : vector<128x64xbf16>, vector<64x64xbf16>, vector<128x64xf32> -> vector<128x64xf32>
    %c1160 = arith.constant 1160 : index
    %c0_76 = arith.constant 0 : index
    %144 = vector.load %arg3[%c1160, %c0_76] : memref<1440x128xf32, #tpu.memory_space<vmem>>, vector<1x64xf32>
    %145 = vector.broadcast %144 : vector<1x64xf32> to vector<128x64xf32>
    %146 = arith.addf %143, %145 : vector<128x64xf32>
    %147 = arith.truncf %146 : vector<128x64xf32> to vector<128x64xbf16>
    %c2256 = arith.constant 2256 : index
    %c0_77 = arith.constant 0 : index
    %148 = vector.load %arg2[%c2256, %c0_77] : memref<2736x256xbf16, #tpu.memory_space<vmem>>, vector<64x32xbf16>
    %cst_78 = arith.constant dense<0.000000e+00> : vector<128x32xf32>
    %149 = tpu.matmul %147, %148, %cst_78 {dimension_numbers = #tpu.dot_dimension_numbers<[1], [0], [0], [1], [0, 0, 1, 1], [], []>} : vector<128x64xbf16>, vector<64x32xbf16>, vector<128x32xf32> -> vector<128x32xf32>
    %c1168_79 = arith.constant 1168 : index
    %c0_80 = arith.constant 0 : index
    %150 = vector.load %arg3[%c1168_79, %c0_80] : memref<1440x128xf32, #tpu.memory_space<vmem>>, vector<1x32xf32>
    %151 = vector.broadcast %150 : vector<1x32xf32> to vector<128x32xf32>
    %152 = arith.addf %149, %151 : vector<128x32xf32>
    %c2320 = arith.constant 2320 : index
    %c0_81 = arith.constant 0 : index
    %153 = vector.load %arg2[%c2320, %c0_81] : memref<2736x256xbf16, #tpu.memory_space<vmem>>, vector<128x128xbf16>
    %154 = arith.truncf %152 : vector<128x32xf32> to vector<128x32xbf16>
    %cst_82 = arith.constant dense<0.000000e+00> : vector<128x32xf32>
    %155 = tpu.matmul %153, %154, %cst_82 {dimension_numbers = #tpu.dot_dimension_numbers<[1], [0], [0], [1], [0, 0, 1, 1], [], []>} : vector<128x128xbf16>, vector<128x32xbf16>, vector<128x32xf32> -> vector<128x32xf32>
    %c1176 = arith.constant 1176 : index
    %c0_83 = arith.constant 0 : index
    %156 = vector.load %arg3[%c1176, %c0_83] : memref<1440x128xf32, #tpu.memory_space<vmem>>, vector<128x1xf32>
    %157 = vector.broadcast %156 : vector<128x1xf32> to vector<128x32xf32>
    %158 = arith.addf %155, %157 : vector<128x32xf32>
    %c2448 = arith.constant 2448 : index
    %c0_84 = arith.constant 0 : index
    %159 = vector.load %arg2[%c2448, %c0_84] : memref<2736x256xbf16, #tpu.memory_space<vmem>>, vector<64x128xbf16>
    %160 = arith.truncf %158 : vector<128x32xf32> to vector<128x32xbf16>
    %cst_85 = arith.constant dense<0.000000e+00> : vector<64x32xf32>
    %161 = tpu.matmul %159, %160, %cst_85 {dimension_numbers = #tpu.dot_dimension_numbers<[1], [0], [0], [1], [0, 0, 1, 1], [], []>} : vector<64x128xbf16>, vector<128x32xbf16>, vector<64x32xf32> -> vector<64x32xf32>
    %c1304 = arith.constant 1304 : index
    %c0_86 = arith.constant 0 : index
    %162 = vector.load %arg3[%c1304, %c0_86] : memref<1440x128xf32, #tpu.memory_space<vmem>>, vector<64x1xf32>
    %163 = vector.broadcast %162 : vector<64x1xf32> to vector<64x32xf32>
    %164 = arith.addf %161, %163 : vector<64x32xf32>
    %cst_87 = arith.constant 0.000000e+00 : f32
    %165 = vector.broadcast %cst_87 : f32 to vector<64x32xf32>
    %166 = arith.maximumf %164, %165 : vector<64x32xf32>
    %167 = arith.truncf %166 : vector<64x32xf32> to vector<64x32xbf16>
    %c2512 = arith.constant 2512 : index
    %c0_88 = arith.constant 0 : index
    %168 = vector.load %arg2[%c2512, %c0_88] : memref<2736x256xbf16, #tpu.memory_space<vmem>>, vector<32x16xbf16>
    %cst_89 = arith.constant dense<0.000000e+00> : vector<64x16xf32>
    %169 = tpu.matmul %167, %168, %cst_89 {dimension_numbers = #tpu.dot_dimension_numbers<[1], [0], [0], [1], [0, 0, 1, 1], [], []>} : vector<64x32xbf16>, vector<32x16xbf16>, vector<64x16xf32> -> vector<64x16xf32>
    %170 = arith.truncf %166 : vector<64x32xf32> to vector<64x32xbf16>
    %c2544 = arith.constant 2544 : index
    %c0_90 = arith.constant 0 : index
    %171 = vector.load %arg2[%c2544, %c0_90] : memref<2736x256xbf16, #tpu.memory_space<vmem>>, vector<32x16xbf16>
    %cst_91 = arith.constant dense<0.000000e+00> : vector<64x16xf32>
    %172 = tpu.matmul %170, %171, %cst_91 {dimension_numbers = #tpu.dot_dimension_numbers<[1], [0], [0], [1], [0, 0, 1, 1], [], []>} : vector<64x32xbf16>, vector<32x16xbf16>, vector<64x16xf32> -> vector<64x16xf32>
    %173 = arith.maximumf %169, %172 : vector<64x16xf32>
    %c2576 = arith.constant 2576 : index
    %c0_92 = arith.constant 0 : index
    %174 = vector.load %arg2[%c2576, %c0_92] : memref<2736x256xbf16, #tpu.memory_space<vmem>>, vector<32x64xbf16>
    %175 = arith.truncf %173 : vector<64x16xf32> to vector<64x16xbf16>
    %cst_93 = arith.constant dense<0.000000e+00> : vector<32x16xf32>
    %176 = tpu.matmul %174, %175, %cst_93 {dimension_numbers = #tpu.dot_dimension_numbers<[1], [0], [0], [1], [0, 0, 1, 1], [], []>} : vector<32x64xbf16>, vector<64x16xbf16>, vector<32x16xf32> -> vector<32x16xf32>
    %c2608 = arith.constant 2608 : index
    %c0_94 = arith.constant 0 : index
    %177 = vector.load %arg2[%c2608, %c0_94] : memref<2736x256xbf16, #tpu.memory_space<vmem>>, vector<32x64xbf16>
    %178 = arith.truncf %173 : vector<64x16xf32> to vector<64x16xbf16>
    %cst_95 = arith.constant dense<0.000000e+00> : vector<32x16xf32>
    %179 = tpu.matmul %177, %178, %cst_95 {dimension_numbers = #tpu.dot_dimension_numbers<[1], [0], [0], [1], [0, 0, 1, 1], [], []>} : vector<32x64xbf16>, vector<64x16xbf16>, vector<32x16xf32> -> vector<32x16xf32>
    %180 = arith.maximumf %176, %179 : vector<32x16xf32>
    %181 = arith.truncf %180 : vector<32x16xf32> to vector<32x16xbf16>
    %c2640 = arith.constant 2640 : index
    %c0_96 = arith.constant 0 : index
    %182 = vector.load %arg2[%c2640, %c0_96] : memref<2736x256xbf16, #tpu.memory_space<vmem>>, vector<16x16xbf16>
    %cst_97 = arith.constant dense<0.000000e+00> : vector<32x16xf32>
    %183 = tpu.matmul %181, %182, %cst_97 {dimension_numbers = #tpu.dot_dimension_numbers<[1], [0], [0], [1], [0, 0, 1, 1], [], []>} : vector<32x16xbf16>, vector<16x16xbf16>, vector<32x16xf32> -> vector<32x16xf32>
    %c1368 = arith.constant 1368 : index
    %c0_98 = arith.constant 0 : index
    %184 = vector.load %arg3[%c1368, %c0_98] : memref<1440x128xf32, #tpu.memory_space<vmem>>, vector<1x16xf32>
    %185 = vector.broadcast %184 : vector<1x16xf32> to vector<32x16xf32>
    %186 = arith.addf %183, %185 : vector<32x16xf32>
    %187 = arith.truncf %186 : vector<32x16xf32> to vector<32x16xbf16>
    %c2656 = arith.constant 2656 : index
    %c0_99 = arith.constant 0 : index
    %188 = vector.load %arg2[%c2656, %c0_99] : memref<2736x256xbf16, #tpu.memory_space<vmem>>, vector<16x4xbf16>
    %cst_100 = arith.constant dense<0.000000e+00> : vector<32x4xf32>
    %189 = tpu.matmul %187, %188, %cst_100 {dimension_numbers = #tpu.dot_dimension_numbers<[1], [0], [0], [1], [0, 0, 1, 1], [], []>} : vector<32x16xbf16>, vector<16x4xbf16>, vector<32x4xf32> -> vector<32x4xf32>
    %c1376 = arith.constant 1376 : index
    %c0_101 = arith.constant 0 : index
    %190 = vector.load %arg3[%c1376, %c0_101] : memref<1440x128xf32, #tpu.memory_space<vmem>>, vector<1x4xf32>
    %191 = vector.broadcast %190 : vector<1x4xf32> to vector<32x4xf32>
    %192 = arith.addf %189, %191 : vector<32x4xf32>
    %c2672 = arith.constant 2672 : index
    %c0_102 = arith.constant 0 : index
    %193 = vector.load %arg2[%c2672, %c0_102] : memref<2736x256xbf16, #tpu.memory_space<vmem>>, vector<32x32xbf16>
    %194 = arith.truncf %192 : vector<32x4xf32> to vector<32x4xbf16>
    %cst_103 = arith.constant dense<0.000000e+00> : vector<32x4xf32>
    %195 = tpu.matmul %193, %194, %cst_103 {dimension_numbers = #tpu.dot_dimension_numbers<[1], [0], [0], [1], [0, 0, 1, 1], [], []>} : vector<32x32xbf16>, vector<32x4xbf16>, vector<32x4xf32> -> vector<32x4xf32>
    %c1384 = arith.constant 1384 : index
    %c0_104 = arith.constant 0 : index
    %196 = vector.load %arg3[%c1384, %c0_104] : memref<1440x128xf32, #tpu.memory_space<vmem>>, vector<32x1xf32>
    %197 = vector.broadcast %196 : vector<32x1xf32> to vector<32x4xf32>
    %198 = arith.addf %195, %197 : vector<32x4xf32>
    %c2704 = arith.constant 2704 : index
    %c0_105 = arith.constant 0 : index
    %199 = vector.load %arg2[%c2704, %c0_105] : memref<2736x256xbf16, #tpu.memory_space<vmem>>, vector<8x32xbf16>
    %200 = arith.truncf %198 : vector<32x4xf32> to vector<32x4xbf16>
    %cst_106 = arith.constant dense<0.000000e+00> : vector<8x4xf32>
    %201 = tpu.matmul %199, %200, %cst_106 {dimension_numbers = #tpu.dot_dimension_numbers<[1], [0], [0], [1], [0, 0, 1, 1], [], []>} : vector<8x32xbf16>, vector<32x4xbf16>, vector<8x4xf32> -> vector<8x4xf32>
    %c1416 = arith.constant 1416 : index
    %c0_107 = arith.constant 0 : index
    %202 = vector.load %arg3[%c1416, %c0_107] : memref<1440x128xf32, #tpu.memory_space<vmem>>, vector<8x1xf32>
    %203 = vector.broadcast %202 : vector<8x1xf32> to vector<8x4xf32>
    %204 = arith.addf %201, %203 : vector<8x4xf32>
    %c1424_108 = arith.constant 1424 : index
    %c0_109 = arith.constant 0 : index
    %205 = vector.load %arg3[%c1424_108, %c0_109] : memref<1440x128xf32, #tpu.memory_space<vmem>>, vector<8x4xf32>
    %206 = arith.mulf %204, %205 : vector<8x4xf32>
    %cst_110 = arith.constant dense<0.000000e+00> : vector<8xf32>
    %207 = vector.multi_reduction <add>, %206, %cst_110 [1] : vector<8x4xf32> to vector<8xf32>
    %208 = vector.shape_cast %207 : vector<8xf32> to vector<8x1xf32>
    %c2720 = arith.constant 2720 : index
    %c0_111 = arith.constant 0 : index
    %209 = vector.load %arg2[%c2720, %c0_111] : memref<2736x256xbf16, #tpu.memory_space<vmem>>, vector<2x8xbf16>
    %210 = arith.truncf %208 : vector<8x1xf32> to vector<8x1xbf16>
    %cst_112 = arith.constant dense<0.000000e+00> : vector<2x1xf32>
    %211 = tpu.matmul %209, %210, %cst_112 {dimension_numbers = #tpu.dot_dimension_numbers<[1], [0], [0], [1], [0, 0, 1, 1], [], []>} : vector<2x8xbf16>, vector<8x1xbf16>, vector<2x1xf32> -> vector<2x1xf32>
    %c1432 = arith.constant 1432 : index
    %c0_113 = arith.constant 0 : index
    %212 = vector.load %arg3[%c1432, %c0_113] : memref<1440x128xf32, #tpu.memory_space<vmem>>, vector<1x1xf32>
    %213 = vector.broadcast %212 : vector<1x1xf32> to vector<2x1xf32>
    %214 = arith.addf %211, %213 : vector<2x1xf32>
    %cst_114 = arith.constant 0.000000e+00 : f32
    %215 = vector.broadcast %cst_114 : f32 to vector<2x1xf32>
    %216 = arith.maximumf %214, %215 : vector<2x1xf32>
    %217 = vector.broadcast %216 : vector<2x1xf32> to vector<2x3xf32>
    %218 = arith.addf %100, %217 : vector<2x3xf32>
    %219 = arith.negf %218 : vector<2x3xf32>
    %220 = math.exp %219 : vector<2x3xf32>
    %cst_115 = arith.constant 1.000000e+00 : f32
    %221 = vector.broadcast %cst_115 : f32 to vector<2x3xf32>
    %222 = arith.addf %221, %220 : vector<2x3xf32>
    %223 = arith.divf %221, %222 : vector<2x3xf32>
    %c0_116 = arith.constant 0 : index
    %c0_117 = arith.constant 0 : index
    %c0_118 = arith.constant 0 : index
    %224 = vector.load %arg4[%c0_116, %c0_117, %c0_118] : memref<1x2x3xf32, #tpu.memory_space<vmem>>, vector<1x2x3xf32>
    %225 = vector.shape_cast %224 : vector<1x2x3xf32> to vector<2x3xf32>
    %226 = vector.shape_cast %223 : vector<2x3xf32> to vector<1x2x3xf32>
    tpu.vector_store %arg4[%c0_116, %c0_117, %c0_118], %226 {strides = array<i32>} : memref<1x2x3xf32, #tpu.memory_space<vmem>>, vector<1x2x3xf32>,
    return
  }
  func.func @transform_0(%arg0: i32) -> (i32, i32, i32) {
    %c0_i32 = arith.constant 0 : i32
    %c0_i32_0 = arith.constant 0 : i32
    %c0_i32_1 = arith.constant 0 : i32
    return %arg0, %c0_i32, %c0_i32_0 : i32, i32, i32
  }
  func.func @transform_1(%arg0: i32) -> (i32, i32) {
    %c0_i32 = arith.constant 0 : i32
    %c0_i32_0 = arith.constant 0 : i32
    %c0_i32_1 = arith.constant 0 : i32
    return %c0_i32, %c0_i32_0 : i32, i32
  }
  func.func @transform_2(%arg0: i32) -> (i32, i32) {
    %c0_i32 = arith.constant 0 : i32
    %c0_i32_0 = arith.constant 0 : i32
    %c0_i32_1 = arith.constant 0 : i32
    return %c0_i32, %c0_i32_0 : i32, i32
  }
  func.func @transform_3(%arg0: i32) -> (i32, i32, i32) {
    %c0_i32 = arith.constant 0 : i32
    %c0_i32_0 = arith.constant 0 : i32
    %c0_i32_1 = arith.constant 0 : i32
    return %arg0, %c0_i32, %c0_i32_0 : i32, i32, i32
  }
}

</mosaic_0001>

<bundles_post_ra>
// kernel: tpu_custom_call.1
= control target key start
LH: loop header
LB: loop body
LE: loop exit
PB: predicated region body
PF: predicated region fallthrough
CT: control target
= control target key end

     0   :  { %v16_v0 = vlaneseq  ;;  %vm23_vm0 = vcmask 31744   ;;  %s66_s0 = inlined_call_operand.vmem [shape: f32[32,4], index: 0, kind: input, shape index: {}]   ;;  %s67_s1 = inlined_call_operand.vmem [shape: f32[32,4], index: 1, kind: output, shape index: {}]  }
   0x1   :  { %v8_v1 = vld [vmem:[%s66_s0] sm:$0xff]  ;;  %v11_v2 = vld [vmem:[%s66_s0 + $0x18] sm:$0xff]  ;;  %v9_v3 = vld [vmem:[%s66_s0 + $0x8] sm:$0xff] }
   0x2   :  { %v12_v4 = vrot.slane %v8_v1, 7  ;;  %v15_v5 = vrot.slane %v11_v2, 7  ;;  %v17_v6 = vshrl.u32 %v16_v0, 7  ;;  %v13_v7 = vrot.slane %v9_v3, 7  ;;  %v10_v8 = vld [vmem:[%s66_s0 + $0x10] sm:$0xff] }
   0x3   :  { %v14_v9 = vrot.slane %v10_v8, 7 }
   0x4   :  { %vm18_vm1 = vcmp.lt.s32.totalorder %v17_v6, 1 }
   0x5   :  { %v22_v10 = vsel %vm18_vm1, %v15_v5, %v12_v4  ;;  %v21_v11 = vsel %vm18_vm1, %v12_v4, %v13_v7  ;;  %v20_v12 = vsel %vm18_vm1, %v13_v7, %v14_v9  ;;  %v19_v13 = vsel %vm18_vm1, %v14_v9, %v15_v5 }
   0x6   :  { %24 = vst.msk [vmem:[%s67_s1] sm:$0xff] %vm23_vm0, %v22_v10  ;;  %25 = vst.msk [vmem:[%s67_s1 + $0x8] sm:$0xff] %vm23_vm0, %v21_v11 }
   0x7   :  { %26 = vst.msk [vmem:[%s67_s1 + $0x10] sm:$0xff] %vm23_vm0, %v20_v12  ;;  %27 = vst.msk [vmem:[%s67_s1 + $0x18] sm:$0xff] %vm23_vm0, %v19_v13 }

// kernel: _lambda_.1
= control target key start
LH: loop header
LB: loop body
LE: loop exit
PB: predicated region body
PF: predicated region fallthrough
CT: control target
= control target key end

     0   :  { %8 = vsyncpa [#allocation3], 0  ;;  %s8736_s0 = inlined_call_operand.vmem [shape: f32[1,32,4], index: 0, kind: input, shape index: {}]   ;;  %s8737_s1 = inlined_call_operand.hbm [shape: bf16[2736,256], index: 1, kind: input, shape index: {}]   ;;  %s8738_s2 = inlined_call_operand.hbm [shape: f32[1440,128], index: 2, kind: input, shape index: {}]   ;;  %s8739_s3 = inlined_call_operand.hbm [shape: f32[1,2,3], index: 3, kind: output, shape index: {}]  }
   0x1   :  { %9 = vsyncpa [#allocation6], 0 }
   0x2   :  { %10 = vsyncpa [#allocation4], 0  ;;  %s7953_s12 = smov [#allocation2]   ;;  %s7881_s16 = scalar_lea.hbm %s8737_s1, 43776 }
   0x3   :  { %s18_s13 = sshll.u32 %s7953_s12, 4  ;;  %p7882_p0 = scmp.ne.s32.totalorder %s8737_s1, %s7881_s16  ;;  %s19_s13 = int_to_ptr.vmem [resolvable:$true] %s18_s13 }
   0x4   :  { %p7885_p1 = scmp.lt.u32.totalorder %s7881_s16, %s8737_s1 }
   0x6   :  { %p7887_p2 = pnand %p7885_p1, %p7882_p0 }
   0x8   :  { %7890 = shalt.err (!%p7887_p2)
}
   0x9   :  { %s7891_s21 = scalar_lea.vmem %s19_s13, 43776  ;;  %p7896_p4 = scmp.lt.s32.totalorder %s19_s13, %s19_s13 }
   0xa   :  { %p7892_p3 = scmp.ne.s32.totalorder %s19_s13, %s7891_s21  ;;  %p7897_p5 = scmp.lt.s32.totalorder %s7891_s21, %s7891_s21 }
   0xc   :  { %p7898_p6 = por %p7897_p5, %p7896_p4 }
   0xe   :  { %p7899_p7 = pnand %p7898_p6, %p7892_p3 }
  0x10   :  { %7902 = shalt.err (!%p7899_p7)
}
  0x11   :  { %s7954_s22 = smov 128   ;;  %s7955_s23 = smov 8  }
  0x12   :  { %24 = dma.hbm_to_vmem [thread:$0]  %s8737_s1, 43776, %s19_s13, [#allocation3], %s7954_s22, %s7954_s22, %s7955_s23  }
  0x13   :  { %s7956_s26 = smov [#allocation5]   ;;  %s7903_s30 = scalar_lea.hbm %s8738_s2, 23040 }
  0x14   :  { %s30_s27 = sshll.u32 %s7956_s26, 4  ;;  %p7904_p8 = scmp.ne.s32.totalorder %s8738_s2, %s7903_s30  ;;  %s31_s27 = int_to_ptr.vmem [resolvable:$true] %s30_s27 }
  0x15   :  { %p7907_p9 = scmp.lt.u32.totalorder %s7903_s30, %s8738_s2 }
  0x17   :  { %p7909_p10 = pnand %p7907_p9, %p7904_p8 }
  0x19   :  { %7912 = shalt.err (!%p7909_p10)
}
  0x1a   :  { %s7913_s8 = scalar_lea.vmem %s31_s27, 23040  ;;  %p7918_p12 = scmp.lt.s32.totalorder %s31_s27, %s31_s27 }
  0x1b   :  { %p7914_p11 = scmp.ne.s32.totalorder %s31_s27, %s7913_s8  ;;  %p7919_p13 = scmp.lt.s32.totalorder %s7913_s8, %s7913_s8 }
  0x1d   :  { %p7920_p0 = por %p7919_p13, %p7918_p12 }
  0x1f   :  { %p7921_p1 = pnand %p7920_p0, %p7914_p11 }
  0x21   :  { %7924 = shalt.err (!%p7921_p1)
}
  0x22   :  { %36 = dma.hbm_to_vmem [thread:$0]  %s8738_s2, 23040, %s31_s27, [#allocation6], %s7954_s22, %s7954_s22, %s7955_s23  }
  0x23   :  { %7947 = dma.done.wait [#allocation3], 43776  }
  0x24   :  { %7948 = vsyncadd [#allocation3], 4294923520 }
  0x25   :  { %7949 = dma.done.wait [#allocation6], 23040  }
  0x26   :  { %7950 = vsyncadd [#allocation6], 4294944256  ;;  %v7957_v0 = vmov 0   ;;  %v44_v1 = vld [vmem:[%s8736_s0] sm:$0xff]  ;;  %v45_v2 = vld [vmem:[%s8736_s0 + $0x8] sm:$0xff]  ;;  %vm65_vm0 = vcmask 261120  }
  0x27   :  { %7639 = vset.pattern.permute.xlu0 %v7957_v0  ;;  %7640 = vset.pattern.permute.xlu1 %v7957_v0  ;;  %v351_v3 = vld [vmem:[#allocation5 + $0x10] sm:$0xff]  ;;  %v8011_v4 = vpack.c.bf16 %v45_v2, %v44_v1  ;;  %v46_v5 = vld [vmem:[%s8736_s0 + $0x10] sm:$0xff]  ;;  %v47_v6 = vld [vmem:[%s8736_s0 + $0x18] sm:$0xff]  ;;  %vm131_vm1 = vcmask 1041408   ;;  %vm124_vm2 = vcmask 31744   ;;  %vm7959_vm3 = vmmov 0  }
  0x28   :  { %385 = vperm.xlu0 %7639, %v351_v3   ;;  %v352_v7 = vld [vmem:[#allocation5 + $0x18] sm:$0xff]  ;;  %v8019_v8 = vpack.c.bf16 %v47_v6, %v46_v5  ;;  %v353_v9 = vld [vmem:[#allocation5 + $0x20] sm:$0xff]  ;;  %v354_v11 = vld [vmem:[#allocation5 + $0x28] sm:$0xff]  ;;  %vm4709_vm4 = vcmask 523264   ;;  %vm5770_vm5 = vcmask 130048   ;;  %vm6059_vm6 = vcmask 1043456  }
  0x29   :  { %8742 = vst [vmem:[#allocation11_spill] sm:$0xff] %v8011_v4  ;;  %7030 = vmatprep.subr.bf16.mxu0 %v8011_v4  ;;  %395 = vperm.xlu1 %7640, %v353_v9   ;;  %v7641_v10 = vld [vmem:[#allocation2 + $0x3a0] ss:$8 sps:$4 sm:$0xff]   ;;  %v7642_v14 = vld [vmem:[#allocation2 + $0x3b0] ss:$8 sps:$4 sm:$0xff]   ;;  %vm6055_vm7 = vcmask 64512  }
  0x2a   :  { %8743 = vst [vmem:[#allocation12_spill] sm:$0xff] %v8019_v8  ;;  %7031 = vmatpush3.bf16.msra.mxu0 %v8011_v4  ;;  %7034 = vmatprep.mubr.msk.bf16.mxu0 %vm65_vm0, %v7641_v10  ;;  %v355_v12 = vld [vmem:[#allocation5 + $0x30] sm:$0xff]  ;;  %v356_v15 = vld [vmem:[#allocation5 + $0x38] sm:$0xff]  ;;  %v357_v17 = vld [vmem:[#allocation5 + $0x40] sm:$0xff]  ;;  %vm6116_vm8 = vcmask 17408  }
  0x2b   :  { %7032 = vmatprep.subr.bf16.mxu0 %v8019_v8  ;;  %v259_v13 = vld [vmem:[#allocation2 + $0x20] sm:$0x3]  ;;  %v358_v18 = vld [vmem:[#allocation5 + $0x48] sm:$0xff]  ;;  %v360_v20 = vld [vmem:[#allocation5 + $0x58] sm:$0xff] }
  0x2c   :  { %390 = vperm.xlu0 %7639, %v352_v7   ;;  %v266_v16 = vsel %vm131_vm1, %v259_v13, 0  ;;  %v359_v19 = vld [vmem:[#allocation5 + $0x50] sm:$0xff]  ;;  %v361_v21 = vld [vmem:[#allocation5 + $0x60] sm:$0xff]  ;;  %v362_v22 = vld [vmem:[#allocation5 + $0x68] sm:$0xff] }
  0x2d   :  { %400 = vperm.xlu1 %7640, %v354_v11   ;;  %v363_v23 = vld [vmem:[#allocation5 + $0x70] sm:$0xff]  ;;  %v364_v24 = vld [vmem:[#allocation5 + $0x78] sm:$0xff]  ;;  %v365_v25 = vld [vmem:[#allocation5 + $0x80] sm:$0xff] }
  0x2e   :  { %7033 = vmatpush3.bf16.msra.mxu0 %v8019_v8  ;;  %v366_v26 = vld [vmem:[#allocation5 + $0x88] sm:$0xff]  ;;  %v367_v27 = vld [vmem:[#allocation5 + $0x90] sm:$0xff]  ;;  %v368_v28 = vld [vmem:[#allocation5 + $0x98] sm:$0xff] }
  0x2f   :  { %7626 = vmatprep.subr.msk.bf16.mxu0 %vm131_vm1, %v259_v13  ;;  %v369_v29 = vld [vmem:[#allocation5 + $0xa0] sm:$0xff]  ;;  %v370_v30 = vld [vmem:[#allocation5 + $0xa8] sm:$0xff]  ;;  %v371_v31 = vld [vmem:[#allocation5 + $0xb0] sm:$0xff] }
  0x30   :  { %405 = vperm.xlu0 %7639, %v355_v12   ;;  %v372_v32 = vld [vmem:[#allocation5 + $0xb8] sm:$0xff]  ;;  %v373_v33 = vld [vmem:[#allocation5 + $0xc0] sm:$0xff]  ;;  %v374_v34 = vld [vmem:[#allocation5 + $0xc8] sm:$0xff] }
  0x31   :  { %7035 = vmatmul.mubr.msk.bf16.vlgmr.msra.gmra.mrb[0].mxu0 %vm65_vm0, %v7642_v14  ;;  %410 = vperm.xlu1 %7640, %v356_v15   ;;  %v375_v35 = vld [vmem:[#allocation5 + $0xd0] sm:$0xff]  ;;  %v376_v36 = vld [vmem:[#allocation5 + $0xd8] sm:$0xff]  ;;  %v377_v37 = vld [vmem:[#allocation5 + $0xe0] sm:$0xff] }
  0x32   :  { %7051 = vmatpush3.bf16.msra.mxu0 %v266_v16  ;;  %7052 = vmatprep.mubr.msk.bf16.mxu0 %vm124_vm2, %v8011_v4  ;;  %v378_v38 = vld [vmem:[#allocation5 + $0xe8] sm:$0xff]  ;;  %v379_v39 = vld [vmem:[#allocation5 + $0xf0] sm:$0xff]  ;;  %v380_v40 = vld [vmem:[#allocation5 + $0xf8] sm:$0xff] }
  0x33   :  { %v381_v41 = vld [vmem:[#allocation5 + $0x100] sm:$0xff]  ;;  %v382_v42 = vld [vmem:[#allocation5 + $0x108] sm:$0xff]  ;;  %v1098_v43 = vld [vmem:[#allocation5 + $0x118] sm:$0xff] }
  0x34   :  { %415 = vperm.xlu0 %7639, %v357_v17   ;;  %v1099_v44 = vld [vmem:[#allocation5 + $0x120] sm:$0xff]  ;;  %v1100_v45 = vld [vmem:[#allocation5 + $0x128] sm:$0xff]  ;;  %v1101_v46 = vld [vmem:[#allocation5 + $0x130] sm:$0xff] }
  0x35   :  { %420 = vperm.xlu1 %7640, %v358_v18   ;;  %v1507_v47 = vld [vmem:[#allocation5 + $0x148] sm:$0xff]  ;;  %v1508_v48 = vld [vmem:[#allocation5 + $0x150] sm:$0xff]  ;;  %v1509_v49 = vld [vmem:[#allocation5 + $0x158] sm:$0xff] }
  0x36   :  { %v1510_v50 = vld [vmem:[#allocation5 + $0x160] sm:$0xff]  ;;  %v1511_v51 = vld [vmem:[#allocation5 + $0x168] sm:$0xff]  ;;  %v1512_v52 = vld [vmem:[#allocation5 + $0x170] sm:$0xff] }
  0x37   :  { %v1513_v53 = vld [vmem:[#allocation5 + $0x178] sm:$0xff]  ;;  %v1514_v54 = vld [vmem:[#allocation5 + $0x180] sm:$0xff]  ;;  %v1515_v55 = vld [vmem:[#allocation5 + $0x188] sm:$0xff] }
  0x38   :  { %425 = vperm.xlu0 %7639, %v359_v19   ;;  %v1516_v56 = vld [vmem:[#allocation5 + $0x190] sm:$0xff]  ;;  %v1517_v57 = vld [vmem:[#allocation5 + $0x198] sm:$0xff]  ;;  %v1518_v58 = vld [vmem:[#allocation5 + $0x1a0] sm:$0xff] }
  0x39   :  { %7053 = vmatmul.mubr.msk.bf16.vlgmr.msra.gmra.mrb[4].mxu0 %vm124_vm2, %v8019_v8  ;;  %430 = vperm.xlu1 %7640, %v360_v20   ;;  %v1519_v59 = vld [vmem:[#allocation5 + $0x1a8] sm:$0xff]  ;;  %v1520_v60 = vld [vmem:[#allocation5 + $0x1b0] sm:$0xff]  ;;  %v1521_v63 = vld [vmem:[#allocation5 + $0x1b8] sm:$0xff] }
  0x3a   :  { %v123_v61 = vld [vmem:[#allocation2] sm:$0x3]  ;;  %v1522_v0 = vld [vmem:[#allocation5 + $0x1c0] sm:$0xff]  ;;  %v1523_v1 = vld [vmem:[#allocation5 + $0x1c8] sm:$0xff] }
  0x3b   :  { %7624 = vmatprep.subr.msk.bf16.mxu1 %vm131_vm1, %v123_v61  ;;  %v133_v62 = vsel %vm131_vm1, %v123_v61, 0  ;;  %v1525_v2 = vld [vmem:[#allocation5 + $0x1d8] sm:$0xff]  ;;  %v1524_v3 = vld [vmem:[#allocation5 + $0x1d0] sm:$0xff]  ;;  %v8035_v5 = vld [vmem:[#allocation2 + $0x10] sm:$0x3] }
  0x3c   :  { %435 = vperm.xlu0 %7639, %v361_v21   ;;  %7039 = vmatpush3.bf16.msra.mxu1 %v133_v62  ;;  %v1526_v6 = vld [vmem:[#allocation5 + $0x1e0] sm:$0xff]  ;;  %v1527_v7 = vld [vmem:[#allocation5 + $0x1e8] sm:$0xff]  ;;  %v1528_v9 = vld [vmem:[#allocation5 + $0x1f0] sm:$0xff] }
  0x3d   :  { %440 = vperm.xlu1 %7640, %v362_v22   ;;  %7625 = vmatprep.subr.msk.bf16.mxu1 %vm131_vm1, %v8035_v5  ;;  %v1529_v10 = vld [vmem:[#allocation5 + $0x1f8] sm:$0xff]  ;;  %v1530_v11 = vld [vmem:[#allocation5 + $0x200] sm:$0xff]  ;;  %v1531_v12 = vld [vmem:[#allocation5 + $0x208] sm:$0xff] }
  0x3e   :  { %v1532_v13 = vld [vmem:[#allocation5 + $0x210] sm:$0xff]  ;;  %v1533_v14 = vld [vmem:[#allocation5 + $0x218] sm:$0xff]  ;;  %v1534_v15 = vld [vmem:[#allocation5 + $0x220] sm:$0xff] }
  0x3f   :  { %v1535_v16 = vld [vmem:[#allocation5 + $0x228] sm:$0xff]  ;;  %v1536_v17 = vld [vmem:[#allocation5 + $0x230] sm:$0xff]  ;;  %v1537_v18 = vld [vmem:[#allocation5 + $0x238] sm:$0xff] }
  0x40   :  { %445 = vperm.xlu0 %7639, %v363_v23   ;;  %v1538_v20 = vld [vmem:[#allocation5 + $0x240] sm:$0xff]  ;;  %v2254_v21 = vld [vmem:[#allocation5 + $0x250] sm:$0xff]  ;;  %v2255_v22 = vld [vmem:[#allocation5 + $0x258] sm:$0xff] }
  0x41   :  { %450 = vperm.xlu1 %7640, %v364_v24   ;;  %v2700_v61 = vld [vmem:[#allocation5 + $0x358] sm:$0xff] }
  0x44   :  { %455 = vperm.xlu0 %7639, %v365_v25   ;;  %v2256_v25 = vld [vmem:[#allocation5 + $0x260] sm:$0xff] }
  0x45   :  { %460 = vperm.xlu1 %7640, %v366_v26   ;;  %v2257_v26 = vld [vmem:[#allocation5 + $0x268] sm:$0xff] }
  0x48   :  { %465 = vperm.xlu0 %7639, %v367_v27  }
  0x49   :  { %470 = vperm.xlu1 %7640, %v368_v28   ;;  %v2690_v28 = vld [vmem:[#allocation5 + $0x308] sm:$0xff] }
  0x4c   :  { %475 = vperm.xlu0 %7639, %v369_v29   ;;  %v2691_v29 = vld [vmem:[#allocation5 + $0x310] sm:$0xff] }
  0x4d   :  { %480 = vperm.xlu1 %7640, %v370_v30  }
  0x50   :  { %485 = vperm.xlu0 %7639, %v371_v31   ;;  %v2674_v31 = vld [vmem:[#allocation5 + $0x288] sm:$0xff] }
  0x51   :  { %490 = vperm.xlu1 %7640, %v372_v32  }
  0x54   :  { %495 = vperm.xlu0 %7639, %v373_v33   ;;  %v2675_v33 = vld [vmem:[#allocation5 + $0x290] sm:$0xff] }
  0x55   :  { %500 = vperm.xlu1 %7640, %v374_v34  }
  0x58   :  { %505 = vperm.xlu0 %7639, %v375_v35   ;;  %v2692_v35 = vld [vmem:[#allocation5 + $0x318] sm:$0xff] }
  0x59   :  { %510 = vperm.xlu1 %7640, %v376_v36   ;;  %v2693_v36 = vld [vmem:[#allocation5 + $0x320] sm:$0xff] }
  0x5c   :  { %515 = vperm.xlu0 %7639, %v377_v37  }
  0x5d   :  { %520 = vperm.xlu1 %7640, %v378_v38   ;;  %v2676_v38 = vld [vmem:[#allocation5 + $0x298] sm:$0xff] }
  0x60   :  { %525 = vperm.xlu0 %7639, %v379_v39  }
  0x61   :  { %530 = vperm.xlu1 %7640, %v380_v40   ;;  %v2677_v40 = vld [vmem:[#allocation5 + $0x2a0] sm:$0xff] }
  0x64   :  { %535 = vperm.xlu0 %7639, %v381_v41   ;;  %v2694_v41 = vld [vmem:[#allocation5 + $0x328] sm:$0xff] }
  0x65   :  { %540 = vperm.xlu1 %7640, %v382_v42   ;;  %v2695_v42 = vld [vmem:[#allocation5 + $0x330] sm:$0xff] }
  0x68   :  { %1104 = vperm.xlu0 %7639, %v1098_v43  }
  0x69   :  { %1109 = vperm.xlu1 %7640, %v1099_v44  }
  0x6c   :  { %1114 = vperm.xlu0 %7639, %v1100_v45   ;;  %v2678_v45 = vld [vmem:[#allocation5 + $0x2a8] sm:$0xff] }
  0x6d   :  { %1119 = vperm.xlu1 %7640, %v1101_v46   ;;  %v2679_v46 = vld [vmem:[#allocation5 + $0x2b0] sm:$0xff] }
  0x70   :  { %1541 = vperm.xlu0 %7639, %v1507_v47  }
  0x71   :  { %1546 = vperm.xlu1 %7640, %v1508_v48   ;;  %v2696_v48 = vld [vmem:[#allocation5 + $0x338] sm:$0xff] }
  0x74   :  { %1551 = vperm.xlu0 %7639, %v1509_v49  }
  0x75   :  { %1556 = vperm.xlu1 %7640, %v1510_v50   ;;  %v2697_v50 = vld [vmem:[#allocation5 + $0x340] sm:$0xff] }
  0x78   :  { %1561 = vperm.xlu0 %7639, %v1511_v51   ;;  %v2680_v51 = vld [vmem:[#allocation5 + $0x2b8] sm:$0xff] }
  0x79   :  { %1566 = vperm.xlu1 %7640, %v1512_v52  }
  0x7c   :  { %1571 = vperm.xlu0 %7639, %v1513_v53   ;;  %v2681_v53 = vld [vmem:[#allocation5 + $0x2c0] sm:$0xff] }
  0x7d   :  { %1576 = vperm.xlu1 %7640, %v1514_v54  }
  0x80   :  { %1581 = vperm.xlu0 %7639, %v1515_v55   ;;  %v2698_v55 = vld [vmem:[#allocation5 + $0x348] sm:$0xff] }
  0x81   :  { %1586 = vperm.xlu1 %7640, %v1516_v56   ;;  %v2699_v56 = vld [vmem:[#allocation5 + $0x350] sm:$0xff] }
  0x84   :  { %1591 = vperm.xlu0 %7639, %v1517_v57  }
  0x85   :  { %1596 = vperm.xlu1 %7640, %v1518_v58   ;;  %v2682_v58 = vld [vmem:[#allocation5 + $0x2c8] sm:$0xff] }
  0x88   :  { %1601 = vperm.xlu0 %7639, %v1519_v59  }
  0x89   :  { %1606 = vperm.xlu1 %7640, %v1520_v60   ;;  %v2683_v60 = vld [vmem:[#allocation5 + $0x2d0] sm:$0xff] }
  0x8c   :  { %1611 = vperm.xlu0 %7639, %v1521_v63   ;;  %v2701_v63 = vld [vmem:[#allocation5 + $0x360] sm:$0xff] }
  0x8d   :  { %1616 = vperm.xlu1 %7640, %v1522_v0  }
  0x90   :  { %1621 = vperm.xlu0 %7639, %v1523_v1   ;;  %v2684_v1 = vld [vmem:[#allocation5 + $0x2d8] sm:$0xff] }
  0x91   :  { %1626 = vperm.xlu1 %7640, %v1524_v3  }
  0x94   :  { %1631 = vperm.xlu0 %7639, %v1525_v2   ;;  %v2685_v2 = vld [vmem:[#allocation5 + $0x2e0] sm:$0xff] }
  0x95   :  { %1636 = vperm.xlu1 %7640, %v1526_v6   ;;  %v2702_v6 = vld [vmem:[#allocation5 + $0x368] sm:$0xff] }
  0x98   :  { %1641 = vperm.xlu0 %7639, %v1527_v7  }
  0x99   :  { %1646 = vperm.xlu1 %7640, %v1528_v9   ;;  %v2703_v9 = vld [vmem:[#allocation5 + $0x370] sm:$0xff] }
  0x9c   :  { %1651 = vperm.xlu0 %7639, %v1529_v10   ;;  %v2686_v10 = vld [vmem:[#allocation5 + $0x2e8] sm:$0xff] }
  0x9d   :  { %1656 = vperm.xlu1 %7640, %v1530_v11  }
  0xa0   :  { %1661 = vperm.xlu0 %7639, %v1531_v12   ;;  %v2687_v12 = vld [vmem:[#allocation5 + $0x2f0] sm:$0xff] }
  0xa1   :  { %1666 = vperm.xlu1 %7640, %v1532_v13  }
  0xa4   :  { %1671 = vperm.xlu0 %7639, %v1533_v14   ;;  %v2704_v14 = vld [vmem:[#allocation5 + $0x378] sm:$0xff] }
  0xa5   :  { %1676 = vperm.xlu1 %7640, %v1534_v15   ;;  %v2705_v15 = vld [vmem:[#allocation5 + $0x380] sm:$0xff] }
  0xa7   :  { %v8039_v19 = vpop.permute.xlu0 %385 }
  0xa8   :  { %1681 = vperm.xlu0 %7639, %v1535_v16   ;;  %v8041_v23 = vpop.permute.xlu1 %395 }
  0xa9   :  { %1686 = vperm.xlu1 %7640, %v1536_v17   ;;  %v2688_v17 = vld [vmem:[#allocation5 + $0x2f8] sm:$0xff] }
  0xab   :  { %v8043_v24 = vpop.permute.xlu0 %390 }
  0xac   :  { %1691 = vperm.xlu0 %7639, %v1537_v18   ;;  %v8045_v27 = vpop.permute.xlu1 %400 }
  0xad   :  { %1696 = vperm.xlu1 %7640, %v1538_v20   ;;  %v2689_v20 = vld [vmem:[#allocation5 + $0x300] sm:$0xff] }
  0xaf   :  { %v8047_v30 = vpop.permute.xlu0 %405 }
  0xb0   :  { %2260 = vperm.xlu0 %7639, %v2254_v21   ;;  %v8049_v32 = vpop.permute.xlu1 %410  ;;  %v3203_v21 = vld [vmem:[#allocation5 + $0x388] sm:$0xff] }
  0xb1   :  { %2265 = vperm.xlu1 %7640, %v2255_v22  }
  0xb3   :  { %v8051_v34 = vpop.permute.xlu0 %415 }
  0xb4   :  { %2270 = vperm.xlu0 %7639, %v2256_v25   ;;  %v8053_v37 = vpop.permute.xlu1 %420  ;;  %v3204_v25 = vld [vmem:[#allocation5 + $0x390] sm:$0xff] }
  0xb5   :  { %2275 = vperm.xlu1 %7640, %v2257_v26  }
  0xb7   :  { %v8055_v39 = vpop.permute.xlu0 %425 }
  0xb8   :  { %2788 = vperm.xlu0 %7639, %v2690_v28   ;;  %v8057_v43 = vpop.permute.xlu1 %430  ;;  %v3205_v28 = vld [vmem:[#allocation5 + $0x398] sm:$0xff] }
  0xb9   :  { %2793 = vperm.xlu1 %7640, %v2691_v29   ;;  %v3206_v29 = vld [vmem:[#allocation5 + $0x3a0] sm:$0xff] }
  0xbb   :  { %v8059_v44 = vpop.permute.xlu0 %435 }
  0xbc   :  { %2708 = vperm.xlu0 %7639, %v2674_v31   ;;  %v8061_v47 = vpop.permute.xlu1 %440 }
  0xbd   :  { %2713 = vperm.xlu1 %7640, %v2675_v33   ;;  %v3207_v33 = vld [vmem:[#allocation5 + $0x3a8] sm:$0xff] }
  0xbf   :  { %v8063_v49 = vpop.permute.xlu0 %445 }
  0xc0   :  { %2798 = vperm.xlu0 %7639, %v2692_v35   ;;  %v8065_v52 = vpop.permute.xlu1 %450 }
  0xc1   :  { %2803 = vperm.xlu1 %7640, %v2693_v36   ;;  %v3208_v36 = vld [vmem:[#allocation5 + $0x3b0] sm:$0xff] }
  0xc3   :  { %v8067_v54 = vpop.permute.xlu0 %455 }
  0xc4   :  { %2718 = vperm.xlu0 %7639, %v2676_v38   ;;  %v8069_v57 = vpop.permute.xlu1 %460  ;;  %v3209_v38 = vld [vmem:[#allocation5 + $0x3b8] sm:$0xff] }
  0xc5   :  { %2723 = vperm.xlu1 %7640, %v2677_v40  }
  0xc7   :  { %v8071_v59 = vpop.permute.xlu0 %465 }
  0xc8   :  { %2808 = vperm.xlu0 %7639, %v2694_v41   ;;  %v8073_v62 = vpop.permute.xlu1 %470  ;;  %v3210_v41 = vld [vmem:[#allocation5 + $0x3c0] sm:$0xff] }
  0xc9   :  { %2813 = vperm.xlu1 %7640, %v2695_v42  }
  0xcb   :  { %v8075_v0 = vpop.permute.xlu0 %475 }
  0xcc   :  { %2728 = vperm.xlu0 %7639, %v2678_v45   ;;  %v8077_v3 = vpop.permute.xlu1 %480 }
  0xcd   :  { %2733 = vperm.xlu1 %7640, %v2679_v46   ;;  %v3211_v46 = vld [vmem:[#allocation5 + $0x3c8] sm:$0xff] }
  0xcf   :  { %v8079_v7 = vpop.permute.xlu0 %485 }
  0xd0   :  { %2818 = vperm.xlu0 %7639, %v2696_v48   ;;  %v8081_v11 = vpop.permute.xlu1 %490 }
  0xd1   :  { %2823 = vperm.xlu1 %7640, %v2697_v50  }
  0xd3   :  { %v8083_v13 = vpop.permute.xlu0 %495 }
  0xd4   :  { %2738 = vperm.xlu0 %7639, %v2680_v51   ;;  %v8085_v16 = vpop.permute.xlu1 %500  ;;  %v3212_v51 = vld [vmem:[#allocation5 + $0x3d0] sm:$0xff] }
  0xd5   :  { %2743 = vperm.xlu1 %7640, %v2681_v53  }
  0xd7   :  { %v8087_v18 = vpop.permute.xlu0 %505 }
  0xd8   :  { %2828 = vperm.xlu0 %7639, %v2698_v55   ;;  %v8089_v22 = vpop.permute.xlu1 %510 }
  0xd9   :  { %2833 = vperm.xlu1 %7640, %v2699_v56  }
  0xdb   :  { %v8091_v26 = vpop.permute.xlu0 %515 }
  0xdc   :  { %2748 = vperm.xlu0 %7639, %v2682_v58   ;;  %v8093_v31 = vpop.permute.xlu1 %520 }
  0xdd   :  { %2753 = vperm.xlu1 %7640, %v2683_v60   ;;  %v3213_v60 = vld [vmem:[#allocation5 + $0x3d8] sm:$0xff] }
  0xdf   :  { %v8095_v35 = vpop.permute.xlu0 %525 }
  0xe0   :  { %2838 = vperm.xlu0 %7639, %v2700_v61   ;;  %v8097_v40 = vpop.permute.xlu1 %530 }
  0xe1   :  { %2843 = vperm.xlu1 %7640, %v2701_v63   ;;  %v200_v63 = vsel %vm131_vm1, %v8035_v5, 0 }
  0xe3   :  { %v8099_v42 = vpop.permute.xlu0 %535 }
  0xe4   :  { %2758 = vperm.xlu0 %7639, %v2684_v1   ;;  %v8101_v53 = vpop.permute.xlu1 %540  ;;  %v6143_v1 = vld [vmem:[#allocation5 + $0x8] ss:$0 sm:$0xff] }
  0xe5   :  { %2763 = vperm.xlu1 %7640, %v2685_v2   ;;  %v3214_v2 = vld [vmem:[#allocation5 + $0x3e0] sm:$0xff] }
  0xe7   :  { %v8103_v61 = vpop.permute.xlu0 %1104 }
  0xe8   :  { %2848 = vperm.xlu0 %7639, %v2702_v6  }
  0xe9   :  { %2853 = vperm.xlu1 %7640, %v2703_v9   ;;  %v3215_v9 = vld [vmem:[#allocation5 + $0x3e8] sm:$0xff] }
  0xec   :  { %2768 = vperm.xlu0 %7639, %v2686_v10   ;;  %v8111_v10 = vpop.permute.xlu1 %1109 }
  0xed   :  { %2773 = vperm.xlu1 %7640, %v2687_v12  }
  0xf0   :  { %2858 = vperm.xlu0 %7639, %v2704_v14  }
  0xf1   :  { %2863 = vperm.xlu1 %7640, %v2705_v15  }
  0xf4   :  { %2778 = vperm.xlu0 %7639, %v2688_v17   ;;  %v3216_v17 = vld [vmem:[#allocation5 + $0x3f0] sm:$0xff] }
  0xf5   :  { %2783 = vperm.xlu1 %7640, %v2689_v20   ;;  %v8113_v20 = vpop.permute.xlu0 %1114 }
  0xf8   :  { %3237 = vperm.xlu0 %7639, %v3203_v21  }
  0xf9   :  { %3242 = vperm.xlu1 %7640, %v3204_v25  }
  0xfc   :  { %3247 = vperm.xlu0 %7639, %v3205_v28  }
  0xfd   :  { %3252 = vperm.xlu1 %7640, %v3206_v29   ;;  %v3217_v29 = vld [vmem:[#allocation5 + $0x3f8] sm:$0xff] }
 0x100   :  { %3257 = vperm.xlu0 %7639, %v3207_v33  }
 0x101   :  { %3262 = vperm.xlu1 %7640, %v3208_v36  }
 0x104   :  { %3267 = vperm.xlu0 %7639, %v3209_v38   ;;  %v7036_v45 = vpop.f32.mrb[0].mxu0  ;;  %v3218_v38 = vld [vmem:[#allocation5 + $0x400] sm:$0xff] }
 0x105   :  { %v106_v48 = vpop.f32.mrb[1].mxu0  ;;  %3272 = vperm.xlu1 %7640, %v3210_v41   ;;  %v8115_v41 = vpop.permute.xlu1 %1119 }
 0x106   :  { %v7037_v50 = vpop.f32.mrb[2].mxu0 }
 0x107   :  { %v122_v55 = vpack.c.bf16 %v7037_v50, %v7036_v45  ;;  %v109_v56 = vpop.f32.mrb[3].mxu0  ;;  %v3219_v45 = vld [vmem:[#allocation5 + $0x408] sm:$0xff]  ;;  %v3220_v50 = vld [vmem:[#allocation5 + $0x410] sm:$0xff] }
 0x108   :  { %3277 = vperm.xlu0 %7639, %v3211_v46   ;;  %v121_v58 = vpack.c.bf16 %v109_v56, %v106_v48  ;;  %v7643_v46 = vld [vmem:[#allocation2 + $0x30] ss:$8 sps:$4 sm:$0xff]   ;;  %v8117_v48 = vpop.permute.xlu0 %1541 }
 0x109   :  { %3282 = vperm.xlu1 %7640, %v3212_v51   ;;  %v3221_v51 = vld [vmem:[#allocation5 + $0x418] sm:$0xff]  ;;  %v3222_v56 = vld [vmem:[#allocation5 + $0x420] sm:$0xff] }
 0x10a   :  { %7040 = vmatprep.mubr.msk.bf16.mxu1 %vm124_vm2, %v121_v58 }
 0x10b   :  { %7041 = vmatmul.mubr.msk.bf16.vlgmr.msra.gmra.mrb[0].mxu1 %vm124_vm2, %v122_v55  ;;  %v8122_v55 = vpop.permute.xlu1 %1546 }
 0x10c   :  { %3287 = vperm.xlu0 %7639, %v3213_v60   ;;  %v7054_v6 = vpop.f32.mrb[4].mxu0  ;;  %7045 = vmatpush3.bf16.msra.mxu1 %v200_v63  ;;  %v8124_v58 = vpop.permute.xlu0 %1551  ;;  %v7644_v60 = vld [vmem:[#allocation2 + $0x40] ss:$8 sps:$4 sm:$0xff]   ;;  %v3223_v63 = vld [vmem:[#allocation5 + $0x428] sm:$0xff] }
 0x10d   :  { %7046 = vmatprep.mubr.msk.bf16.mxu1 %vm124_vm2, %v8011_v4  ;;  %v311_v12 = vadd.f32 %v7054_v6, %v6143_v1  ;;  %v302_v14 = vpop.f32.mrb[5].mxu0  ;;  %3292 = vperm.xlu1 %7640, %v3214_v2   ;;  %v3224_v2 = vld [vmem:[#allocation5 + $0x430] sm:$0xff]  ;;  %v5033_v4 = vld [vmem:[#allocation5 + $0x4f8] sm:$0xff] }
 0x10e   :  { %v303_v15 = vadd.f32 %v6143_v1, %v302_v14  ;;  %v7055_v5 = vpop.f32.mrb[6].mxu0  ;;  %v3226_v14 = vld [vmem:[#allocation5 + $0x440] sm:$0xff] }
 0x10f   :  { %v314_v21 = vadd.f32 %v7055_v5, %v6143_v1  ;;  %v305_v25 = vpop.f32.mrb[7].mxu0  ;;  %v8126_v6 = vpop.permute.xlu1 %1556  ;;  %v3227_v5 = vld [vmem:[#allocation5 + $0x448] sm:$0xff] }
 0x110   :  { %3297 = vperm.xlu0 %7639, %v3215_v9   ;;  %v306_v28 = vadd.f32 %v6143_v1, %v305_v25  ;;  %v7645_v1 = vld [vmem:[#allocation2 + $0x50] ss:$8 sps:$4 sm:$0xff]   ;;  %v3225_v9 = vld [vmem:[#allocation5 + $0x438] sm:$0xff]  ;;  %v3228_v25 = vld [vmem:[#allocation5 + $0x450] sm:$0xff] }
 0x111   :  { %v350_v33 = vpack.c.bf16 %v314_v21, %v311_v12  ;;  %3302 = vperm.xlu1 %7640, %v3216_v17   ;;  %v8130_v12 = vpop.permute.xlu0 %1561  ;;  %v7647_v17 = vld [vmem:[#allocation2 + $0x70] ss:$8 sps:$4 sm:$0xff]  }
 0x112   :  { %v349_v36 = vpack.c.bf16 %v306_v28, %v303_v15  ;;  %v7646_v15 = vld [vmem:[#allocation2 + $0x60] ss:$8 sps:$4 sm:$0xff]  }
 0x113   :  { %v8132_v21 = vpop.permute.xlu1 %1566 }
 0x114   :  { %3307 = vperm.xlu0 %7639, %v3217_v29   ;;  %7056 = vmatprep.subr.bf16.mxu1 %v349_v36  ;;  %v3229_v29 = vld [vmem:[#allocation5 + $0x458] sm:$0xff] }
 0x115   :  { %3312 = vperm.xlu1 %7640, %v3218_v38   ;;  %v8134_v28 = vpop.permute.xlu0 %1571  ;;  %v7648_v38 = vld [vmem:[#allocation2 + $0x80] ss:$8 sps:$4 sm:$0xff]  }
 0x117   :  { %7047 = vmatmul.mubr.msk.bf16.vlgmr.msra.gmra.mrb[0].mxu1 %vm124_vm2, %v8019_v8 }
 0x118   :  { %3317 = vperm.xlu0 %7639, %v3219_v45   ;;  %7057 = vmatpush3.bf16.msra.mxu1 %v349_v36  ;;  %v8138_v36 = vpop.permute.xlu1 %1576  ;;  %v3231_v45 = vld [vmem:[#allocation5 + $0x468] sm:$0xff] }
 0x119   :  { %7060 = vmatprep.mubr.msk.bf16.mxu1 %vm65_vm0, %v7643_v46  ;;  %7058 = vmatprep.subr.bf16.mxu1 %v350_v33  ;;  %v7649_v46 = vld [vmem:[#allocation2 + $0x90] ss:$8 sps:$4 sm:$0xff]  }
 0x11a   :  { %3322 = vperm.xlu1 %7640, %v3220_v50   ;;  %v8140_v50 = vpop.permute.xlu0 %1581 }
 0x11b   :  { %8744 = vst [vmem:[#allocation13_spill] sm:$0xff] %v8140_v50 }
 0x11c   :  { %3327 = vperm.xlu0 %7639, %v3221_v51   ;;  %7059 = vmatpush3.bf16.msra.mxu1 %v350_v33  ;;  %v3230_v33 = vld [vmem:[#allocation5 + $0x460] sm:$0xff]  ;;  %v3232_v51 = vld [vmem:[#allocation5 + $0x470] sm:$0xff] }
 0x11e   :  { %3332 = vperm.xlu1 %7640, %v3222_v56   ;;  %v3233_v56 = vld [vmem:[#allocation5 + $0x478] sm:$0xff] }
 0x11f   :  { %7061 = vmatmul.mubr.msk.bf16.vlgmr.msra.gmra.mrb[4].mxu1 %vm65_vm0, %v7644_v60  ;;  %v8144_v60 = vpop.permute.xlu1 %1586 }
 0x120   :  { %3337 = vperm.xlu0 %7639, %v3223_v63   ;;  %7064 = vmatprep.mubr.msk.bf16.mxu1 %vm65_vm0, %v7645_v1  ;;  %8745 = vst [vmem:[#allocation14_spill] sm:$0xff] %v8144_v60  ;;  %v3234_v63 = vld [vmem:[#allocation5 + $0x480] sm:$0xff]  ;;  %v8146_v1 = vpop.permute.xlu0 %1591 }
 0x121   :  { %8746 = vst [vmem:[#allocation15_spill] sm:$0xff] %v8146_v1 }
 0x122   :  { %3342 = vperm.xlu1 %7640, %v3224_v2   ;;  %v7650_v2 = vld [vmem:[#allocation2 + $0xa0] ss:$8 sps:$4 sm:$0xff]  }
 0x124   :  { %3347 = vperm.xlu0 %7639, %v3225_v9   ;;  %v5021_v9 = vld [vmem:[#allocation5 + $0x498] sm:$0xff] }
 0x126   :  { %3352 = vperm.xlu1 %7640, %v3226_v14   ;;  %v7651_v14 = vld [vmem:[#allocation2 + $0xb0] ss:$8 sps:$4 sm:$0xff]  }
 0x127   :  { %7065 = vmatmul.mubr.msk.bf16.gmra.mrb[8].mxu1 %vm65_vm0, %v7646_v15  ;;  %v5022_v15 = vld [vmem:[#allocation5 + $0x4a0] sm:$0xff] }
 0x128   :  { %3357 = vperm.xlu0 %7639, %v3227_v5   ;;  %7068 = vmatprep.mubr.msk.bf16.mxu1 %vm65_vm0, %v7647_v17  ;;  %v8148_v5 = vpop.permute.xlu1 %1596  ;;  %v5023_v17 = vld [vmem:[#allocation5 + $0x4a8] sm:$0xff] }
 0x129   :  { %8747 = vst [vmem:[#allocation16_spill] sm:$0xff] %v8148_v5 }
 0x12a   :  { %3362 = vperm.xlu1 %7640, %v3228_v25   ;;  %v8152_v25 = vpop.permute.xlu0 %1601 }
 0x12b   :  { %8748 = vst [vmem:[#allocation17_spill] sm:$0xff] %v8152_v25 }
 0x12c   :  { %3367 = vperm.xlu0 %7639, %v3229_v29   ;;  %v5024_v29 = vld [vmem:[#allocation5 + $0x4b0] sm:$0xff] }
 0x12e   :  { %3372 = vperm.xlu1 %7640, %v3230_v33   ;;  %v7652_v33 = vld [vmem:[#allocation2 + $0xc0] ss:$8 sps:$4 sm:$0xff]  }
 0x12f   :  { %7069 = vmatmul.mubr.msk.bf16.gmra.mrb[12].mxu1 %vm65_vm0, %v7648_v38  ;;  %v5025_v38 = vld [vmem:[#allocation5 + $0x4b8] sm:$0xff] }
 0x130   :  { %3377 = vperm.xlu0 %7639, %v3231_v45   ;;  %7072 = vmatprep.mubr.msk.bf16.mxu1 %vm65_vm0, %v7649_v46  ;;  %v7653_v45 = vld [vmem:[#allocation2 + $0xd0] ss:$8 sps:$4 sm:$0xff]   ;;  %v8154_v46 = vpop.permute.xlu1 %1606 }
 0x131   :  { %8749 = vst [vmem:[#allocation18_spill] sm:$0xff] %v8154_v46  ;;  %v7657_v46 = vld [vmem:[#allocation2 + $0x110] ss:$8 sps:$4 sm:$0xff]  }
 0x132   :  { %3382 = vperm.xlu1 %7640, %v3232_v51   ;;  %v5026_v51 = vld [vmem:[#allocation5 + $0x4c0] sm:$0xff] }
 0x134   :  { %3387 = vperm.xlu0 %7639, %v3233_v56   ;;  %v8156_v56 = vpop.permute.xlu0 %1611 }
 0x135   :  { %8750 = vst [vmem:[#allocation19_spill] sm:$0xff] %v8156_v56 }
 0x136   :  { %3392 = vperm.xlu1 %7640, %v3234_v63   ;;  %v5027_v63 = vld [vmem:[#allocation5 + $0x4c8] sm:$0xff] }
 0x137   :  { %7073 = vmatmul.mubr.msk.bf16.gmra.mrb[16].mxu1 %vm65_vm0, %v7650_v2  ;;  %v5028_v2 = vld [vmem:[#allocation5 + $0x4d0] sm:$0xff] }
 0x138   :  { %5039 = vperm.xlu0 %7639, %v5021_v9   ;;  %7076 = vmatprep.mubr.msk.bf16.mxu1 %vm65_vm0, %v7651_v14  ;;  %v8160_v9 = vpop.permute.xlu1 %1616  ;;  %v7654_v14 = vld [vmem:[#allocation2 + $0xe0] ss:$8 sps:$4 sm:$0xff]   ;;  %v8162_v8 = vpop.permute.xlu0 %1621 }
 0x139   :  { %8751 = vst [vmem:[#allocation20_spill] sm:$0xff] %v8160_v9  ;;  %8752 = vst [vmem:[#allocation21_spill] sm:$0xff] %v8162_v8  ;;  %v5034_v8 = vld [vmem:[#allocation5 + $0x500] sm:$0xff] }
 0x13a   :  { %5044 = vperm.xlu1 %7640, %v5022_v15   ;;  %v5029_v15 = vld [vmem:[#allocation5 + $0x4d8] sm:$0xff] }
 0x13c   :  { %5049 = vperm.xlu0 %7639, %v5023_v17   ;;  %v7655_v17 = vld [vmem:[#allocation2 + $0xf0] ss:$8 sps:$4 sm:$0xff]  }
 0x13e   :  { %5054 = vperm.xlu1 %7640, %v5024_v29   ;;  %v5030_v29 = vld [vmem:[#allocation5 + $0x4e0] sm:$0xff] }
 0x13f   :  { %7077 = vmatmul.mubr.msk.bf16.gmra.mrb[20].mxu1 %vm65_vm0, %v7652_v33  ;;  %v5031_v33 = vld [vmem:[#allocation5 + $0x4e8] sm:$0xff] }
 0x140   :  { %5059 = vperm.xlu0 %7639, %v5025_v38   ;;  %7080 = vmatprep.mubr.msk.bf16.mxu1 %vm65_vm0, %v7653_v45  ;;  %v8166_v38 = vpop.permute.xlu1 %1626  ;;  %v5032_v45 = vld [vmem:[#allocation5 + $0x4f0] sm:$0xff] }
 0x141   :  { %8753 = vst [vmem:[#allocation22_spill] sm:$0xff] %v8166_v38 }
 0x142   :  { %5064 = vperm.xlu1 %7640, %v5026_v51   ;;  %v8168_v51 = vpop.permute.xlu0 %1631 }
 0x143   :  { %8754 = vst [vmem:[#allocation23_spill] sm:$0xff] %v8168_v51  ;;  %v7659_v51 = vld [vmem:[#allocation2 + $0x130] ss:$8 sps:$4 sm:$0xff]  }
 0x144   :  { %5069 = vperm.xlu0 %7639, %v5027_v63   ;;  %v7656_v63 = vld [vmem:[#allocation2 + $0x100] ss:$8 sps:$4 sm:$0xff]   ;;  %7092 = vmatprep.subr.bf16.mxu0 %v7659_v51 }
 0x145   :  { %7093 = vmatpush3.bf16.msra.mxu0 %v7659_v51  ;;  %v5285_v51 = vld [vmem:[#allocation5 + $0x550] sm:$0xff] }
 0x146   :  { %5074 = vperm.xlu1 %7640, %v5028_v2   ;;  %v8170_v2 = vpop.permute.xlu1 %1636 }
 0x147   :  { %7081 = vmatmul.mubr.msk.bf16.gmra.mrb[24].mxu1 %vm65_vm0, %v7654_v14  ;;  %8755 = vst [vmem:[#allocation24_spill] sm:$0xff] %v8170_v2  ;;  %v5035_v14 = vld [vmem:[#allocation5 + $0x508] sm:$0xff] }
 0x148   :  { %5079 = vperm.xlu0 %7639, %v5029_v15   ;;  %7084 = vmatprep.mubr.msk.bf16.mxu1 %vm65_vm0, %v7655_v17  ;;  %v8174_v15 = vpop.permute.xlu0 %1641  ;;  %v5036_v17 = vld [vmem:[#allocation5 + $0x510] sm:$0xff] }
 0x149   :  { %8756 = vst [vmem:[#allocation25_spill] sm:$0xff] %v8174_v15  ;;  %v7661_v15 = vld [vmem:[#allocation2 + $0x150] ss:$8 sps:$4 sm:$0xff]  }
 0x14a   :  { %5084 = vperm.xlu1 %7640, %v5030_v29   ;;  %v7658_v29 = vld [vmem:[#allocation2 + $0x120] ss:$8 sps:$4 sm:$0xff]   ;;  %v8176_v38 = vpop.permute.xlu1 %1646 }
 0x14b   :  { %8757 = vst [vmem:[#allocation26_spill] sm:$0xff] %v8176_v38 }
 0x14c   :  { %5089 = vperm.xlu0 %7639, %v5031_v33   ;;  %v5278_v33 = vld [vmem:[#allocation5 + $0x518] sm:$0xff]  ;;  %v8178_v25 = vpop.permute.xlu0 %1651 }
 0x14d   :  { %8758 = vst [vmem:[#allocation27_spill] sm:$0xff] %v8178_v25 }
 0x14e   :  { %5094 = vperm.xlu1 %7640, %v5032_v45   ;;  %v5279_v45 = vld [vmem:[#allocation5 + $0x520] sm:$0xff] }
 0x14f   :  { %7085 = vmatmul.mubr.msk.bf16.gmra.mrb[28].mxu1 %vm65_vm0, %v7656_v63  ;;  %v8181_v63 = vpop.permute.xlu1 %1656 }
 0x150   :  { %5099 = vperm.xlu0 %7639, %v5033_v4   ;;  %7088 = vmatprep.mubr.msk.bf16.mxu1 %vm65_vm0, %v7657_v46  ;;  %v5280_v4 = vld [vmem:[#allocation5 + $0x528] sm:$0xff]  ;;  %v5281_v46 = vld [vmem:[#allocation5 + $0x530] sm:$0xff]  ;;  %8759 = vst [vmem:[#allocation28_spill] sm:$0xff] %v8181_v63  ;;  %v8183_v38 = vpop.permute.xlu0 %1661 }
 0x151   :  { %8760 = vst [vmem:[#allocation29_spill] sm:$0xff] %v8183_v38 }
 0x152   :  { %5104 = vperm.xlu1 %7640, %v5034_v8   ;;  %v7660_v8 = vld [vmem:[#allocation2 + $0x140] ss:$8 sps:$4 sm:$0xff]  }
 0x153   :  { %7094 = vmatprep.subr.bf16.mxu0 %v7660_v8 }
 0x154   :  { %5109 = vperm.xlu0 %7639, %v5035_v14   ;;  %v5282_v14 = vld [vmem:[#allocation5 + $0x538] sm:$0xff]  ;;  %7095 = vmatpush3.bf16.msra.mxu0 %v7660_v8  ;;  %v8187_v25 = vpop.permute.xlu0 %1671 }
 0x155   :  { %7096 = vmatprep.subr.bf16.mxu0 %v7661_v15  ;;  %8762 = vst [vmem:[#allocation31_spill] sm:$0xff] %v8187_v25 }
 0x156   :  { %5114 = vperm.xlu1 %7640, %v5036_v17   ;;  %v5283_v17 = vld [vmem:[#allocation5 + $0x540] sm:$0xff] }
 0x157   :  { %7089 = vmatmul.mubr.msk.bf16.gmra.mrb[32].mxu1 %vm65_vm0, %v7658_v29  ;;  %v5284_v29 = vld [vmem:[#allocation5 + $0x548] sm:$0xff] }
 0x158   :  { %5288 = vperm.xlu0 %7639, %v5278_v33   ;;  %v8185_v33 = vpop.permute.xlu1 %1666  ;;  %7097 = vmatpush3.bf16.msra.mxu0 %v7661_v15  ;;  %v8191_v38 = vpop.permute.xlu0 %1681  ;;  %v5994_v15 = vld [vmem:[#allocation5 + $0x588] sm:$0xff] }
 0x159   :  { %8761 = vst [vmem:[#allocation30_spill] sm:$0xff] %v8185_v33  ;;  %8764 = vst [vmem:[#allocation33_spill] sm:$0xff] %v8191_v38  ;;  %v5905_v33 = vld [vmem:[#allocation5 + $0x580] sm:$0xff] }
 0x15a   :  { %5293 = vperm.xlu1 %7640, %v5279_v45   ;;  %v7662_v45 = vld [vmem:[#allocation2 + $0x160] ss:$8 sps:$4 sm:$0xff]  }
 0x15b   :  { %7098 = vmatprep.subr.bf16.mxu0 %v7662_v45 }
 0x15c   :  { %5298 = vperm.xlu0 %7639, %v5280_v4   ;;  %v5902_v4 = vld [vmem:[#allocation5 + $0x568] sm:$0xff]  ;;  %7099 = vmatpush3.bf16.msra.mxu0 %v7662_v45  ;;  %v8189_v8 = vpop.permute.xlu1 %1676 }
 0x15d   :  { %8763 = vst [vmem:[#allocation32_spill] sm:$0xff] %v8189_v8  ;;  %v7665_v45 = vld [vmem:[#allocation2 + $0x190] ss:$8 sps:$4 sm:$0xff]  }
 0x15e   :  { %5303 = vperm.xlu1 %7640, %v5281_v46   ;;  %v5903_v46 = vld [vmem:[#allocation5 + $0x570] sm:$0xff] }
 0x160   :  { %5308 = vperm.xlu0 %7639, %v5282_v14   ;;  %v5904_v14 = vld [vmem:[#allocation5 + $0x578] sm:$0xff]  ;;  %v8193_v63 = vpop.permute.xlu1 %1686 }
 0x161   :  { %8765 = vst [vmem:[#allocation34_spill] sm:$0xff] %v8193_v63 }
 0x162   :  { %5313 = vperm.xlu1 %7640, %v5283_v17   ;;  %v7663_v17 = vld [vmem:[#allocation2 + $0x170] ss:$8 sps:$4 sm:$0xff]  }
 0x163   :  { %7100 = vmatprep.subr.bf16.mxu0 %v7663_v17 }
 0x164   :  { %5318 = vperm.xlu0 %7639, %v5284_v29   ;;  %7101 = vmatpush3.bf16.msra.mxu0 %v7663_v17  ;;  %v7664_v29 = vld [vmem:[#allocation2 + $0x180] ss:$8 sps:$4 sm:$0xff]  }
 0x165   :  { %7102 = vmatprep.subr.bf16.mxu0 %v7664_v29 }
 0x166   :  { %5323 = vperm.xlu1 %7640, %v5285_v51   ;;  %v8195_v51 = vpop.permute.xlu0 %1691 }
 0x167   :  { %8766 = vst [vmem:[#allocation35_spill] sm:$0xff] %v8195_v51 }
 0x168   :  { %5908 = vperm.xlu0 %7639, %v5902_v4   ;;  %7103 = vmatpush3.bf16.msra.mxu0 %v7664_v29  ;;  %v7666_v4 = vld [vmem:[#allocation2 + $0x1a0] ss:$8 sps:$4 sm:$0xff]  }
 0x169   :  { %7104 = vmatprep.subr.bf16.mxu0 %v7665_v45 }
 0x16a   :  { %5913 = vperm.xlu1 %7640, %v5903_v46  }
 0x16c   :  { %5918 = vperm.xlu0 %7639, %v5904_v14   ;;  %7105 = vmatpush3.bf16.msra.mxu0 %v7665_v45 }
 0x16d   :  { %7106 = vmatprep.subr.bf16.mxu0 %v7666_v4 }
 0x16e   :  { %5923 = vperm.xlu1 %7640, %v5905_v33  }
 0x170   :  { %5997 = vperm.xlu0 %7639, %v5994_v15   ;;  %7107 = vmatpush3.bf16.msra.mxu0 %v7666_v4 }
 0x1ea   :  { %v8197_v46 = vpop.f32.mrb[0].mxu1 }
 0x1eb   :  { %v8199_v14 = vpop.f32.mrb[1].mxu1 }
 0x1ec   :  { %v8201_v38 = vpop.f32.mrb[2].mxu1 }
 0x1ed   :  { %v8203_v33 = vpop.f32.mrb[3].mxu1 }
 0x1f2   :  { %v7062_v17 = vpop.f32.mrb[4].mxu1 }
 0x1f3   :  { %v705_v63 = vpop.f32.mrb[5].mxu1  ;;  %v714_v15 = vadd.f32 %v7062_v17, %v8041_v23 }
 0x1f4   :  { %v7063_v51 = vpop.f32.mrb[6].mxu1  ;;  %v706_v45 = vadd.f32 %v705_v63, %v8039_v19 }
 0x1f5   :  { %v717_v29 = vadd.f32 %v7063_v51, %v8045_v27  ;;  %v708_v8 = vpop.f32.mrb[7].mxu1 }
 0x1f6   :  { %v709_v4 = vadd.f32 %v708_v8, %v8043_v24 }
 0x1f7   :  { %v833_v25 = vpack.c.bf16 %v717_v29, %v714_v15 }
 0x1f8   :  { %v832_v2 = vpack.c.bf16 %v709_v4, %v706_v45 }
 0x1fa   :  { %v7066_v9 = vpop.f32.mrb[8].mxu1  ;;  %7108 = vmatprep.mubr.bf16.mxu0 %v832_v2 }
 0x1fb   :  { %v721_v56 = vpop.f32.mrb[9].mxu1  ;;  %7109 = vmatmul.mubr.bf16.vlgmr.msra.gmra.mrb[8].mxu0 %v833_v25  ;;  %v730_v50 = vadd.f32 %v7066_v9, %v8051_v34 }
 0x1fc   :  { %v7067_v60 = vpop.f32.mrb[10].mxu1  ;;  %v722_v23 = vadd.f32 %v721_v56, %v8047_v30 }
 0x1fd   :  { %v733_v5 = vadd.f32 %v7067_v60, %v8053_v37  ;;  %v724_v1 = vpop.f32.mrb[11].mxu1 }
 0x1fe   :  { %v725_v27 = vadd.f32 %v724_v1, %v8049_v32 }
 0x1ff   :  { %v835_v51 = vpack.c.bf16 %v733_v5, %v730_v50 }
 0x200   :  { %v834_v19 = vpack.c.bf16 %v725_v27, %v722_v23 }
 0x202   :  { %v7070_v63 = vpop.f32.mrb[12].mxu1  ;;  %7112 = vmatprep.mubr.bf16.mxu0 %v834_v19 }
 0x203   :  { %v737_v24 = vpop.f32.mrb[13].mxu1  ;;  %7113 = vmatmul.mubr.bf16.gmra.mrb[12].mxu0 %v835_v51  ;;  %v746_v2 = vadd.f32 %v7070_v63, %v8059_v44 }
 0x204   :  { %v7071_v8 = vpop.f32.mrb[14].mxu1  ;;  %v738_v34 = vadd.f32 %v737_v24, %v8055_v39 }
 0x205   :  { %v749_v25 = vadd.f32 %v7071_v8, %v8061_v47  ;;  %v740_v17 = vpop.f32.mrb[15].mxu1 }
 0x206   :  { %v741_v37 = vadd.f32 %v740_v17, %v8057_v43 }
 0x207   :  { %v837_v60 = vpack.c.bf16 %v749_v25, %v746_v2 }
 0x208   :  { %v836_v30 = vpack.c.bf16 %v741_v37, %v738_v34 }
 0x20a   :  { %v7074_v56 = vpop.f32.mrb[16].mxu1  ;;  %7116 = vmatprep.mubr.bf16.mxu0 %v836_v30 }
 0x20b   :  { %v753_v32 = vpop.f32.mrb[17].mxu1  ;;  %7117 = vmatmul.mubr.bf16.gmra.mrb[16].mxu0 %v837_v60  ;;  %v762_v1 = vadd.f32 %v7074_v56, %v8067_v54 }
 0x20c   :  { %v7075_v50 = vpop.f32.mrb[18].mxu1  ;;  %v754_v44 = vadd.f32 %v753_v32, %v8063_v49 }
 0x20d   :  { %v765_v5 = vadd.f32 %v7075_v50, %v8069_v57  ;;  %v756_v9 = vpop.f32.mrb[19].mxu1 }
 0x20e   :  { %v757_v47 = vadd.f32 %v756_v9, %v8065_v52 }
 0x20f   :  { %v839_v15 = vpack.c.bf16 %v765_v5, %v762_v1 }
 0x210   :  { %v838_v39 = vpack.c.bf16 %v757_v47, %v754_v44 }
 0x212   :  { %v7078_v29 = vpop.f32.mrb[20].mxu1  ;;  %7120 = vmatprep.mubr.bf16.mxu0 %v838_v39 }
 0x213   :  { %v769_v43 = vpop.f32.mrb[21].mxu1  ;;  %7121 = vmatmul.mubr.bf16.gmra.mrb[20].mxu0 %v839_v15  ;;  %v778_v4 = vadd.f32 %v7078_v29, %v8075_v0  ;;  %v8237_v15 = vld [vmem:[#allocation5 + $0x110] ss:$0 sm:$0xff] }
 0x214   :  { %v7079_v45 = vpop.f32.mrb[22].mxu1  ;;  %v770_v54 = vadd.f32 %v769_v43, %v8071_v59 }
 0x215   :  { %v781_v23 = vadd.f32 %v7079_v45, %v8077_v3  ;;  %v772_v27 = vpop.f32.mrb[23].mxu1 }
 0x216   :  { %v773_v57 = vadd.f32 %v772_v27, %v8073_v62 }
 0x217   :  { %v841_v51 = vpack.c.bf16 %v781_v23, %v778_v4 }
 0x218   :  { %v840_v49 = vpack.c.bf16 %v773_v57, %v770_v54 }
 0x21a   :  { %v7082_v19 = vpop.f32.mrb[24].mxu1  ;;  %7124 = vmatprep.mubr.bf16.mxu0 %v840_v49 }
 0x21b   :  { %v785_v52 = vpop.f32.mrb[25].mxu1  ;;  %7125 = vmatmul.mubr.bf16.gmra.mrb[24].mxu0 %v841_v51  ;;  %v794_v24 = vadd.f32 %v7082_v19, %v8083_v13 }
 0x21c   :  { %v7083_v63 = vpop.f32.mrb[26].mxu1  ;;  %v786_v0 = vadd.f32 %v785_v52, %v8079_v7 }
 0x21d   :  { %v797_v8 = vadd.f32 %v7083_v63, %v8085_v16  ;;  %v788_v2 = vpop.f32.mrb[27].mxu1 }
 0x21e   :  { %v789_v3 = vadd.f32 %v788_v2, %v8081_v11 }
 0x21f   :  { %v843_v25 = vpack.c.bf16 %v797_v8, %v794_v24 }
 0x220   :  { %v842_v59 = vpack.c.bf16 %v789_v3, %v786_v0 }
 0x222   :  { %v7086_v17 = vpop.f32.mrb[28].mxu1  ;;  %7128 = vmatprep.mubr.bf16.mxu0 %v842_v59 }
 0x223   :  { %v801_v62 = vpop.f32.mrb[29].mxu1  ;;  %7129 = vmatmul.mubr.bf16.gmra.mrb[28].mxu0 %v843_v25  ;;  %v810_v37 = vadd.f32 %v7086_v17, %v8091_v26 }
 0x224   :  { %v7087_v34 = vpop.f32.mrb[30].mxu1  ;;  %v802_v13 = vadd.f32 %v801_v62, %v8087_v18 }
 0x225   :  { %v813_v60 = vadd.f32 %v7087_v34, %v8093_v31  ;;  %v804_v30 = vpop.f32.mrb[31].mxu1 }
 0x226   :  { %v805_v16 = vadd.f32 %v804_v30, %v8089_v22  ;;  %v7669_v22 = vld [vmem:[#allocation2 + $0x1b4] ss:$8 sps:$4 sm:$0xff]  }
 0x227   :  { %v845_v56 = vpack.c.bf16 %v813_v60, %v810_v37  ;;  %1174 = vmatprep.mubr.bf16.mxu1 %v7669_v22 }
 0x228   :  { %v844_v7 = vpack.c.bf16 %v805_v16, %v802_v13 }
 0x22a   :  { %v7090_v32 = vpop.f32.mrb[32].mxu1  ;;  %7132 = vmatprep.mubr.bf16.mxu0 %v844_v7 }
 0x22b   :  { %v817_v11 = vpop.f32.mrb[33].mxu1  ;;  %7133 = vmatmul.mubr.bf16.gmra.mrb[32].mxu0 %v845_v56  ;;  %v826_v1 = vadd.f32 %v7090_v32, %v8099_v42 }
 0x22c   :  { %v7091_v50 = vpop.f32.mrb[34].mxu1  ;;  %v818_v26 = vadd.f32 %v817_v11, %v8095_v35 }
 0x22d   :  { %v829_v5 = vadd.f32 %v7091_v50, %v8101_v53  ;;  %v820_v9 = vpop.f32.mrb[35].mxu1 }
 0x22e   :  { %v821_v31 = vadd.f32 %v820_v9, %v8097_v40 }
 0x22f   :  { %v847_v44 = vpack.c.bf16 %v829_v5, %v826_v1 }
 0x230   :  { %v846_v18 = vpack.c.bf16 %v821_v31, %v818_v26 }
 0x232   :  { %7136 = vmatprep.mubr.bf16.mxu0 %v846_v18 }
 0x233   :  { %7137 = vmatmul.mubr.bf16.gmra.mrb[36].mxu0 %v847_v44 }
 0x2ce   :  { %v7110_v47 = vpop.f32.mrb[8].mxu0 }
 0x2cf   :  { %v951_v39 = vpop.f32.mrb[9].mxu0  ;;  %v960_v42 = vadd.f32 %v7110_v47, %v8237_v15 }
 0x2d0   :  { %v7111_v29 = vpop.f32.mrb[10].mxu0  ;;  %v952_v35 = vadd.f32 %v8237_v15, %v951_v39 }
 0x2d1   :  { %v963_v53 = vadd.f32 %v7111_v29, %v8237_v15  ;;  %v954_v43 = vpop.f32.mrb[11].mxu0 }
 0x2d2   :  { %v955_v40 = vadd.f32 %v8237_v15, %v954_v43 }
 0x2d3   :  { %v1083_v45 = vpack.c.bf16 %v963_v53, %v960_v42 }
 0x2d4   :  { %v1082_v4 = vpack.c.bf16 %v955_v40, %v952_v35 }
 0x2d6   :  { %v7114_v23 = vpop.f32.mrb[12].mxu0 }
 0x2d7   :  { %v967_v27 = vpop.f32.mrb[13].mxu0  ;;  %v8244_v57 = vadd.f32 %v7114_v23, %v8237_v15 }
 0x2d8   :  { %v7115_v54 = vpop.f32.mrb[14].mxu0  ;;  %v968_v19 = vadd.f32 %v8237_v15, %v967_v27 }
 0x2d9   :  { %v979_v51 = vadd.f32 %v7115_v54, %v8237_v15  ;;  %v970_v49 = vpop.f32.mrb[15].mxu0 }
 0x2da   :  { %v971_v52 = vadd.f32 %v8237_v15, %v970_v49 }
 0x2db   :  { %v1085_v63 = vpack.c.bf16 %v979_v51, %v8244_v57 }
 0x2dc   :  { %v1084_v24 = vpack.c.bf16 %v971_v52, %v968_v19 }
 0x2de   :  { %v7118_v8 = vpop.f32.mrb[16].mxu0 }
 0x2df   :  { %v983_v2 = vpop.f32.mrb[17].mxu0  ;;  %v8251_v3 = vadd.f32 %v7118_v8, %v8237_v15 }
 0x2e0   :  { %v7119_v0 = vpop.f32.mrb[18].mxu0  ;;  %v984_v17 = vadd.f32 %v8237_v15, %v983_v2 }
 0x2e1   :  { %v8254_v25 = vadd.f32 %v7119_v0, %v8237_v15  ;;  %v986_v59 = vpop.f32.mrb[19].mxu0 }
 0x2e2   :  { %v987_v62 = vadd.f32 %v8237_v15, %v986_v59 }
 0x2e3   :  { %v1087_v34 = vpack.c.bf16 %v8254_v25, %v8251_v3 }
 0x2e4   :  { %v1086_v37 = vpack.c.bf16 %v987_v62, %v984_v17 }
 0x2e6   :  { %v7122_v60 = vpop.f32.mrb[20].mxu0 }
 0x2e7   :  { %v999_v30 = vpop.f32.mrb[21].mxu0  ;;  %v8261_v16 = vadd.f32 %v7122_v60, %v8237_v15 }
 0x2e8   :  { %v7123_v13 = vpop.f32.mrb[22].mxu0  ;;  %v1000_v32 = vadd.f32 %v8237_v15, %v999_v30 }
 0x2e9   :  { %v1011_v56 = vadd.f32 %v7123_v13, %v8237_v15  ;;  %v1002_v7 = vpop.f32.mrb[23].mxu0 }
 0x2ea   :  { %v1003_v11 = vadd.f32 %v8237_v15, %v1002_v7 }
 0x2eb   :  { %v1089_v50 = vpack.c.bf16 %v1011_v56, %v8261_v16 }
 0x2ec   :  { %v1088_v1 = vpack.c.bf16 %v1003_v11, %v1000_v32  ;;  %v7672_v32 = vld [vmem:[#allocation2 + $0x1c0] ss:$8 sps:$4 sm:$0xff]   ;;  %v1415_v11 = vld [vmem:[#allocation2 + $0x1f0] sm:$0x3] }
 0x2ed   :  { %7629 = vmatprep.subr.msk.bf16.mxu0 %vm131_vm1, %v1415_v11 }
 0x2ee   :  { %v7126_v5 = vpop.f32.mrb[24].mxu0 }
 0x2ef   :  { %v1015_v9 = vpop.f32.mrb[25].mxu0  ;;  %v1024_v31 = vadd.f32 %v7126_v5, %v8237_v15  ;;  %v1422_v5 = vsel %vm131_vm1, %v1415_v11, 0  ;;  %v6200_v11 = vld [vmem:[#allocation5 + $0x140] ss:$0 sm:$0xff] }
 0x2f0   :  { %v7127_v26 = vpop.f32.mrb[26].mxu0  ;;  %v1016_v22 = vadd.f32 %v8237_v15, %v1015_v9  ;;  %7161 = vmatpush3.bf16.msra.mxu0 %v1422_v5 }
 0x2f1   :  { %v1027_v44 = vadd.f32 %v7127_v26, %v8237_v15  ;;  %v1018_v18 = vpop.f32.mrb[27].mxu0 }
 0x2f2   :  { %v1019_v47 = vadd.f32 %v8237_v15, %v1018_v18 }
 0x2f3   :  { %v1091_v39 = vpack.c.bf16 %v1027_v44, %v1024_v31 }
 0x2f4   :  { %v1090_v29 = vpack.c.bf16 %v1019_v47, %v1016_v22 }
 0x2f6   :  { %v7130_v42 = vpop.f32.mrb[28].mxu0  ;;  %6504 = vmatprep.subr.bf16.mxu1 %v1090_v29 }
 0x2f7   :  { %v1031_v53 = vpop.f32.mrb[29].mxu0  ;;  %6505 = vmatpush3.bf16.msra.mxu1 %v1082_v4  ;;  %v1040_v35 = vadd.f32 %v7130_v42, %v8237_v15 }
 0x2f8   :  { %v7131_v43 = vpop.f32.mrb[30].mxu0  ;;  %6506 = vmatprep.subr.bf16.mxu1 %v1091_v39  ;;  %v1032_v27 = vadd.f32 %v8237_v15, %v1031_v53  ;;  %v7877_v53 = vld [vmem:[%s8736_s0] sm:$0xff] }
 0x2f9   :  { %v1043_v40 = vadd.f32 %v7131_v43, %v8237_v15  ;;  %v1034_v23 = vpop.f32.mrb[31].mxu0 }
 0x2fa   :  { %v1035_v54 = vadd.f32 %v8237_v15, %v1034_v23 }
 0x2fb   :  { %v1093_v57 = vpack.c.bf16 %v1043_v40, %v1040_v35  ;;  %6507 = vmatpush3.bf16.msra.mxu1 %v1083_v45  ;;  %v7878_v40 = vld [vmem:[%s8736_s0 + $0x8] sm:$0xff] }
 0x2fc   :  { %v1092_v51 = vpack.c.bf16 %v1035_v54, %v1032_v27 }
 0x2fe   :  { %v7134_v49 = vpop.f32.mrb[32].mxu0  ;;  %6508 = vmatprep.subr.bf16.mxu1 %v1092_v51 }
 0x2ff   :  { %v1047_v19 = vpop.f32.mrb[33].mxu0  ;;  %6509 = vmatpush3.bf16.msra.mxu1 %v1084_v24  ;;  %v1056_v4 = vadd.f32 %v7134_v49, %v8237_v15 }
 0x300   :  { %v7135_v52 = vpop.f32.mrb[34].mxu0  ;;  %6510 = vmatprep.subr.bf16.mxu1 %v1093_v57  ;;  %v1048_v0 = vadd.f32 %v8237_v15, %v1047_v19 }
 0x301   :  { %v1059_v8 = vadd.f32 %v7135_v52, %v8237_v15  ;;  %v1050_v2 = vpop.f32.mrb[35].mxu0 }
 0x302   :  { %v1051_v3 = vadd.f32 %v8237_v15, %v1050_v2 }
 0x303   :  { %v1095_v25 = vpack.c.bf16 %v1059_v8, %v1056_v4  ;;  %6511 = vmatpush3.bf16.msra.mxu1 %v1085_v63  ;;  %v7667_v63 = vld [vmem:[#allocation2 + $0x1b0] ss:$8 sps:$4 sm:$0xff]  }
 0x304   :  { %v1094_v59 = vpack.c.bf16 %v1051_v3, %v1048_v0  ;;  %v7879_v0 = vld [vmem:[%s8736_s0 + $0x10] sm:$0xff] }
 0x306   :  { %v7138_v45 = vpop.f32.mrb[36].mxu0  ;;  %6512 = vmatprep.subr.bf16.mxu1 %v1094_v59 }
 0x307   :  { %v1063_v17 = vpop.f32.mrb[37].mxu0  ;;  %6513 = vmatpush3.bf16.msra.mxu1 %v1086_v37  ;;  %v1072_v24 = vadd.f32 %v7138_v45, %v8237_v15  ;;  %v7670_v37 = vld [vmem:[#allocation2 + $0x1c4] ss:$8 sps:$4 sm:$0xff]  }
 0x308   :  { %v7139_v62 = vpop.f32.mrb[38].mxu0  ;;  %6514 = vmatprep.subr.bf16.mxu1 %v1095_v25  ;;  %v1064_v13 = vadd.f32 %v8237_v15, %v1063_v17  ;;  %v7880_v17 = vld [vmem:[%s8736_s0 + $0x18] sm:$0xff]  ;;  %s7960_s0 = smov [#allocation7]  }
 0x309   :  { %v1075_v60 = vadd.f32 %v7139_v62, %v8237_v15  ;;  %v1066_v30 = vpop.f32.mrb[39].mxu0  ;;  %s6124_s25 = sshll.u32 %s7960_s0, 4  ;;  %s6125_s25 = int_to_ptr.vmem [resolvable:$true] %s6124_s25 }
 0x30a   :  { %v1067_v16 = vadd.f32 %v8237_v15, %v1066_v30  ;;  %v7673_v15 = vld [vmem:[#allocation2 + $0x3c0] ss:$8 sps:$4 sm:$0xff]   ;;  %s7925_s26 = scalar_lea.vmem %s6125_s25, 32  ;;  %p7930_p3 = scmp.lt.s32.totalorder %s6125_s25, %s6125_s25 }
 0x30b   :  { %v1097_v56 = vpack.c.bf16 %v1075_v60, %v1072_v24  ;;  %6515 = vmatpush3.bf16.msra.mxu1 %v1087_v34  ;;  %v6140_v34 = vld [vmem:[#allocation5] ss:$0 sm:$0xff]  ;;  %p7926_p2 = scmp.ne.s32.totalorder %s6125_s25, %s7925_s26  ;;  %p7931_p4 = scmp.lt.s32.totalorder %s7925_s26, %s7925_s26 }
 0x30c   :  { %v1096_v7 = vpack.c.bf16 %v1067_v16, %v1064_v13  ;;  %v7611_v9 = vadd.f32 %v6140_v34, %v8203_v33  ;;  %v7608_v42 = vadd.f32 %v8197_v46, %v6140_v34  ;;  %v7610_v35 = vadd.f32 %v8201_v38, %v6140_v34  ;;  %v7674_v16 = vld [vmem:[#allocation2 + $0x3d0] ss:$8 sps:$4 sm:$0xff]  }
 0x30d   :  { %p7932_p5 = por %p7931_p4, %p7930_p3 }
 0x30e   :  { %6516 = vmatprep.subr.bf16.mxu1 %v1096_v7  ;;  %v256_v47 = vmax.f32 %v7611_v9, 0.0  ;;  %v257_v57 = vmax.f32 %v7608_v42, 0.0  ;;  %v258_v52 = vmax.f32 %v7610_v35, 0.0  ;;  %v7678_v35 = vld [vmem:[#allocation2 + $0x230] ss:$8 sps:$4 sm:$0xff]  }
 0x30f   :  { %6517 = vmatpush3.bf16.msra.mxu1 %v1088_v1  ;;  %v7609_v1 = vadd.f32 %v6140_v34, %v8199_v14  ;;  %p7933_p6 = pnand %p7932_p5, %p7926_p2 }
 0x310   :  { %6518 = vmatprep.subr.bf16.mxu1 %v1097_v56  ;;  %v1196_v23 = vadd.f32 %v7878_v40, %v256_v47  ;;  %v1197_v3 = vadd.f32 %v7879_v0, %v257_v57  ;;  %v1198_v62 = vadd.f32 %v7880_v17, %v258_v52  ;;  %v1281_v56 = vld [vmem:[#allocation2 + $0x1d0] sm:$0x3]  ;;  %v7679_v40 = vld [vmem:[#allocation2 + $0x240] ss:$8 sps:$4 sm:$0xff]  }
 0x311   :  { %v255_v31 = vmax.f32 %v7609_v1, 0.0  ;;  %v1289_v7 = vsel %vm131_vm1, %v1281_v56, 0  ;;  %v7694_v57 = vld [vmem:[#allocation2 + $0x330] ss:$8 sps:$4 sm:$0xff]   ;;  %v7683_v52 = vld [vmem:[#allocation2 + $0x280] ss:$8 sps:$4 sm:$0xff]  }
 0x312   :  { %v7686_v0 = vld [vmem:[#allocation2 + $0x2b0] ss:$8 sps:$4 sm:$0xff]   ;;  %v7697_v17 = vld [vmem:[#allocation2 + $0x360] ss:$8 sps:$4 sm:$0xff]  }
 0x313   :  { %6519 = vmatpush3.bf16.msra.mxu1 %v1089_v50  ;;  %v1195_v43 = vadd.f32 %v7877_v53, %v255_v31 }
 0x316   :  { %1175 = vmatmul.mubr.bf16.vlgmr.msra.gmra.mrb[36].mxu1 %v7667_v63  ;;  %v7675_v63 = vld [vmem:[#allocation2 + $0x200] ss:$8 sps:$4 sm:$0xff]  }
 0x317   :  { %1182 = vmatprep.mubr.bf16.mxu1 %v7670_v37  ;;  %v1348_v37 = vld [vmem:[#allocation2 + $0x1e0] sm:$0x3] }
 0x318   :  { %v1356_v53 = vsel %vm131_vm1, %v1348_v37, 0 }
 0x31e   :  { %1183 = vmatmul.mubr.bf16.gmra.mrb[40].mxu1 %v7672_v32 }
 0x31f   :  { %7144 = vmatprep.mubr.msk.bf16.mxu1 %vm65_vm0, %v7673_v15 }
 0x3e9   :  { %v6520_v50 = vpop.f32.mrb[36].mxu1 }
 0x3ea   :  { %v6521_v26 = vpop.f32.mrb[37].mxu1 }
 0x3eb   :  { %v6522_v44 = vadd.f32 %v6521_v26, %v6520_v50  ;;  %v6523_v18 = vpop.f32.mrb[38].mxu1 }
 0x3ec   :  { %v6524_v22 = vpop.f32.mrb[39].mxu1 }
 0x3ed   :  { %v1177_v39 = vadd.f32 %v6522_v44, %v8103_v61  ;;  %v6525_v29 = vadd.f32 %v6524_v22, %v6523_v18 }
 0x3ef   :  { %v1191_v14 = vmax.f32 %v1177_v39, 0.0  ;;  %v1180_v33 = vadd.f32 %v6525_v29, %v8111_v10 }
 0x3f1   :  { %v8298_v27 = vadd.f32 %v1195_v43, %v1191_v14  ;;  %v1192_v61 = vmax.f32 %v1180_v33, 0.0  ;;  %v6526_v54 = vpop.f32.mrb[40].mxu1  ;;  %v7691_v43 = vld [vmem:[#allocation2 + $0x300] ss:$8 sps:$4 sm:$0xff]   ;;  %v7676_v14 = vld [vmem:[#allocation2 + $0x210] ss:$8 sps:$4 sm:$0xff]  }
 0x3f2   :  { %v6527_v46 = vpop.f32.mrb[41].mxu1  ;;  %v7677_v33 = vld [vmem:[#allocation2 + $0x220] ss:$8 sps:$4 sm:$0xff]  }
 0x3f3   :  { %v8300_v51 = vadd.f32 %v1196_v23, %v1192_v61  ;;  %v6528_v49 = vadd.f32 %v6527_v46, %v6526_v54  ;;  %v6529_v19 = vpop.f32.mrb[42].mxu1  ;;  %v1203_v10 = vmax.f32 %v8298_v27, 0.0  ;;  %v7692_v23 = vld [vmem:[#allocation2 + $0x310] ss:$8 sps:$4 sm:$0xff]   ;;  %v7693_v61 = vld [vmem:[#allocation2 + $0x320] ss:$8 sps:$4 sm:$0xff]  }
 0x3f4   :  { %v6530_v4 = vpop.f32.mrb[43].mxu1  ;;  %v7680_v54 = vld [vmem:[#allocation2 + $0x250] ss:$8 sps:$4 sm:$0xff]   ;;  %v7681_v46 = vld [vmem:[#allocation2 + $0x260] ss:$8 sps:$4 sm:$0xff]  }
 0x3f5   :  { %v1204_v38 = vmax.f32 %v8300_v51, 0.0  ;;  %v1185_v8 = vadd.f32 %v6528_v49, %v8113_v20  ;;  %v6531_v2 = vadd.f32 %v6530_v4, %v6529_v19  ;;  %v7695_v49 = vld [vmem:[#allocation2 + $0x340] ss:$8 sps:$4 sm:$0xff]   ;;  %v7682_v19 = vld [vmem:[#allocation2 + $0x270] ss:$8 sps:$4 sm:$0xff]  }
 0x3f6   :  { %v7696_v4 = vld [vmem:[#allocation2 + $0x350] ss:$8 sps:$4 sm:$0xff]  }
 0x3f7   :  { %v1193_v25 = vmax.f32 %v1185_v8, 0.0  ;;  %v1188_v59 = vadd.f32 %v6531_v2, %v8115_v41  ;;  %v1212_v45 = vpack.c.bf16 %v1204_v38, %v1203_v10  ;;  %v7684_v8 = vld [vmem:[#allocation2 + $0x290] ss:$8 sps:$4 sm:$0xff]   ;;  %v7685_v2 = vld [vmem:[#allocation2 + $0x2a0] ss:$8 sps:$4 sm:$0xff]  }
 0x3f9   :  { %v8316_v20 = vadd.f32 %v1197_v3, %v1193_v25  ;;  %v1194_v24 = vmax.f32 %v1188_v59, 0.0  ;;  %7140 = vmatprep.subr.bf16.mxu1 %v1212_v45  ;;  %7162 = vmatprep.mubr.msk.bf16.mxu0 %vm124_vm2, %v1212_v45  ;;  %v7687_v3 = vld [vmem:[#allocation2 + $0x2c0] ss:$8 sps:$4 sm:$0xff]   ;;  %v7688_v25 = vld [vmem:[#allocation2 + $0x2d0] ss:$8 sps:$4 sm:$0xff]  }
 0x3fa   :  { %7141 = vmatpush3.bf16.msra.mxu1 %v1212_v45  ;;  %v7689_v59 = vld [vmem:[#allocation2 + $0x2e0] ss:$8 sps:$4 sm:$0xff]  }
 0x3fb   :  { %v8319_v60 = vadd.f32 %v1198_v62, %v1194_v24  ;;  %v1205_v41 = vmax.f32 %v8316_v20, 0.0  ;;  %v7698_v62 = vld [vmem:[#allocation2 + $0x370] ss:$8 sps:$4 sm:$0xff]  }
 0x3fd   :  { %v1206_v30 = vmax.f32 %v8319_v60, 0.0  ;;  %v7705_v60 = vld [vmem:[#allocation2 + $0x410] ss:$8 sps:$4 sm:$0xff]  }
 0x3ff   :  { %v1213_v13 = vpack.c.bf16 %v1206_v30, %v1205_v41 }
 0x401   :  { %7142 = vmatprep.subr.bf16.mxu1 %v1213_v13  ;;  %7163 = vmatmul.mubr.msk.bf16.vlgmr.msra.gmra.mrb[40].mxu0 %vm124_vm2, %v1213_v13 }
 0x402   :  { %7143 = vmatpush3.bf16.msra.mxu1 %v1213_v13  ;;  %7170 = vmatprep.mubr.msk.bf16.mxu0 %vm65_vm0, %v7675_v63 }
 0x403   :  { %7627 = vmatprep.subr.msk.bf16.mxu1 %vm131_vm1, %v1281_v56 }
 0x405   :  { %7145 = vmatmul.mubr.msk.bf16.vlgmr.msra.gmra.mrb[44].mxu1 %vm65_vm0, %v7674_v16 }
 0x406   :  { %7149 = vmatpush3.bf16.msra.mxu1 %v1289_v7 }
 0x407   :  { %7628 = vmatprep.subr.msk.bf16.mxu1 %vm131_vm1, %v1348_v37 }
 0x4d4   :  { %v7164_v32 = vpop.f32.mrb[40].mxu0 }
 0x4d5   :  { %v1458_v5 = vpop.f32.mrb[41].mxu0  ;;  %v1467_v34 = vadd.f32 %v7164_v32, %v6200_v11 }
 0x4d6   :  { %v7165_v15 = vpop.f32.mrb[42].mxu0  ;;  %v1459_v50 = vadd.f32 %v6200_v11, %v1458_v5 }
 0x4d7   :  { %v1470_v1 = vadd.f32 %v7165_v15, %v6200_v11  ;;  %v1461_v9 = vpop.f32.mrb[43].mxu0 }
 0x4d8   :  { %v1462_v26 = vadd.f32 %v6200_v11, %v1461_v9  ;;  %v7146_v31 = vpop.f32.mrb[44].mxu1 }
 0x4d9   :  { %v1506_v44 = vpack.c.bf16 %v1470_v1, %v1467_v34  ;;  %v1264_v18 = vpop.f32.mrb[45].mxu1 }
 0x4da   :  { %v1505_v22 = vpack.c.bf16 %v1462_v26, %v1459_v50  ;;  %v7147_v47 = vpop.f32.mrb[46].mxu1 }
 0x4db   :  { %v1280_v39 = vpack.c.bf16 %v7147_v47, %v7146_v31  ;;  %v1267_v29 = vpop.f32.mrb[47].mxu1 }
 0x4dc   :  { %v1279_v42 = vpack.c.bf16 %v1267_v29, %v1264_v18  ;;  %7166 = vmatprep.subr.bf16.mxu0 %v1505_v22 }
 0x4dd   :  { %7167 = vmatpush3.bf16.msra.mxu0 %v1505_v22 }
 0x4de   :  { %7150 = vmatprep.mubr.msk.bf16.mxu1 %vm124_vm2, %v1279_v42  ;;  %7168 = vmatprep.subr.bf16.mxu0 %v1506_v44  ;;  %v8767_v42 = vld [vmem:[#allocation15_spill] sm:$0xff] }
 0x4df   :  { %7151 = vmatmul.mubr.msk.bf16.vlgmr.msra.gmra.mrb[48].mxu1 %vm124_vm2, %v1280_v39 }
 0x4e0   :  { %7156 = vmatprep.mubr.msk.bf16.mxu1 %vm124_vm2, %v1212_v45  ;;  %7155 = vmatpush3.bf16.msra.mxu1 %v1356_v53  ;;  %v7690_v45 = vld [vmem:[#allocation2 + $0x2f0] ss:$8 sps:$4 sm:$0xff]  }
 0x4e1   :  { %7169 = vmatpush3.bf16.msra.mxu0 %v1506_v44  ;;  %7202 = vmatprep.subr.bf16.mxu1 %v7691_v43 }
 0x4e4   :  { %7171 = vmatmul.mubr.msk.bf16.vlgmr.msra.gmra.mrb[44].mxu0 %vm65_vm0, %v7676_v14 }
 0x4e5   :  { %7174 = vmatprep.mubr.msk.bf16.mxu0 %vm65_vm0, %v7677_v33 }
 0x4eb   :  { %7157 = vmatmul.mubr.msk.bf16.vlgmr.msra.gmra.mrb[48].mxu1 %vm124_vm2, %v1213_v13 }
 0x4ec   :  { %7175 = vmatmul.mubr.msk.bf16.gmra.mrb[48].mxu0 %vm65_vm0, %v7678_v35  ;;  %7203 = vmatpush3.bf16.msra.mxu1 %v7691_v43  ;;  %v8768_v43 = vld [vmem:[#allocation16_spill] sm:$0xff] }
 0x4ed   :  { %7178 = vmatprep.mubr.msk.bf16.mxu0 %vm65_vm0, %v7679_v40  ;;  %7204 = vmatprep.subr.bf16.mxu1 %v7692_v23 }
 0x4f0   :  { %7205 = vmatpush3.bf16.msra.mxu1 %v7692_v23 }
 0x4f1   :  { %7206 = vmatprep.subr.bf16.mxu1 %v7693_v61 }
 0x4f4   :  { %7179 = vmatmul.mubr.msk.bf16.gmra.mrb[52].mxu0 %vm65_vm0, %v7680_v54  ;;  %7207 = vmatpush3.bf16.msra.mxu1 %v7693_v61 }
 0x4f5   :  { %7182 = vmatprep.mubr.msk.bf16.mxu0 %vm65_vm0, %v7681_v46  ;;  %7208 = vmatprep.subr.bf16.mxu1 %v7694_v57  ;;  %v8771_v46 = vld [vmem:[#allocation19_spill] sm:$0xff] }
 0x4f8   :  { %7209 = vmatpush3.bf16.msra.mxu1 %v7694_v57 }
 0x4f9   :  { %7210 = vmatprep.subr.bf16.mxu1 %v7695_v49 }
 0x4fc   :  { %7183 = vmatmul.mubr.msk.bf16.gmra.mrb[56].mxu0 %vm65_vm0, %v7682_v19  ;;  %7211 = vmatpush3.bf16.msra.mxu1 %v7695_v49  ;;  %v8772_v49 = vld [vmem:[#allocation20_spill] sm:$0xff] }
 0x4fd   :  { %7186 = vmatprep.mubr.msk.bf16.mxu0 %vm65_vm0, %v7683_v52  ;;  %7212 = vmatprep.subr.bf16.mxu1 %v7696_v4 }
 0x500   :  { %7213 = vmatpush3.bf16.msra.mxu1 %v7696_v4  ;;  %v8773_v4 = vld [vmem:[#allocation17_spill] sm:$0xff] }
 0x501   :  { %7214 = vmatprep.subr.bf16.mxu1 %v7697_v17 }
 0x504   :  { %7187 = vmatmul.mubr.msk.bf16.gmra.mrb[60].mxu0 %vm65_vm0, %v7684_v8  ;;  %7215 = vmatpush3.bf16.msra.mxu1 %v7697_v17 }
 0x505   :  { %7190 = vmatprep.mubr.msk.bf16.mxu0 %vm65_vm0, %v7685_v2  ;;  %7216 = vmatprep.subr.bf16.mxu1 %v7698_v62  ;;  %v8774_v2 = vld [vmem:[#allocation18_spill] sm:$0xff] }
 0x508   :  { %7217 = vmatpush3.bf16.msra.mxu1 %v7698_v62  ;;  %v8775_v62 = vld [vmem:[#allocation23_spill] sm:$0xff] }
 0x50c   :  { %7191 = vmatmul.mubr.msk.bf16.gmra.mrb[64].mxu0 %vm65_vm0, %v7686_v0 }
 0x50d   :  { %7194 = vmatprep.mubr.msk.bf16.mxu0 %vm65_vm0, %v7687_v3 }
 0x514   :  { %7195 = vmatmul.mubr.msk.bf16.gmra.mrb[68].mxu0 %vm65_vm0, %v7688_v25 }
 0x515   :  { %7198 = vmatprep.mubr.msk.bf16.mxu0 %vm65_vm0, %v7689_v59 }
 0x51c   :  { %7199 = vmatmul.mubr.msk.bf16.gmra.mrb[72].mxu0 %vm65_vm0, %v7690_v45 }
 0x5b7   :  { %v7172_v24 = vpop.f32.mrb[44].mxu0 }
 0x5b8   :  { %v1861_v13 = vpop.f32.mrb[45].mxu0  ;;  %v1870_v56 = vadd.f32 %v7172_v24, %v8124_v58 }
 0x5b9   :  { %v7173_v16 = vpop.f32.mrb[46].mxu0  ;;  %v1862_v37 = vadd.f32 %v1861_v13, %v8117_v48  ;;  %v8776_v13 = vld [vmem:[#allocation24_spill] sm:$0xff] }
 0x5ba   :  { %v1873_v7 = vadd.f32 %v7173_v16, %v8126_v6  ;;  %v1864_v63 = vpop.f32.mrb[47].mxu0 }
 0x5bb   :  { %v1865_v32 = vadd.f32 %v1864_v63, %v8122_v55 }
 0x5bc   :  { %v1989_v11 = vpack.c.bf16 %v1873_v7, %v1870_v56  ;;  %v8777_v7 = vld [vmem:[#allocation21_spill] sm:$0xff] }
 0x5bd   :  { %v1988_v5 = vpack.c.bf16 %v1865_v32, %v1862_v37  ;;  %v8778_v37 = vld [vmem:[#allocation22_spill] sm:$0xff] }
 0x5be   :  { %v8357_v15 = vpop.f32.mrb[48].mxu1 }
 0x5bf   :  { %v8359_v34 = vpop.f32.mrb[49].mxu1  ;;  %v7176_v1 = vpop.f32.mrb[48].mxu0  ;;  %7218 = vmatprep.mubr.bf16.mxu1 %v1988_v5 }
 0x5c0   :  { %v8361_v9 = vpop.f32.mrb[50].mxu1  ;;  %v1877_v50 = vpop.f32.mrb[49].mxu0  ;;  %7219 = vmatmul.mubr.bf16.vlgmr.msra.gmra.mrb[52].mxu1 %v1989_v11  ;;  %v1886_v26 = vadd.f32 %v7176_v1, %v8134_v28  ;;  %v8769_v28 = vld [vmem:[#allocation13_spill] sm:$0xff] }
 0x5c1   :  { %v8363_v58 = vpop.f32.mrb[51].mxu1  ;;  %v7177_v6 = vpop.f32.mrb[50].mxu0  ;;  %v1878_v31 = vadd.f32 %v1877_v50, %v8130_v12 }
 0x5c2   :  { %v1889_v48 = vadd.f32 %v7177_v6, %v8138_v36  ;;  %v1880_v55 = vpop.f32.mrb[51].mxu0  ;;  %v8770_v36 = vld [vmem:[#allocation14_spill] sm:$0xff] }
 0x5c3   :  { %v1881_v44 = vadd.f32 %v1880_v55, %v8132_v21  ;;  %v8780_v55 = vld [vmem:[#allocation28_spill] sm:$0xff] }
 0x5c4   :  { %v1991_v18 = vpack.c.bf16 %v1889_v48, %v1886_v26  ;;  %v8779_v26 = vld [vmem:[#allocation27_spill] sm:$0xff] }
 0x5c5   :  { %v1990_v22 = vpack.c.bf16 %v1881_v44, %v1878_v31 }
 0x5c7   :  { %v7180_v47 = vpop.f32.mrb[52].mxu0  ;;  %7222 = vmatprep.mubr.bf16.mxu1 %v1990_v22 }
 0x5c8   :  { %v1893_v39 = vpop.f32.mrb[53].mxu0  ;;  %7223 = vmatmul.mubr.bf16.gmra.mrb[56].mxu1 %v1991_v18  ;;  %v1902_v53 = vadd.f32 %v7180_v47, %v8767_v42  ;;  %v8781_v18 = vld [vmem:[#allocation25_spill] sm:$0xff]  ;;  %v8782_v47 = vld [vmem:[#allocation26_spill] sm:$0xff] }
 0x5c9   :  { %v7181_v29 = vpop.f32.mrb[54].mxu0  ;;  %v1894_v35 = vadd.f32 %v1893_v39, %v8769_v28 }
 0x5ca   :  { %v1905_v14 = vadd.f32 %v7181_v29, %v8768_v43  ;;  %v1896_v33 = vpop.f32.mrb[55].mxu0 }
 0x5cb   :  { %v1897_v40 = vadd.f32 %v1896_v33, %v8770_v36  ;;  %v8783_v33 = vld [vmem:[#allocation31_spill] sm:$0xff] }
 0x5cc   :  { %v1993_v23 = vpack.c.bf16 %v1905_v14, %v1902_v53 }
 0x5cd   :  { %v1992_v12 = vpack.c.bf16 %v1897_v40, %v1894_v35  ;;  %v8784_v35 = vld [vmem:[#allocation32_spill] sm:$0xff] }
 0x5cf   :  { %v7184_v61 = vpop.f32.mrb[56].mxu0  ;;  %7226 = vmatprep.mubr.bf16.mxu1 %v1992_v12 }
 0x5d0   :  { %v1909_v21 = vpop.f32.mrb[57].mxu0  ;;  %7227 = vmatmul.mubr.bf16.gmra.mrb[60].mxu1 %v1993_v23  ;;  %v1918_v57 = vadd.f32 %v7184_v61, %v8771_v46  ;;  %v8785_v23 = vld [vmem:[#allocation29_spill] sm:$0xff]  ;;  %v8786_v61 = vld [vmem:[#allocation30_spill] sm:$0xff] }
 0x5d1   :  { %v7185_v54 = vpop.f32.mrb[58].mxu0  ;;  %v1910_v8 = vadd.f32 %v1909_v21, %v8773_v4  ;;  %v8787_v4 = vld [vmem:[#allocation35_spill] sm:$0xff] }
 0x5d2   :  { %v1921_v19 = vadd.f32 %v7185_v54, %v8772_v49  ;;  %v1912_v52 = vpop.f32.mrb[59].mxu0 }
 0x5d3   :  { %v1913_v0 = vadd.f32 %v1912_v52, %v8774_v2 }
 0x5d4   :  { %v1995_v3 = vpack.c.bf16 %v1921_v19, %v1918_v57  ;;  %v1697_v19 = vpop.permute.xlu1 %1696 }
 0x5d5   :  { %v1994_v25 = vpack.c.bf16 %v1913_v0, %v1910_v8 }
 0x5d7   :  { %v7188_v59 = vpop.f32.mrb[60].mxu0  ;;  %7230 = vmatprep.mubr.bf16.mxu1 %v1994_v25 }
 0x5d8   :  { %v1925_v45 = vpop.f32.mrb[61].mxu0  ;;  %7231 = vmatmul.mubr.bf16.gmra.mrb[64].mxu1 %v1995_v3  ;;  %v1934_v24 = vadd.f32 %v7188_v59, %v8775_v62  ;;  %v8788_v3 = vld [vmem:[#allocation33_spill] sm:$0xff]  ;;  %v8789_v59 = vld [vmem:[#allocation34_spill] sm:$0xff] }
 0x5d9   :  { %v7189_v17 = vpop.f32.mrb[62].mxu0  ;;  %v1926_v63 = vadd.f32 %v1925_v45, %v8777_v7 }
 0x5da   :  { %v1937_v16 = vadd.f32 %v7189_v17, %v8776_v13  ;;  %v1928_v56 = vpop.f32.mrb[63].mxu0  ;;  %v7701_v13 = vld [vmem:[#allocation2 + $0x384] ss:$8 sps:$4 sm:$0xff]  }
 0x5db   :  { %v1929_v32 = vadd.f32 %v1928_v56, %v8778_v37  ;;  %2330 = vmatprep.mubr.bf16.mxu0 %v7701_v13  ;;  %v8394_v56 = vld [vmem:[#allocation5 + $0x248] ss:$0 sm:$0xff] }
 0x5dc   :  { %v1997_v11 = vpack.c.bf16 %v1937_v16, %v1934_v24  ;;  %v8790_v24 = vld [vmem:[#allocation11_spill] sm:$0xff] }
 0x5dd   :  { %v1996_v5 = vpack.c.bf16 %v1929_v32, %v1926_v63 }
 0x5df   :  { %v7192_v1 = vpop.f32.mrb[64].mxu0  ;;  %7234 = vmatprep.mubr.bf16.mxu1 %v1996_v5 }
 0x5e0   :  { %v1941_v50 = vpop.f32.mrb[65].mxu0  ;;  %7235 = vmatmul.mubr.bf16.gmra.mrb[68].mxu1 %v1997_v11  ;;  %v1950_v48 = vadd.f32 %v7192_v1, %v8779_v26 }
 0x5e1   :  { %v7193_v6 = vpop.f32.mrb[66].mxu0  ;;  %v1942_v22 = vadd.f32 %v1941_v50, %v8781_v18 }
 0x5e2   :  { %v1953_v31 = vadd.f32 %v7193_v6, %v8780_v55  ;;  %v1944_v44 = vpop.f32.mrb[67].mxu0 }
 0x5e3   :  { %v1945_v39 = vadd.f32 %v1944_v44, %v8782_v47 }
 0x5e4   :  { %v1999_v29 = vpack.c.bf16 %v1953_v31, %v1950_v48 }
 0x5e5   :  { %v1998_v42 = vpack.c.bf16 %v1945_v39, %v1942_v22 }
 0x5e7   :  { %v7196_v53 = vpop.f32.mrb[68].mxu0  ;;  %7238 = vmatprep.mubr.bf16.mxu1 %v1998_v42 }
 0x5e8   :  { %v1957_v43 = vpop.f32.mrb[69].mxu0  ;;  %7239 = vmatmul.mubr.bf16.gmra.mrb[72].mxu1 %v1999_v29  ;;  %v1966_v28 = vadd.f32 %v7196_v53, %v8783_v33 }
 0x5e9   :  { %v7197_v14 = vpop.f32.mrb[70].mxu0  ;;  %v1958_v12 = vadd.f32 %v1957_v43, %v8785_v23 }
 0x5ea   :  { %v1969_v36 = vadd.f32 %v7197_v14, %v8784_v35  ;;  %v1960_v40 = vpop.f32.mrb[71].mxu0 }
 0x5eb   :  { %v1961_v21 = vadd.f32 %v1960_v40, %v8786_v61 }
 0x5ec   :  { %v2001_v54 = vpack.c.bf16 %v1969_v36, %v1966_v28 }
 0x5ed   :  { %v2000_v46 = vpack.c.bf16 %v1961_v21, %v1958_v12 }
 0x5ef   :  { %v7200_v57 = vpop.f32.mrb[72].mxu0  ;;  %7242 = vmatprep.mubr.bf16.mxu1 %v2000_v46 }
 0x5f0   :  { %v1973_v49 = vpop.f32.mrb[73].mxu0  ;;  %7243 = vmatmul.mubr.bf16.gmra.mrb[76].mxu1 %v2001_v54  ;;  %v1982_v8 = vadd.f32 %v7200_v57, %v8787_v4 }
 0x5f1   :  { %v7201_v52 = vpop.f32.mrb[74].mxu0  ;;  %v1974_v25 = vadd.f32 %v1973_v49, %v8788_v3 }
 0x5f2   :  { %v1985_v2 = vadd.f32 %v7201_v52, %v1697_v19  ;;  %v1976_v0 = vpop.f32.mrb[75].mxu0 }
 0x5f3   :  { %v1977_v45 = vadd.f32 %v1976_v0, %v8789_v59 }
 0x5f4   :  { %v2003_v17 = vpack.c.bf16 %v1985_v2, %v1982_v8 }
 0x5f5   :  { %v2002_v62 = vpack.c.bf16 %v1977_v45, %v1974_v25 }
 0x5f7   :  { %7246 = vmatprep.mubr.bf16.mxu1 %v2002_v62 }
 0x5f8   :  { %7247 = vmatmul.mubr.bf16.gmra.mrb[80].mxu1 %v2003_v17 }
 0x5f9   :  { %7266 = vmatprep.mubr.msk.bf16.mxu1 %vm124_vm2, %v8790_v24 }
 0x693   :  { %v7220_v16 = vpop.f32.mrb[52].mxu1 }
 0x694   :  { %v2107_v7 = vpop.f32.mrb[53].mxu1  ;;  %v2116_v37 = vadd.f32 %v7220_v16, %v8394_v56 }
 0x695   :  { %v7221_v63 = vpop.f32.mrb[54].mxu1  ;;  %v2108_v5 = vadd.f32 %v8394_v56, %v2107_v7 }
 0x696   :  { %v2119_v32 = vadd.f32 %v7221_v63, %v8394_v56  ;;  %v2110_v11 = vpop.f32.mrb[55].mxu1 }
 0x697   :  { %v2111_v1 = vadd.f32 %v8394_v56, %v2110_v11 }
 0x698   :  { %v2239_v50 = vpack.c.bf16 %v2119_v32, %v2116_v37 }
 0x699   :  { %v2238_v6 = vpack.c.bf16 %v2111_v1, %v2108_v5 }
 0x69b   :  { %v7224_v26 = vpop.f32.mrb[56].mxu1 }
 0x69c   :  { %v2123_v48 = vpop.f32.mrb[57].mxu1  ;;  %v8401_v31 = vadd.f32 %v7224_v26, %v8394_v56 }
 0x69d   :  { %v7225_v55 = vpop.f32.mrb[58].mxu1  ;;  %v2124_v22 = vadd.f32 %v8394_v56, %v2123_v48 }
 0x69e   :  { %v2135_v44 = vadd.f32 %v7225_v55, %v8394_v56  ;;  %v2126_v18 = vpop.f32.mrb[59].mxu1 }
 0x69f   :  { %v2127_v47 = vadd.f32 %v8394_v56, %v2126_v18 }
 0x6a0   :  { %v2241_v39 = vpack.c.bf16 %v2135_v44, %v8401_v31 }
 0x6a1   :  { %v2240_v29 = vpack.c.bf16 %v2127_v47, %v2124_v22 }
 0x6a3   :  { %v7228_v42 = vpop.f32.mrb[60].mxu1 }
 0x6a4   :  { %v2139_v53 = vpop.f32.mrb[61].mxu1  ;;  %v8408_v14 = vadd.f32 %v7228_v42, %v8394_v56 }
 0x6a5   :  { %v7229_v43 = vpop.f32.mrb[62].mxu1  ;;  %v2140_v35 = vadd.f32 %v8394_v56, %v2139_v53 }
 0x6a6   :  { %v8411_v33 = vadd.f32 %v7229_v43, %v8394_v56  ;;  %v2142_v28 = vpop.f32.mrb[63].mxu1 }
 0x6a7   :  { %v2143_v36 = vadd.f32 %v8394_v56, %v2142_v28 }
 0x6a8   :  { %v2243_v40 = vpack.c.bf16 %v8411_v33, %v8408_v14 }
 0x6a9   :  { %v2242_v23 = vpack.c.bf16 %v2143_v36, %v2140_v35 }
 0x6ab   :  { %v7232_v12 = vpop.f32.mrb[64].mxu1 }
 0x6ac   :  { %v2155_v61 = vpop.f32.mrb[65].mxu1  ;;  %v8418_v54 = vadd.f32 %v7232_v12, %v8394_v56 }
 0x6ad   :  { %v7233_v21 = vpop.f32.mrb[66].mxu1  ;;  %v2156_v49 = vadd.f32 %v8394_v56, %v2155_v61 }
 0x6ae   :  { %v2167_v46 = vadd.f32 %v7233_v21, %v8394_v56  ;;  %v2158_v57 = vpop.f32.mrb[67].mxu1  ;;  %v7704_v21 = vld [vmem:[#allocation2 + $0x390] ss:$8 sps:$4 sm:$0xff]  }
 0x6af   :  { %v2159_v19 = vadd.f32 %v8394_v56, %v2158_v57  ;;  %v6197_v57 = vld [vmem:[#allocation5 + $0x138] ss:$0 sm:$0xff] }
 0x6b0   :  { %v2245_v52 = vpack.c.bf16 %v2167_v46, %v8418_v54  ;;  %v7958_v54 = vmov 0.0   ;;  %v8791_v46 = vld [vmem:[#allocation12_spill] sm:$0xff] }
 0x6b1   :  { %v2244_v4 = vpack.c.bf16 %v2159_v19, %v2156_v49  ;;  %v7613_v49 = vadd.f32 %v6197_v57, %v8359_v34  ;;  %v7615_v19 = vadd.f32 %v6197_v57, %v8363_v58  ;;  %v7614_v58 = vadd.f32 %v8361_v9, %v6197_v57 }
 0x6b3   :  { %v7236_v8 = vpop.f32.mrb[68].mxu1 }
 0x6b4   :  { %v2171_v2 = vpop.f32.mrb[69].mxu1  ;;  %v2180_v3 = vadd.f32 %v7236_v8, %v8394_v56  ;;  %v1411_v8 = vmax.f32 %v7613_v49, 0.0 }
 0x6b5   :  { %v7237_v0 = vpop.f32.mrb[70].mxu1  ;;  %v2172_v45 = vadd.f32 %v8394_v56, %v2171_v2 }
 0x6b6   :  { %v2183_v25 = vadd.f32 %v7237_v0, %v8394_v56  ;;  %v2174_v59 = vpop.f32.mrb[71].mxu1 }
 0x6b7   :  { %v2175_v17 = vadd.f32 %v8394_v56, %v2174_v59  ;;  %v1412_v59 = vmax.f32 %v7615_v19, 0.0  ;;  %v7706_v19 = vld [vmem:[#allocation2 + $0x420] ss:$8 sps:$4 sm:$0xff]  }
 0x6b8   :  { %v2247_v62 = vpack.c.bf16 %v2183_v25, %v2180_v3  ;;  %v2261_v3 = vpop.permute.xlu0 %2260 }
 0x6b9   :  { %v2246_v24 = vpack.c.bf16 %v2175_v17, %v2172_v45 }
 0x6bb   :  { %v7240_v13 = vpop.f32.mrb[72].mxu1  ;;  %6587 = vmatprep.subr.bf16.mxu0 %v2246_v24  ;;  %v7612_v24 = vadd.f32 %v8357_v15, %v6197_v57  ;;  %v1414_v15 = vmax.f32 %v7614_v58, 0.0 }
 0x6bc   :  { %v2187_v16 = vpop.f32.mrb[73].mxu1  ;;  %6588 = vmatpush3.bf16.msra.mxu0 %v2238_v6  ;;  %v2196_v63 = vadd.f32 %v7240_v13, %v8394_v56  ;;  %v2351_v13 = vadd.f32 %v1411_v8, %v1203_v10  ;;  %v7707_v8 = vld [vmem:[#allocation2 + $0x430] ss:$8 sps:$4 sm:$0xff]  }
 0x6bd   :  { %v7241_v7 = vpop.f32.mrb[74].mxu1  ;;  %6589 = vmatprep.subr.bf16.mxu0 %v2247_v62  ;;  %v2188_v11 = vadd.f32 %v8394_v56, %v2187_v16  ;;  %v2266_v62 = vpop.permute.xlu1 %2265 }
 0x6be   :  { %v2199_v37 = vadd.f32 %v7241_v7, %v8394_v56  ;;  %v2190_v32 = vpop.f32.mrb[75].mxu1  ;;  %v2352_v7 = vadd.f32 %v1412_v59, %v1204_v38  ;;  %v7712_v59 = vld [vmem:[#allocation2 + $0x480] ss:$8 sps:$4 sm:$0xff]  }
 0x6bf   :  { %v2191_v5 = vadd.f32 %v8394_v56, %v2190_v32 }
 0x6c0   :  { %v2249_v1 = vpack.c.bf16 %v2199_v37, %v2196_v63  ;;  %6590 = vmatpush3.bf16.msra.mxu0 %v2239_v50 }
 0x6c1   :  { %v2248_v26 = vpack.c.bf16 %v2191_v5, %v2188_v11  ;;  %v1413_v5 = vmax.f32 %v7612_v24, 0.0 }
 0x6c3   :  { %v7244_v48 = vpop.f32.mrb[76].mxu1  ;;  %6591 = vmatprep.subr.bf16.mxu0 %v2248_v26  ;;  %v2353_v51 = vadd.f32 %v1413_v5, %v1205_v41 }
 0x6c4   :  { %v2203_v55 = vpop.f32.mrb[77].mxu1  ;;  %6592 = vmatpush3.bf16.msra.mxu0 %v2240_v29  ;;  %v2212_v6 = vadd.f32 %v7244_v48, %v8394_v56 }
 0x6c5   :  { %v7245_v31 = vpop.f32.mrb[78].mxu1  ;;  %6593 = vmatprep.subr.bf16.mxu0 %v2249_v1  ;;  %v2204_v22 = vadd.f32 %v8394_v56, %v2203_v55  ;;  %v2271_v55 = vpop.permute.xlu0 %2270 }
 0x6c6   :  { %v2215_v44 = vadd.f32 %v7245_v31, %v8394_v56  ;;  %v2206_v18 = vpop.f32.mrb[79].mxu1 }
 0x6c7   :  { %v2207_v47 = vadd.f32 %v8394_v56, %v2206_v18  ;;  %v2276_v18 = vpop.permute.xlu1 %2275 }
 0x6c8   :  { %v2251_v42 = vpack.c.bf16 %v2215_v44, %v2212_v6  ;;  %6594 = vmatpush3.bf16.msra.mxu0 %v2241_v39  ;;  %v7699_v39 = vld [vmem:[#allocation2 + $0x380] ss:$8 sps:$4 sm:$0xff]  }
 0x6c9   :  { %v2250_v53 = vpack.c.bf16 %v2207_v47, %v2204_v22  ;;  %v2354_v47 = vadd.f32 %v1414_v15, %v1206_v30  ;;  %v6251_v30 = vld [vmem:[#allocation5 + $0x278] ss:$0 sm:$0xff] }
 0x6ca   :  { %v7716_v15 = vld [vmem:[#allocation2 + $0x4c0] ss:$8 sps:$4 sm:$0xff]  }
 0x6cb   :  { %v7248_v50 = vpop.f32.mrb[80].mxu1  ;;  %6595 = vmatprep.subr.bf16.mxu0 %v2250_v53 }
 0x6cc   :  { %v2219_v43 = vpop.f32.mrb[81].mxu1  ;;  %6596 = vmatpush3.bf16.msra.mxu0 %v2242_v23  ;;  %v2228_v29 = vadd.f32 %v7248_v50, %v8394_v56  ;;  %v7702_v23 = vld [vmem:[#allocation2 + $0x394] ss:$8 sps:$4 sm:$0xff]  }
 0x6cd   :  { %v7249_v14 = vpop.f32.mrb[82].mxu1  ;;  %6597 = vmatprep.subr.bf16.mxu0 %v2251_v42  ;;  %v2220_v35 = vadd.f32 %v8394_v56, %v2219_v43 }
 0x6ce   :  { %v2231_v33 = vadd.f32 %v7249_v14, %v8394_v56  ;;  %v2222_v28 = vpop.f32.mrb[83].mxu1 }
 0x6cf   :  { %v2223_v36 = vadd.f32 %v8394_v56, %v2222_v28  ;;  %v2462_v56 = vld [vmem:[#allocation2 + $0x400] sm:$0x3] }
 0x6d0   :  { %v2253_v12 = vpack.c.bf16 %v2231_v33, %v2228_v29  ;;  %6598 = vmatpush3.bf16.msra.mxu0 %v2243_v40  ;;  %7630 = vmatprep.subr.msk.bf16.mxu1 %vm131_vm1, %v2462_v56  ;;  %v2469_v40 = vsel %vm131_vm1, %v2462_v56, 0  ;;  %v2410_v33 = vld [vmem:[#allocation2 + $0x3f0] sm:$0x3]  ;;  %v2363_v28 = vld [vmem:[#allocation2 + $0x3e0] sm:$0x1] }
 0x6d1   :  { %v2252_v61 = vpack.c.bf16 %v2223_v36, %v2220_v35  ;;  %7265 = vmatpush3.bf16.msra.mxu1 %v2469_v40  ;;  %v2420_v20 = vsel %vm131_vm1, %v2410_v33, 0 }
 0x6d3   :  { %6599 = vmatprep.subr.bf16.mxu0 %v2252_v61 }
 0x6d4   :  { %6600 = vmatpush3.bf16.msra.mxu0 %v2244_v4  ;;  %7267 = vmatmul.mubr.msk.bf16.vlgmr.msra.gmra.mrb[84].mxu1 %vm124_vm2, %v8791_v46 }
 0x6d5   :  { %6601 = vmatprep.subr.bf16.mxu0 %v2253_v12 }
 0x6d8   :  { %6602 = vmatpush3.bf16.msra.mxu0 %v2245_v52 }
 0x6d9   :  { %7250 = vmatprep.subr.bf16.mxu0 %v7958_v54 }
 0x6db   :  { %2331 = vmatmul.mubr.bf16.vlgmr.msra.gmra.mrb[76].mxu0 %v7699_v39 }
 0x6dc   :  { %2338 = vmatprep.mubr.bf16.mxu0 %v7702_v23 }
 0x6e3   :  { %2339 = vmatmul.mubr.bf16.gmra.mrb[80].mxu0 %v7704_v21 }
 0x6e4   :  { %7254 = vmatprep.mubr.msk.bf16.mxu0 %vm7959_vm3, %v7958_v54 }
 0x7a7   :  { %v7268_v41 = vpop.f32.mrb[84].mxu1 }
 0x7a8   :  { %v2505_v35 = vpop.f32.mrb[85].mxu1  ;;  %v2514_v36 = vadd.f32 %v7268_v41, %v6251_v30 }
 0x7a9   :  { %v2506_v12 = vadd.f32 %v6251_v30, %v2505_v35  ;;  %v7269_v61 = vpop.f32.mrb[86].mxu1 }
 0x7aa   :  { %v2517_v39 = vadd.f32 %v7269_v61, %v6251_v30  ;;  %v2508_v23 = vpop.f32.mrb[87].mxu1 }
 0x7ab   :  { %v2509_v21 = vadd.f32 %v6251_v30, %v2508_v23 }
 0x7ac   :  { %v2521_v56 = vpack.c.bf16 %v2517_v39, %v2514_v36 }
 0x7ad   :  { %v2520_v40 = vpack.c.bf16 %v2509_v21, %v2506_v12 }
 0x7ae   :  { %v6603_v52 = vpop.f32.mrb[76].mxu0 }
 0x7af   :  { %v6604_v4 = vpop.f32.mrb[77].mxu0 }
 0x7b0   :  { %v6605_v2 = vadd.f32 %v6604_v4, %v6603_v52  ;;  %v6606_v0 = vpop.f32.mrb[78].mxu0 }
 0x7b1   :  { %v6607_v25 = vpop.f32.mrb[79].mxu0 }
 0x7b2   :  { %v2333_v45 = vadd.f32 %v6605_v2, %v2261_v3  ;;  %v6608_v17 = vadd.f32 %v6607_v25, %v6606_v0  ;;  %v7708_v2 = vld [vmem:[#allocation2 + $0x440] ss:$8 sps:$4 sm:$0xff]   ;;  %v7709_v0 = vld [vmem:[#allocation2 + $0x450] ss:$8 sps:$4 sm:$0xff]  }
 0x7b3   :  { %v7710_v3 = vld [vmem:[#allocation2 + $0x460] ss:$8 sps:$4 sm:$0xff]   ;;  %v7711_v25 = vld [vmem:[#allocation2 + $0x470] ss:$8 sps:$4 sm:$0xff]  }
 0x7b4   :  { %v2347_v16 = vmax.f32 %v2333_v45, 0.0  ;;  %v2336_v34 = vadd.f32 %v6608_v17, %v2266_v62  ;;  %v7713_v45 = vld [vmem:[#allocation2 + $0x490] ss:$8 sps:$4 sm:$0xff]  }
 0x7b5   :  { %7294 = vmatprep.mubr.msk.bf16.mxu1 %vm65_vm0, %v7713_v45 }
 0x7b6   :  { %v2355_v63 = vadd.f32 %v2351_v13, %v2347_v16  ;;  %v2348_v37 = vmax.f32 %v2336_v34, 0.0  ;;  %v6609_v32 = vpop.f32.mrb[80].mxu0  ;;  %v6254_v34 = vld [vmem:[#allocation5 + $0x280] ss:$0 sm:$0xff] }
 0x7b7   :  { %v6610_v11 = vpop.f32.mrb[81].mxu0 }
 0x7b8   :  { %v2356_v1 = vadd.f32 %v2352_v7, %v2348_v37  ;;  %v6611_v26 = vadd.f32 %v6610_v11, %v6609_v32  ;;  %v6612_v48 = vpop.f32.mrb[82].mxu0  ;;  %v2359_v27 = vmax.f32 %v2355_v63, 0.0 }
 0x7b9   :  { %v6613_v31 = vpop.f32.mrb[83].mxu0 }
 0x7ba   :  { %v2360_v10 = vmax.f32 %v2356_v1, 0.0  ;;  %v2341_v6 = vadd.f32 %v6611_v26, %v2271_v55  ;;  %v6614_v44 = vadd.f32 %v6613_v31, %v6612_v48  ;;  %v7714_v48 = vld [vmem:[#allocation2 + $0x4a0] ss:$8 sps:$4 sm:$0xff]   ;;  %v7715_v55 = vld [vmem:[#allocation2 + $0x4b0] ss:$8 sps:$4 sm:$0xff]  }
 0x7bb   :  { %v7717_v31 = vld [vmem:[#allocation2 + $0x4d0] ss:$8 sps:$4 sm:$0xff]  }
 0x7bc   :  { %v2349_v38 = vmax.f32 %v2341_v6, 0.0  ;;  %v2344_v9 = vadd.f32 %v6614_v44, %v2276_v18  ;;  %v2364_v22 = vpack.c.bf16 %v2360_v10, %v2359_v27  ;;  %v7718_v27 = vld [vmem:[#allocation2 + $0x4e0] ss:$8 sps:$4 sm:$0xff]   ;;  %v7719_v10 = vld [vmem:[#allocation2 + $0x4f0] ss:$8 sps:$4 sm:$0xff]  }
 0x7bd   :  { %v7720_v6 = vld [vmem:[#allocation2 + $0x500] ss:$8 sps:$4 sm:$0xff]   ;;  %v7721_v44 = vld [vmem:[#allocation2 + $0x510] ss:$8 sps:$4 sm:$0xff]  }
 0x7be   :  { %v2357_v42 = vadd.f32 %v2353_v51, %v2349_v38  ;;  %v2350_v53 = vmax.f32 %v2344_v9, 0.0  ;;  %7251 = vmatpush3.bf16.msra.mxu0 %v2364_v22  ;;  %v7722_v18 = vld [vmem:[#allocation2 + $0x520] ss:$8 sps:$4 sm:$0xff]   ;;  %v7723_v51 = vld [vmem:[#allocation2 + $0x530] ss:$8 sps:$4 sm:$0xff]  }
 0x7bf   :  { %7252 = vmatprep.subr.bf16.mxu0 %v7958_v54  ;;  %v7724_v38 = vld [vmem:[#allocation2 + $0x540] ss:$8 sps:$4 sm:$0xff]   ;;  %v7725_v9 = vld [vmem:[#allocation2 + $0x550] ss:$8 sps:$4 sm:$0xff]  }
 0x7c0   :  { %v2358_v50 = vadd.f32 %v2354_v47, %v2350_v53  ;;  %v2361_v43 = vmax.f32 %v2357_v42, 0.0  ;;  %v7726_v22 = vld [vmem:[#allocation2 + $0x560] ss:$8 sps:$4 sm:$0xff]   ;;  %v7727_v47 = vld [vmem:[#allocation2 + $0x570] ss:$8 sps:$4 sm:$0xff]   ;;  %v8484_v53 = vpop.permute.xlu0 %2788 }
 0x7c1   :  { %v7728_v42 = vld [vmem:[#allocation2 + $0x580] ss:$8 sps:$4 sm:$0xff]  }
 0x7c2   :  { %v2362_v14 = vmax.f32 %v2358_v50, 0.0  ;;  %v8486_v50 = vpop.permute.xlu1 %2793 }
 0x7c4   :  { %v2365_v29 = vpack.c.bf16 %v2362_v14, %v2361_v43  ;;  %v2709_v43 = vpop.permute.xlu0 %2708  ;;  %v7731_v14 = vld [vmem:[#allocation2 + $0x594] ss:$8 sps:$4 sm:$0xff]  }
 0x7c6   :  { %7253 = vmatpush3.bf16.msra.mxu0 %v2365_v29  ;;  %v2714_v29 = vpop.permute.xlu1 %2713 }
 0x7c7   :  { %7258 = vmatprep.subr.bf16.mxu0 %v7958_v54 }
 0x7c8   :  { %v8488_v33 = vpop.permute.xlu0 %2798 }
 0x7c9   :  { %7255 = vmatmul.mubr.msk.bf16.vlgmr.msra.gmra.mrb[84].mxu0 %vm65_vm0, %v2363_v28 }
 0x7ca   :  { %7259 = vmatpush3.bf16.msra.mxu0 %v2420_v20  ;;  %7260 = vmatprep.mubr.msk.bf16.mxu0 %vm7959_vm3, %v7958_v54  ;;  %v8490_v28 = vpop.permute.xlu1 %2803 }
 0x7cb   :  { %7270 = vmatprep.subr.bf16.mxu0 %v7705_v60 }
 0x7cc   :  { %v2719_v20 = vpop.permute.xlu0 %2718 }
 0x7d0   :  { %v8492_v41 = vpop.permute.xlu0 %2808 }
 0x7d4   :  { %v2729_v35 = vpop.permute.xlu0 %2728 }
 0x7d8   :  { %v8496_v12 = vpop.permute.xlu0 %2818 }
 0x7dc   :  { %v2739_v39 = vpop.permute.xlu0 %2738 }
 0x7e0   :  { %v8500_v21 = vpop.permute.xlu0 %2828 }
 0x89c   :  { %v2403_v46 = vpop.f32.mrb[84].mxu0 }
 0x89d   :  { %v2409_v57 = vpack.c.bf16 %v2403_v46, %v2403_v46  ;;  %v7256_v49 = vpop.f32.mrb[85].mxu0 }
 0x89e   :  { %v2406_v52 = vpop.f32.mrb[86].mxu0 }
 0x89f   :  { %v7257_v4 = vpop.f32.mrb[87].mxu0  ;;  %7261 = vmatmul.mubr.msk.bf16.vlgmr.msra.gmra.mrb[88].mxu0 %vm124_vm2, %v2409_v57 }
 0x8a0   :  { %7271 = vmatpush3.bf16.msra.mxu0 %v7705_v60  ;;  %7286 = vmatprep.mubr.bf16.mxu0 %v2520_v40  ;;  %v2724_v60 = vpop.permute.xlu1 %2723  ;;  %v2749_v40 = vpop.permute.xlu0 %2748 }
 0x8a1   :  { %7272 = vmatprep.subr.bf16.mxu0 %v7706_v19 }
 0x8a4   :  { %7273 = vmatpush3.bf16.msra.mxu0 %v7706_v19  ;;  %v8494_v30 = vpop.permute.xlu1 %2813  ;;  %v8504_v57 = vpop.permute.xlu0 %2838 }
 0x8a5   :  { %7274 = vmatprep.subr.bf16.mxu0 %v7707_v8 }
 0x8a8   :  { %7275 = vmatpush3.bf16.msra.mxu0 %v7707_v8  ;;  %v2734_v36 = vpop.permute.xlu1 %2733  ;;  %v2759_v52 = vpop.permute.xlu0 %2758 }
 0x8a9   :  { %7276 = vmatprep.subr.bf16.mxu0 %v7708_v2 }
 0x8ac   :  { %7277 = vmatpush3.bf16.msra.mxu0 %v7708_v2  ;;  %v8498_v61 = vpop.permute.xlu1 %2823 }
 0x8ad   :  { %7278 = vmatprep.subr.bf16.mxu0 %v7709_v0 }
 0x8b0   :  { %7279 = vmatpush3.bf16.msra.mxu0 %v7709_v0  ;;  %v2744_v23 = vpop.permute.xlu1 %2743 }
 0x8b1   :  { %7280 = vmatprep.subr.bf16.mxu0 %v7710_v3 }
 0x8b4   :  { %7281 = vmatpush3.bf16.msra.mxu0 %v7710_v3 }
 0x8b5   :  { %7282 = vmatprep.subr.bf16.mxu0 %v7711_v25 }
 0x8b8   :  { %7283 = vmatpush3.bf16.msra.mxu0 %v7711_v25 }
 0x8b9   :  { %7284 = vmatprep.subr.bf16.mxu0 %v7712_v59 }
 0x8bc   :  { %7285 = vmatpush3.bf16.msra.mxu0 %v7712_v59 }
 0x8bf   :  { %7287 = vmatmul.mubr.bf16.vlgmr.msra.gmra.mrb[92].mxu0 %v2521_v56  ;;  %v8502_v56 = vpop.permute.xlu1 %2833 }
 0x8c0   :  { %3587 = vmatprep.mubr.bf16.mxu0 %v7731_v14 }
 0x8c3   :  { %v2754_v46 = vpop.permute.xlu1 %2753 }
 0x8c7   :  { %v8506_v49 = vpop.permute.xlu1 %2843 }
 0x8cb   :  { %v2764_v8 = vpop.permute.xlu1 %2763 }
 0x972   :  { %v8467_v17 = vpop.f32.mrb[88].mxu0 }
 0x973   :  { %v7262_v62 = vpop.f32.mrb[89].mxu0 }
 0x974   :  { %v2459_v24 = vpop.f32.mrb[90].mxu0 }
 0x975   :  { %v7263_v13 = vpop.f32.mrb[91].mxu0 }
 0x976   :  { %v8514_v13 = vpop.permute.xlu0 %2848 }
 0x992   :  { %v7288_v16 = vpop.f32.mrb[92].mxu0 }
 0x993   :  { %v2625_v58 = vpop.f32.mrb[93].mxu0  ;;  %v2634_v63 = vadd.f32 %v7288_v16, %v6254_v34  ;;  %v8516_v16 = vpop.permute.xlu1 %2853 }
 0x994   :  { %v7289_v7 = vpop.f32.mrb[94].mxu0  ;;  %v2626_v11 = vadd.f32 %v6254_v34, %v2625_v58 }
 0x995   :  { %v2637_v37 = vadd.f32 %v7289_v7, %v6254_v34  ;;  %v2628_v32 = vpop.f32.mrb[95].mxu0 }
 0x996   :  { %v2629_v5 = vadd.f32 %v6254_v34, %v2628_v32 }
 0x997   :  { %v2673_v1 = vpack.c.bf16 %v2637_v37, %v2634_v63 }
 0x998   :  { %v2672_v26 = vpack.c.bf16 %v2629_v5, %v2626_v11 }
 0x99a   :  { %7290 = vmatprep.subr.bf16.mxu1 %v2672_v26 }
 0x99b   :  { %7291 = vmatpush3.bf16.msra.mxu1 %v2672_v26 }
 0x99c   :  { %7292 = vmatprep.subr.bf16.mxu1 %v2673_v1 }
 0x99f   :  { %7293 = vmatpush3.bf16.msra.mxu1 %v2673_v1  ;;  %v2769_v1 = vpop.permute.xlu0 %2768 }
 0x9a2   :  { %7295 = vmatmul.mubr.msk.bf16.vlgmr.msra.gmra.mrb[88].mxu1 %vm65_vm0, %v7714_v48  ;;  %v2774_v48 = vpop.permute.xlu1 %2773 }
 0x9a3   :  { %7298 = vmatprep.mubr.msk.bf16.mxu1 %vm65_vm0, %v7715_v55 }
 0x9aa   :  { %7299 = vmatmul.mubr.msk.bf16.gmra.mrb[92].mxu1 %vm65_vm0, %v7716_v15 }
 0x9ab   :  { %7302 = vmatprep.mubr.msk.bf16.mxu1 %vm65_vm0, %v7717_v31 }
 0x9b2   :  { %7303 = vmatmul.mubr.msk.bf16.gmra.mrb[96].mxu1 %vm65_vm0, %v7718_v27 }
 0x9b3   :  { %7306 = vmatprep.mubr.msk.bf16.mxu1 %vm65_vm0, %v7719_v10  ;;  %v8524_v10 = vpop.permute.xlu0 %2858 }
 0x9ba   :  { %7307 = vmatmul.mubr.msk.bf16.gmra.mrb[100].mxu1 %vm65_vm0, %v7720_v6 }
 0x9bb   :  { %7310 = vmatprep.mubr.msk.bf16.mxu1 %vm65_vm0, %v7721_v44 }
 0x9c2   :  { %7311 = vmatmul.mubr.msk.bf16.gmra.mrb[104].mxu1 %vm65_vm0, %v7722_v18 }
 0x9c3   :  { %7314 = vmatprep.mubr.msk.bf16.mxu1 %vm65_vm0, %v7723_v51  ;;  %v2864_v51 = vpop.permute.xlu1 %2863 }
 0x9ca   :  { %7315 = vmatmul.mubr.msk.bf16.gmra.mrb[108].mxu1 %vm65_vm0, %v7724_v38 }
 0x9cb   :  { %7318 = vmatprep.mubr.msk.bf16.mxu1 %vm65_vm0, %v7725_v9 }
 0x9d2   :  { %7319 = vmatmul.mubr.msk.bf16.gmra.mrb[112].mxu1 %vm65_vm0, %v7726_v22 }
 0x9d3   :  { %7322 = vmatprep.mubr.msk.bf16.mxu1 %vm65_vm0, %v7727_v47 }
 0x9da   :  { %7323 = vmatmul.mubr.msk.bf16.gmra.mrb[116].mxu1 %vm65_vm0, %v7728_v42 }
 0xa75   :  { %v7296_v19 = vpop.f32.mrb[88].mxu1 }
 0xa76   :  { %v3028_v4 = vpop.f32.mrb[89].mxu1  ;;  %v8508_v0 = vadd.f32 %v7296_v19, %v2719_v20 }
 0xa77   :  { %v7297_v2 = vpop.f32.mrb[90].mxu1  ;;  %v3029_v59 = vadd.f32 %v3028_v4, %v2709_v43  ;;  %v2779_v43 = vpop.permute.xlu0 %2778 }
 0xa78   :  { %v8510_v3 = vadd.f32 %v7297_v2, %v2724_v60  ;;  %v3031_v25 = vpop.f32.mrb[91].mxu1 }
 0xa79   :  { %v3032_v45 = vadd.f32 %v3031_v25, %v2714_v29  ;;  %v2784_v29 = vpop.permute.xlu1 %2783 }
 0xa7a   :  { %v3188_v62 = vpack.c.bf16 %v8510_v3, %v8508_v0 }
 0xa7b   :  { %v3187_v24 = vpack.c.bf16 %v3032_v45, %v3029_v59 }
 0xa7d   :  { %v7300_v34 = vpop.f32.mrb[92].mxu1 }
 0xa7e   :  { %v3044_v58 = vpop.f32.mrb[93].mxu1  ;;  %v8518_v63 = vadd.f32 %v7300_v34, %v2739_v39 }
 0xa7f   :  { %v7301_v7 = vpop.f32.mrb[94].mxu1  ;;  %v3045_v11 = vadd.f32 %v3044_v58, %v2729_v35 }
 0xa80   :  { %v8520_v37 = vadd.f32 %v7301_v7, %v2744_v23  ;;  %v3047_v32 = vpop.f32.mrb[95].mxu1 }
 0xa81   :  { %v3048_v5 = vadd.f32 %v3047_v32, %v2734_v36 }
 0xa82   :  { %v3190_v26 = vpack.c.bf16 %v8520_v37, %v8518_v63  ;;  %v7777_v37 = vld [vmem:[#allocation2 + $0x690] ss:$8 sps:$4 sm:$0xff]  }
 0xa83   :  { %v3189_v55 = vpack.c.bf16 %v3048_v5, %v3045_v11  ;;  %7326 = vmatprep.subr.bf16.mxu1 %v7777_v37 }
 0xa84   :  { %7327 = vmatpush3.bf16.msra.mxu1 %v7777_v37 }
 0xa85   :  { %v7304_v15 = vpop.f32.mrb[96].mxu1 }
 0xa86   :  { %v3060_v31 = vpop.f32.mrb[97].mxu1  ;;  %v8526_v6 = vadd.f32 %v7304_v15, %v2759_v52 }
 0xa87   :  { %v7305_v27 = vpop.f32.mrb[98].mxu1  ;;  %v3061_v38 = vadd.f32 %v3060_v31, %v2749_v40 }
 0xa88   :  { %v8528_v44 = vadd.f32 %v7305_v27, %v2764_v8  ;;  %v3063_v18 = vpop.f32.mrb[99].mxu1 }
 0xa89   :  { %v3064_v9 = vadd.f32 %v3063_v18, %v2754_v46 }
 0xa8a   :  { %v3192_v22 = vpack.c.bf16 %v8528_v44, %v8526_v6  ;;  %v7735_v6 = vld [vmem:[#allocation2 + $0x5b4] ss:$8 sps:$4 sm:$0xff]   ;;  %v7737_v44 = vld [vmem:[#allocation2 + $0x5b0] ss:$8 sps:$4 sm:$0xff]  }
 0xa8b   :  { %v3191_v47 = vpack.c.bf16 %v3064_v9, %v3061_v38 }
 0xa8d   :  { %v7308_v42 = vpop.f32.mrb[100].mxu1 }
 0xa8e   :  { %v3076_v14 = vpop.f32.mrb[101].mxu1  ;;  %v8532_v60 = vadd.f32 %v7308_v42, %v2779_v43  ;;  %v7741_v42 = vld [vmem:[#allocation2 + $0x5d4] ss:$8 sps:$4 sm:$0xff]   ;;  %v7743_v43 = vld [vmem:[#allocation2 + $0x5d0] ss:$8 sps:$4 sm:$0xff]  }
 0xa8f   :  { %v7309_v20 = vpop.f32.mrb[102].mxu1  ;;  %v3077_v39 = vadd.f32 %v3076_v14, %v2769_v1  ;;  %v7744_v14 = vld [vmem:[#allocation2 + $0x5e4] ss:$8 sps:$4 sm:$0xff]  }
 0xa90   :  { %v8534_v35 = vadd.f32 %v7309_v20, %v2784_v29  ;;  %v3079_v36 = vpop.f32.mrb[103].mxu1  ;;  %v7746_v29 = vld [vmem:[#allocation2 + $0x5e0] ss:$8 sps:$4 sm:$0xff]   ;;  %v7747_v20 = vld [vmem:[#allocation2 + $0x5f4] ss:$8 sps:$4 sm:$0xff]  }
 0xa91   :  { %v3080_v23 = vadd.f32 %v3079_v36, %v2774_v48  ;;  %v7752_v36 = vld [vmem:[#allocation2 + $0x600] ss:$8 sps:$4 sm:$0xff]  }
 0xa92   :  { %v3194_v40 = vpack.c.bf16 %v8534_v35, %v8532_v60  ;;  %v7749_v60 = vld [vmem:[#allocation2 + $0x5f0] ss:$8 sps:$4 sm:$0xff]   ;;  %v7750_v35 = vld [vmem:[#allocation2 + $0x604] ss:$8 sps:$4 sm:$0xff]  }
 0xa93   :  { %v3193_v46 = vpack.c.bf16 %v3080_v23, %v3077_v39  ;;  %v7753_v39 = vld [vmem:[#allocation2 + $0x614] ss:$8 sps:$4 sm:$0xff]   ;;  %v7755_v23 = vld [vmem:[#allocation2 + $0x610] ss:$8 sps:$4 sm:$0xff]  }
 0xa95   :  { %v7312_v19 = vpop.f32.mrb[104].mxu1 }
 0xa96   :  { %v3092_v52 = vpop.f32.mrb[105].mxu1  ;;  %v3101_v8 = vadd.f32 %v7312_v19, %v8488_v33  ;;  %v7759_v19 = vld [vmem:[#allocation2 + $0x634] ss:$8 sps:$4 sm:$0xff]  }
 0xa97   :  { %v7313_v4 = vpop.f32.mrb[106].mxu1  ;;  %v3093_v3 = vadd.f32 %v3092_v52, %v8484_v53  ;;  %v7761_v52 = vld [vmem:[#allocation2 + $0x630] ss:$8 sps:$4 sm:$0xff]  }
 0xa98   :  { %v3104_v2 = vadd.f32 %v7313_v4, %v8490_v28  ;;  %v3095_v0 = vpop.f32.mrb[107].mxu1  ;;  %v7762_v4 = vld [vmem:[#allocation2 + $0x644] ss:$8 sps:$4 sm:$0xff]  }
 0xa99   :  { %v3096_v25 = vadd.f32 %v3095_v0, %v8486_v50  ;;  %v7765_v0 = vld [vmem:[#allocation2 + $0x654] ss:$8 sps:$4 sm:$0xff]  }
 0xa9a   :  { %v3196_v59 = vpack.c.bf16 %v3104_v2, %v3101_v8  ;;  %v7780_v8 = vld [vmem:[#allocation2 + $0x6c0] ss:$8 sps:$4 sm:$0xff]  }
 0xa9b   :  { %v3195_v45 = vpack.c.bf16 %v3096_v25, %v3093_v3  ;;  %v7764_v2 = vld [vmem:[#allocation2 + $0x640] ss:$8 sps:$4 sm:$0xff]   ;;  %v7781_v3 = vld [vmem:[#allocation2 + $0x6d0] ss:$8 sps:$4 sm:$0xff]  }
 0xa9c   :  { %v7782_v25 = vld [vmem:[#allocation2 + $0x6e0] ss:$8 sps:$4 sm:$0xff]  }
 0xa9d   :  { %v7316_v34 = vpop.f32.mrb[108].mxu1  ;;  %6651 = vmatprep.subr.bf16.mxu0 %v3195_v45  ;;  %v7768_v45 = vld [vmem:[#allocation2 + $0x664] ss:$8 sps:$4 sm:$0xff]  }
 0xa9e   :  { %v3108_v58 = vpop.f32.mrb[109].mxu1  ;;  %6652 = vmatpush3.bf16.msra.mxu0 %v3187_v24  ;;  %v3117_v32 = vadd.f32 %v7316_v34, %v8496_v12  ;;  %v7783_v34 = vld [vmem:[#allocation2 + $0x6f0] ss:$8 sps:$4 sm:$0xff]  }
 0xa9f   :  { %v7317_v7 = vpop.f32.mrb[110].mxu1  ;;  %6653 = vmatprep.subr.bf16.mxu0 %v3196_v59  ;;  %v3109_v28 = vadd.f32 %v3108_v58, %v8492_v41  ;;  %v7767_v59 = vld [vmem:[#allocation2 + $0x650] ss:$8 sps:$4 sm:$0xff]   ;;  %v7784_v58 = vld [vmem:[#allocation2 + $0x700] ss:$8 sps:$4 sm:$0xff]  }
 0xaa0   :  { %v3120_v11 = vadd.f32 %v7317_v7, %v8498_v61  ;;  %v3111_v33 = vpop.f32.mrb[111].mxu1  ;;  %v7770_v7 = vld [vmem:[#allocation2 + $0x660] ss:$8 sps:$4 sm:$0xff]  }
 0xaa1   :  { %v3112_v5 = vadd.f32 %v3111_v33, %v8494_v30  ;;  %v7774_v33 = vld [vmem:[#allocation2 + $0x684] ss:$8 sps:$4 sm:$0xff]  }
 0xaa2   :  { %v3198_v53 = vpack.c.bf16 %v3120_v11, %v3117_v32  ;;  %6654 = vmatpush3.bf16.msra.mxu0 %v3188_v62  ;;  %v7771_v32 = vld [vmem:[#allocation2 + $0x674] ss:$8 sps:$4 sm:$0xff]   ;;  %v7773_v11 = vld [vmem:[#allocation2 + $0x670] ss:$8 sps:$4 sm:$0xff]  }
 0xaa3   :  { %v3197_v50 = vpack.c.bf16 %v3112_v5, %v3109_v28  ;;  %v7776_v28 = vld [vmem:[#allocation2 + $0x680] ss:$8 sps:$4 sm:$0xff]   ;;  %v7785_v5 = vld [vmem:[#allocation2 + $0x710] ss:$8 sps:$4 sm:$0xff]  }
 0xaa5   :  { %v7320_v1 = vpop.f32.mrb[112].mxu1  ;;  %6655 = vmatprep.subr.bf16.mxu0 %v3197_v50 }
 0xaa6   :  { %v3124_v48 = vpop.f32.mrb[113].mxu1  ;;  %6656 = vmatpush3.bf16.msra.mxu0 %v3189_v55  ;;  %v3133_v24 = vadd.f32 %v7320_v1, %v8504_v57 }
 0xaa7   :  { %v7321_v15 = vpop.f32.mrb[114].mxu1  ;;  %6657 = vmatprep.subr.bf16.mxu0 %v3198_v53  ;;  %v3125_v61 = vadd.f32 %v3124_v48, %v8500_v21 }
 0xaa8   :  { %v3136_v12 = vadd.f32 %v7321_v15, %v8506_v49  ;;  %v3127_v31 = vpop.f32.mrb[115].mxu1  ;;  %v3238_v15 = vpop.permute.xlu0 %3237 }
 0xaa9   :  { %v3128_v41 = vadd.f32 %v3127_v31, %v8502_v56 }
 0xaaa   :  { %v3200_v27 = vpack.c.bf16 %v3136_v12, %v3133_v24  ;;  %6658 = vmatpush3.bf16.msra.mxu0 %v3190_v26  ;;  %v7778_v26 = vld [vmem:[#allocation2 + $0x6a0] ss:$8 sps:$4 sm:$0xff]  }
 0xaab   :  { %v3199_v30 = vpack.c.bf16 %v3128_v41, %v3125_v61  ;;  %7328 = vmatprep.subr.bf16.mxu1 %v7778_v26  ;;  %v3243_v61 = vpop.permute.xlu1 %3242 }
 0xaac   :  { %7329 = vmatpush3.bf16.msra.mxu1 %v7778_v26 }
 0xaad   :  { %v7324_v62 = vpop.f32.mrb[116].mxu1  ;;  %6659 = vmatprep.subr.bf16.mxu0 %v3199_v30 }
 0xaae   :  { %v3140_v55 = vpop.f32.mrb[117].mxu1  ;;  %6660 = vmatpush3.bf16.msra.mxu0 %v3191_v47  ;;  %v3149_v57 = vadd.f32 %v7324_v62, %v8524_v10  ;;  %v7729_v10 = vld [vmem:[#allocation2 + $0x590] ss:$8 sps:$4 sm:$0xff]   ;;  %v7740_v47 = vld [vmem:[#allocation2 + $0x5c0] ss:$8 sps:$4 sm:$0xff]  }
 0xaaf   :  { %v7325_v18 = vpop.f32.mrb[118].mxu1  ;;  %6661 = vmatprep.subr.bf16.mxu0 %v3200_v27  ;;  %v3141_v21 = vadd.f32 %v3140_v55, %v8514_v13  ;;  %v7732_v13 = vld [vmem:[#allocation2 + $0x5a4] ss:$8 sps:$4 sm:$0xff]  }
 0xab0   :  { %v3152_v49 = vadd.f32 %v7325_v18, %v2864_v51  ;;  %v3143_v38 = vpop.f32.mrb[119].mxu1  ;;  %v7779_v51 = vld [vmem:[#allocation2 + $0x6b0] ss:$8 sps:$4 sm:$0xff]  }
 0xab1   :  { %v3144_v56 = vadd.f32 %v3143_v38, %v8516_v16  ;;  %7330 = vmatprep.subr.bf16.mxu1 %v7779_v51  ;;  %v7734_v16 = vld [vmem:[#allocation2 + $0x5a0] ss:$8 sps:$4 sm:$0xff]   ;;  %v3248_v38 = vpop.permute.xlu0 %3247 }
 0xab2   :  { %v3202_v9 = vpack.c.bf16 %v3152_v49, %v3149_v57  ;;  %6662 = vmatpush3.bf16.msra.mxu0 %v3192_v22  ;;  %7331 = vmatpush3.bf16.msra.mxu1 %v7779_v51  ;;  %v7738_v22 = vld [vmem:[#allocation2 + $0x5c4] ss:$8 sps:$4 sm:$0xff]  }
 0xab3   :  { %v3201_v63 = vpack.c.bf16 %v3144_v56, %v3141_v21  ;;  %7332 = vmatprep.subr.bf16.mxu1 %v7780_v8 }
 0xab5   :  { %6663 = vmatprep.subr.bf16.mxu0 %v3201_v63  ;;  %v3253_v63 = vpop.permute.xlu1 %3252 }
 0xab6   :  { %6664 = vmatpush3.bf16.msra.mxu0 %v3193_v46  ;;  %v7758_v46 = vld [vmem:[#allocation2 + $0x620] ss:$8 sps:$4 sm:$0xff]   ;;  %7333 = vmatpush3.bf16.msra.mxu1 %v7780_v8 }
 0xab7   :  { %6665 = vmatprep.subr.bf16.mxu0 %v3202_v9  ;;  %7334 = vmatprep.subr.bf16.mxu1 %v7781_v3 }
 0xaba   :  { %6666 = vmatpush3.bf16.msra.mxu0 %v3194_v40  ;;  %v7756_v40 = vld [vmem:[#allocation2 + $0x624] ss:$8 sps:$4 sm:$0xff]   ;;  %7335 = vmatpush3.bf16.msra.mxu1 %v7781_v3 }
 0xabb   :  { %7336 = vmatprep.subr.bf16.mxu1 %v7782_v25 }
 0xabd   :  { %3588 = vmatmul.mubr.bf16.vlgmr.msra.gmra.mrb[96].mxu0 %v7729_v10 }
 0xabe   :  { %3595 = vmatprep.mubr.bf16.mxu0 %v7732_v13  ;;  %7337 = vmatpush3.bf16.msra.mxu1 %v7782_v25 }
 0xabf   :  { %7338 = vmatprep.subr.bf16.mxu1 %v7783_v34 }
 0xac2   :  { %7339 = vmatpush3.bf16.msra.mxu1 %v7783_v34 }
 0xac3   :  { %7340 = vmatprep.subr.bf16.mxu1 %v7784_v58 }
 0xac5   :  { %3596 = vmatmul.mubr.bf16.gmra.mrb[100].mxu0 %v7734_v16 }
 0xac6   :  { %3603 = vmatprep.mubr.bf16.mxu0 %v7735_v6  ;;  %7341 = vmatpush3.bf16.msra.mxu1 %v7784_v58 }
 0xac7   :  { %7374 = vmatprep.subr.bf16.mxu1 %v7785_v5 }
 0xacd   :  { %3604 = vmatmul.mubr.bf16.gmra.mrb[104].mxu0 %v7737_v44 }
 0xace   :  { %3611 = vmatprep.mubr.bf16.mxu0 %v7738_v22  ;;  %v7786_v22 = vld [vmem:[#allocation2 + $0x720] ss:$8 sps:$4 sm:$0xff]  }
 0xad5   :  { %3612 = vmatmul.mubr.bf16.gmra.mrb[108].mxu0 %v7740_v47  ;;  %v3258_v47 = vpop.permute.xlu0 %3257 }
 0xad6   :  { %3619 = vmatprep.mubr.bf16.mxu0 %v7741_v42 }
 0xadd   :  { %3620 = vmatmul.mubr.bf16.gmra.mrb[112].mxu0 %v7743_v43 }
 0xade   :  { %3627 = vmatprep.mubr.bf16.mxu0 %v7744_v14 }
 0xae5   :  { %3628 = vmatmul.mubr.bf16.gmra.mrb[116].mxu0 %v7746_v29  ;;  %v3263_v29 = vpop.permute.xlu1 %3262 }
 0xae6   :  { %3635 = vmatprep.mubr.bf16.mxu0 %v7747_v20 }
 0xae9   :  { %v3273_v3 = vpop.permute.xlu1 %3272 }
 0xaed   :  { %3636 = vmatmul.mubr.bf16.gmra.mrb[120].mxu0 %v7749_v60  ;;  %v7787_v60 = vld [vmem:[#allocation2 + $0x730] ss:$8 sps:$4 sm:$0xff]  }
 0xaee   :  { %3643 = vmatprep.mubr.bf16.mxu0 %v7750_v35 }
 0xaf5   :  { %3644 = vmatmul.mubr.bf16.gmra.mrb[124].mxu0 %v7752_v36 }
 0xaf6   :  { %3651 = vmatprep.mubr.bf16.mxu0 %v7753_v39 }
 0xafd   :  { %3652 = vmatmul.mubr.bf16.gmra.mrb[128].mxu0 %v7755_v23 }
 0xafe   :  { %3659 = vmatprep.mubr.bf16.mxu0 %v7756_v40 }
 0xb05   :  { %3660 = vmatmul.mubr.bf16.gmra.mrb[132].mxu0 %v7758_v46 }
 0xb06   :  { %3667 = vmatprep.mubr.bf16.mxu0 %v7759_v19 }
 0xb0d   :  { %3668 = vmatmul.mubr.bf16.gmra.mrb[136].mxu0 %v7761_v52  ;;  %v7788_v52 = vld [vmem:[#allocation2 + $0x740] ss:$8 sps:$4 sm:$0xff]  }
 0xb0e   :  { %3675 = vmatprep.mubr.bf16.mxu0 %v7762_v4  ;;  %v3268_v4 = vpop.permute.xlu0 %3267 }
 0xb15   :  { %3676 = vmatmul.mubr.bf16.gmra.mrb[140].mxu0 %v7764_v2 }
 0xb16   :  { %3683 = vmatprep.mubr.bf16.mxu0 %v7765_v0 }
 0xb1d   :  { %3684 = vmatmul.mubr.bf16.gmra.mrb[144].mxu0 %v7767_v59  ;;  %v7789_v59 = vld [vmem:[#allocation2 + $0x750] ss:$8 sps:$4 sm:$0xff]  }
 0xb1e   :  { %3691 = vmatprep.mubr.bf16.mxu0 %v7768_v45 }
 0xb25   :  { %3692 = vmatmul.mubr.bf16.gmra.mrb[148].mxu0 %v7770_v7 }
 0xb26   :  { %3699 = vmatprep.mubr.bf16.mxu0 %v7771_v32 }
 0xb2d   :  { %3700 = vmatmul.mubr.bf16.gmra.mrb[152].mxu0 %v7773_v11 }
 0xb2e   :  { %3707 = vmatprep.mubr.bf16.mxu0 %v7774_v33 }
 0xb35   :  { %3708 = vmatmul.mubr.bf16.gmra.mrb[156].mxu0 %v7776_v28  ;;  %v7790_v28 = vld [vmem:[#allocation2 + $0x760] ss:$8 sps:$4 sm:$0xff]  }
 0xb90   :  { %v6667_v53 = vpop.f32.mrb[96].mxu0 }
 0xb91   :  { %v6668_v50 = vpop.f32.mrb[97].mxu0 }
 0xb92   :  { %v6669_v1 = vadd.f32 %v6668_v50, %v6667_v53  ;;  %v6670_v48 = vpop.f32.mrb[98].mxu0 }
 0xb93   :  { %v6671_v24 = vpop.f32.mrb[99].mxu0 }
 0xb94   :  { %v3590_v12 = vadd.f32 %v6669_v1, %v3238_v15  ;;  %v6672_v31 = vadd.f32 %v6671_v24, %v6670_v48  ;;  %v3283_v48 = vpop.permute.xlu1 %3282  ;;  %v7791_v24 = vld [vmem:[#allocation2 + $0x770] ss:$8 sps:$4 sm:$0xff]  }
 0xb96   :  { %v3593_v41 = vadd.f32 %v6672_v31, %v3243_v61  ;;  %v3716_v27 = vmax.f32 %v3590_v12, 0.0 }
 0xb98   :  { %v3717_v30 = vmax.f32 %v3593_v41, 0.0  ;;  %v6673_v62 = vpop.f32.mrb[100].mxu0 }
 0xb99   :  { %v6674_v55 = vpop.f32.mrb[101].mxu0 }
 0xb9a   :  { %v6675_v18 = vadd.f32 %v6674_v55, %v6673_v62  ;;  %v6676_v57 = vpop.f32.mrb[102].mxu0  ;;  %v8562_v49 = vpack.c.bf16 %v3717_v30, %v3716_v27  ;;  %v7792_v55 = vld [vmem:[#allocation2 + $0x780] ss:$8 sps:$4 sm:$0xff]  }
 0xb9b   :  { %v6677_v21 = vpop.f32.mrb[103].mxu0 }
 0xb9c   :  { %v3598_v56 = vadd.f32 %v6675_v18, %v3248_v38  ;;  %v6678_v9 = vadd.f32 %v6677_v21, %v6676_v57  ;;  %7342 = vmatprep.mubr.bf16.mxu1 %v8562_v49 }
 0xb9e   :  { %v3601_v37 = vadd.f32 %v6678_v9, %v3253_v63  ;;  %v3718_v26 = vmax.f32 %v3598_v56, 0.0  ;;  %v3293_v56 = vpop.permute.xlu1 %3292 }
 0xba0   :  { %v3719_v10 = vmax.f32 %v3601_v37, 0.0  ;;  %v6679_v51 = vpop.f32.mrb[104].mxu0 }
 0xba1   :  { %v6680_v13 = vpop.f32.mrb[105].mxu0 }
 0xba2   :  { %v8565_v16 = vpack.c.bf16 %v3719_v10, %v3718_v26  ;;  %v6681_v6 = vadd.f32 %v6680_v13, %v6679_v51  ;;  %v6682_v44 = vpop.f32.mrb[106].mxu0 }
 0xba3   :  { %v6683_v42 = vpop.f32.mrb[107].mxu0 }
 0xba4   :  { %v3606_v43 = vadd.f32 %v6681_v6, %v3258_v47  ;;  %v6684_v14 = vadd.f32 %v6683_v42, %v6682_v44  ;;  %7343 = vmatmul.mubr.bf16.vlgmr.msra.gmra.mrb[120].mxu1 %v8565_v16 }
 0xba5   :  { %7375 = vmatpush3.bf16.msra.mxu1 %v7785_v5  ;;  %v3278_v5 = vpop.permute.xlu0 %3277 }
 0xba6   :  { %v3609_v20 = vadd.f32 %v6684_v14, %v3263_v29  ;;  %7376 = vmatprep.subr.bf16.mxu1 %v7786_v22  ;;  %v3720_v35 = vmax.f32 %v3606_v43, 0.0  ;;  %v3303_v43 = vpop.permute.xlu1 %3302 }
 0xba8   :  { %v3721_v36 = vmax.f32 %v3609_v20, 0.0  ;;  %v6685_v39 = vpop.f32.mrb[108].mxu0 }
 0xba9   :  { %v6686_v23 = vpop.f32.mrb[109].mxu0  ;;  %7377 = vmatpush3.bf16.msra.mxu1 %v7786_v22  ;;  %v3288_v18 = vpop.permute.xlu0 %3287 }
 0xbaa   :  { %v6687_v40 = vadd.f32 %v6686_v23, %v6685_v39  ;;  %v6688_v46 = vpop.f32.mrb[110].mxu0  ;;  %v8568_v19 = vpack.c.bf16 %v3721_v36, %v3720_v35  ;;  %7378 = vmatprep.subr.bf16.mxu1 %v7787_v60 }
 0xbab   :  { %v6689_v8 = vpop.f32.mrb[111].mxu0 }
 0xbac   :  { %v3614_v2 = vadd.f32 %v6687_v40, %v3268_v4  ;;  %v6690_v0 = vadd.f32 %v6689_v8, %v6688_v46  ;;  %7346 = vmatprep.mubr.bf16.mxu1 %v8568_v19  ;;  %v3313_v8 = vpop.permute.xlu1 %3312 }
 0xbad   :  { %7379 = vmatpush3.bf16.msra.mxu1 %v7787_v60  ;;  %v3298_v44 = vpop.permute.xlu0 %3297 }
 0xbae   :  { %v3617_v25 = vadd.f32 %v6690_v0, %v3273_v3  ;;  %7380 = vmatprep.subr.bf16.mxu1 %v7788_v52  ;;  %v3722_v45 = vmax.f32 %v3614_v2, 0.0 }
 0xbb0   :  { %v3723_v34 = vmax.f32 %v3617_v25, 0.0  ;;  %v6691_v58 = vpop.f32.mrb[112].mxu0 }
 0xbb1   :  { %v6692_v7 = vpop.f32.mrb[113].mxu0  ;;  %7381 = vmatpush3.bf16.msra.mxu1 %v7788_v52  ;;  %v3308_v40 = vpop.permute.xlu0 %3307 }
 0xbb2   :  { %v6693_v32 = vadd.f32 %v6692_v7, %v6691_v58  ;;  %v6694_v11 = vpop.f32.mrb[114].mxu0  ;;  %v8571_v33 = vpack.c.bf16 %v3723_v34, %v3722_v45  ;;  %7382 = vmatprep.subr.bf16.mxu1 %v7789_v59 }
 0xbb3   :  { %v6695_v53 = vpop.f32.mrb[115].mxu0 }
 0xbb4   :  { %v3622_v50 = vadd.f32 %v6693_v32, %v3278_v5  ;;  %v6696_v1 = vadd.f32 %v6695_v53, %v6694_v11  ;;  %7347 = vmatmul.mubr.bf16.gmra.mrb[124].mxu1 %v8571_v33  ;;  %v3323_v5 = vpop.permute.xlu1 %3322 }
 0xbb5   :  { %7383 = vmatpush3.bf16.msra.mxu1 %v7789_v59  ;;  %v3318_v7 = vpop.permute.xlu0 %3317 }
 0xbb6   :  { %v3625_v15 = vadd.f32 %v6696_v1, %v3283_v48  ;;  %7384 = vmatprep.subr.bf16.mxu1 %v7790_v28  ;;  %v3724_v12 = vmax.f32 %v3622_v50, 0.0 }
 0xbb8   :  { %v3725_v31 = vmax.f32 %v3625_v15, 0.0  ;;  %v6697_v61 = vpop.f32.mrb[116].mxu0 }
 0xbb9   :  { %v6698_v41 = vpop.f32.mrb[117].mxu0  ;;  %7385 = vmatpush3.bf16.msra.mxu1 %v7790_v28 }
 0xbba   :  { %v6699_v27 = vadd.f32 %v6698_v41, %v6697_v61  ;;  %v6700_v30 = vpop.f32.mrb[118].mxu0  ;;  %v8574_v62 = vpack.c.bf16 %v3725_v31, %v3724_v12  ;;  %7386 = vmatprep.subr.bf16.mxu1 %v7791_v24  ;;  %v3328_v61 = vpop.permute.xlu0 %3327 }
 0xbbb   :  { %v6701_v57 = vpop.f32.mrb[119].mxu0 }
 0xbbc   :  { %v3630_v38 = vadd.f32 %v6699_v27, %v3288_v18  ;;  %v6702_v21 = vadd.f32 %v6701_v57, %v6700_v30  ;;  %7350 = vmatprep.mubr.bf16.mxu1 %v8574_v62 }
 0xbbd   :  { %7387 = vmatpush3.bf16.msra.mxu1 %v7791_v24 }
 0xbbe   :  { %v3633_v9 = vadd.f32 %v6702_v21, %v3293_v56  ;;  %7388 = vmatprep.subr.bf16.mxu1 %v7792_v55  ;;  %v3726_v63 = vmax.f32 %v3630_v38, 0.0 }
 0xbc0   :  { %v3727_v37 = vmax.f32 %v3633_v9, 0.0  ;;  %v6703_v26 = vpop.f32.mrb[120].mxu0 }
 0xbc1   :  { %v6704_v10 = vpop.f32.mrb[121].mxu0  ;;  %7389 = vmatpush3.bf16.msra.mxu1 %v7792_v55  ;;  %v3333_v55 = vpop.permute.xlu1 %3332 }
 0xbc2   :  { %v6705_v51 = vadd.f32 %v6704_v10, %v6703_v26  ;;  %v6706_v13 = vpop.f32.mrb[122].mxu0  ;;  %v8577_v6 = vpack.c.bf16 %v3727_v37, %v3726_v63  ;;  %v3338_v26 = vpop.permute.xlu0 %3337 }
 0xbc3   :  { %v6707_v22 = vpop.f32.mrb[123].mxu0 }
 0xbc4   :  { %v3638_v47 = vadd.f32 %v6705_v51, %v3298_v44  ;;  %v6708_v42 = vadd.f32 %v6707_v22, %v6706_v13  ;;  %7351 = vmatmul.mubr.bf16.gmra.mrb[128].mxu1 %v8577_v6 }
 0xbc5   :  { %v3343_v44 = vpop.permute.xlu1 %3342 }
 0xbc6   :  { %v3641_v14 = vadd.f32 %v6708_v42, %v3303_v43  ;;  %v3728_v29 = vmax.f32 %v3638_v47, 0.0 }
 0xbc8   :  { %v3729_v20 = vmax.f32 %v3641_v14, 0.0  ;;  %v6709_v60 = vpop.f32.mrb[124].mxu0 }
 0xbc9   :  { %v6710_v35 = vpop.f32.mrb[125].mxu0 }
 0xbca   :  { %v6711_v36 = vadd.f32 %v6710_v35, %v6709_v60  ;;  %v6712_v39 = vpop.f32.mrb[126].mxu0  ;;  %v8580_v23 = vpack.c.bf16 %v3729_v20, %v3728_v29  ;;  %v3348_v35 = vpop.permute.xlu0 %3347 }
 0xbcb   :  { %v6713_v46 = vpop.f32.mrb[127].mxu0 }
 0xbcc   :  { %v3646_v52 = vadd.f32 %v6711_v36, %v3308_v40  ;;  %v6714_v4 = vadd.f32 %v6713_v46, %v6712_v39  ;;  %7354 = vmatprep.mubr.bf16.mxu1 %v8580_v23  ;;  %v3353_v46 = vpop.permute.xlu1 %3352 }
 0xbce   :  { %v3649_v2 = vadd.f32 %v6714_v4, %v3313_v8  ;;  %v3730_v0 = vmax.f32 %v3646_v52, 0.0 }
 0xbd0   :  { %v3731_v3 = vmax.f32 %v3649_v2, 0.0  ;;  %v6715_v25 = vpop.f32.mrb[128].mxu0 }
 0xbd1   :  { %v6716_v59 = vpop.f32.mrb[129].mxu0 }
 0xbd2   :  { %v6717_v45 = vadd.f32 %v6716_v59, %v6715_v25  ;;  %v6718_v34 = vpop.f32.mrb[130].mxu0  ;;  %v8583_v58 = vpack.c.bf16 %v3731_v3, %v3730_v0 }
 0xbd3   :  { %v6719_v32 = vpop.f32.mrb[131].mxu0 }
 0xbd4   :  { %v3654_v11 = vadd.f32 %v6717_v45, %v3318_v7  ;;  %v6720_v28 = vadd.f32 %v6719_v32, %v6718_v34  ;;  %7355 = vmatmul.mubr.bf16.gmra.mrb[132].mxu1 %v8583_v58  ;;  %v3358_v45 = vpop.permute.xlu0 %3357 }
 0xbd6   :  { %v3657_v53 = vadd.f32 %v6720_v28, %v3323_v5  ;;  %v3732_v50 = vmax.f32 %v3654_v11, 0.0  ;;  %v3363_v11 = vpop.permute.xlu1 %3362 }
 0xbd8   :  { %v3733_v1 = vmax.f32 %v3657_v53, 0.0  ;;  %v6721_v48 = vpop.f32.mrb[132].mxu0 }
 0xbd9   :  { %v6722_v15 = vpop.f32.mrb[133].mxu0 }
 0xbda   :  { %v6723_v24 = vadd.f32 %v6722_v15, %v6721_v48  ;;  %v6724_v12 = vpop.f32.mrb[134].mxu0  ;;  %v8586_v31 = vpack.c.bf16 %v3733_v1, %v3732_v50 }
 0xbdb   :  { %v6725_v41 = vpop.f32.mrb[135].mxu0 }
 0xbdc   :  { %v3662_v27 = vadd.f32 %v6723_v24, %v3328_v61  ;;  %v6726_v30 = vadd.f32 %v6725_v41, %v6724_v12  ;;  %7358 = vmatprep.mubr.bf16.mxu1 %v8586_v31  ;;  %v3368_v12 = vpop.permute.xlu0 %3367 }
 0xbde   :  { %v3665_v18 = vadd.f32 %v6726_v30, %v3333_v55  ;;  %v3734_v57 = vmax.f32 %v3662_v27, 0.0  ;;  %v3373_v30 = vpop.permute.xlu1 %3372 }
 0xbe0   :  { %v3735_v38 = vmax.f32 %v3665_v18, 0.0  ;;  %v6727_v21 = vpop.f32.mrb[136].mxu0 }
 0xbe1   :  { %v6728_v56 = vpop.f32.mrb[137].mxu0 }
 0xbe2   :  { %v6729_v9 = vadd.f32 %v6728_v56, %v6727_v21  ;;  %v6730_v63 = vpop.f32.mrb[138].mxu0  ;;  %v8589_v37 = vpack.c.bf16 %v3735_v38, %v3734_v57 }
 0xbe3   :  { %v6731_v10 = vpop.f32.mrb[139].mxu0 }
 0xbe4   :  { %v3670_v51 = vadd.f32 %v6729_v9, %v3338_v26  ;;  %v6732_v13 = vadd.f32 %v6731_v10, %v6730_v63  ;;  %7359 = vmatmul.mubr.bf16.gmra.mrb[136].mxu1 %v8589_v37  ;;  %v3378_v26 = vpop.permute.xlu0 %3377 }
 0xbe6   :  { %v3673_v22 = vadd.f32 %v6732_v13, %v3343_v44  ;;  %v3736_v47 = vmax.f32 %v3670_v51, 0.0  ;;  %v3383_v44 = vpop.permute.xlu1 %3382 }
 0xbe8   :  { %v3737_v42 = vmax.f32 %v3673_v22, 0.0  ;;  %v6733_v43 = vpop.f32.mrb[140].mxu0 }
 0xbe9   :  { %v6734_v14 = vpop.f32.mrb[141].mxu0 }
 0xbea   :  { %v6735_v29 = vadd.f32 %v6734_v14, %v6733_v43  ;;  %v6736_v20 = vpop.f32.mrb[142].mxu0  ;;  %v8592_v60 = vpack.c.bf16 %v3737_v42, %v3736_v47 }
 0xbeb   :  { %v6737_v36 = vpop.f32.mrb[143].mxu0 }
 0xbec   :  { %v3678_v39 = vadd.f32 %v6735_v29, %v3348_v35  ;;  %v6738_v40 = vadd.f32 %v6737_v36, %v6736_v20  ;;  %7362 = vmatprep.mubr.bf16.mxu1 %v8592_v60  ;;  %v3388_v36 = vpop.permute.xlu0 %3387 }
 0xbee   :  { %v3681_v52 = vadd.f32 %v6738_v40, %v3353_v46  ;;  %v3738_v4 = vmax.f32 %v3678_v39, 0.0 }
 0xbf0   :  { %v3739_v8 = vmax.f32 %v3681_v52, 0.0  ;;  %v6739_v2 = vpop.f32.mrb[144].mxu0  ;;  %v3393_v52 = vpop.permute.xlu1 %3392 }
 0xbf1   :  { %v6740_v0 = vpop.f32.mrb[145].mxu0 }
 0xbf2   :  { %v6741_v3 = vadd.f32 %v6740_v0, %v6739_v2  ;;  %v6742_v25 = vpop.f32.mrb[146].mxu0  ;;  %v8595_v59 = vpack.c.bf16 %v3739_v8, %v3738_v4 }
 0xbf3   :  { %v6743_v34 = vpop.f32.mrb[147].mxu0 }
 0xbf4   :  { %v3686_v7 = vadd.f32 %v6741_v3, %v3358_v45  ;;  %v6744_v32 = vadd.f32 %v6743_v34, %v6742_v25  ;;  %7363 = vmatmul.mubr.bf16.gmra.mrb[140].mxu1 %v8595_v59 }
 0xbf6   :  { %v3689_v28 = vadd.f32 %v6744_v32, %v3363_v11  ;;  %v3740_v5 = vmax.f32 %v3686_v7, 0.0  ;;  %v7795_v7 = vld [vmem:[#allocation2 + $0x794] ss:$8 sps:$4 sm:$0xff]  }
 0xbf7   :  { %v7798_v32 = vld [vmem:[#allocation2 + $0x814] ss:$8 sps:$4 sm:$0xff]   ;;  %4390 = vmatprep.mubr.bf16.mxu0 %v7795_v7 }
 0xbf8   :  { %v3741_v53 = vmax.f32 %v3689_v28, 0.0  ;;  %v6745_v50 = vpop.f32.mrb[148].mxu0 }
 0xbf9   :  { %v6746_v1 = vpop.f32.mrb[149].mxu0 }
 0xbfa   :  { %v6747_v48 = vadd.f32 %v6746_v1, %v6745_v50  ;;  %v6748_v15 = vpop.f32.mrb[150].mxu0  ;;  %v3760_v24 = vpack.c.bf16 %v3741_v53, %v3740_v5 }
 0xbfb   :  { %v6749_v61 = vpop.f32.mrb[151].mxu0 }
 0xbfc   :  { %v3694_v41 = vadd.f32 %v6747_v48, %v3368_v12  ;;  %v6750_v27 = vadd.f32 %v6749_v61, %v6748_v15  ;;  %7366 = vmatprep.mubr.bf16.mxu1 %v3760_v24 }
 0xbfe   :  { %v3697_v55 = vadd.f32 %v6750_v27, %v3373_v30  ;;  %v3742_v18 = vmax.f32 %v3694_v41, 0.0 }
 0xc00   :  { %v3743_v57 = vmax.f32 %v3697_v55, 0.0  ;;  %v6751_v38 = vpop.f32.mrb[152].mxu0 }
 0xc01   :  { %v6752_v21 = vpop.f32.mrb[153].mxu0 }
 0xc02   :  { %v6753_v56 = vadd.f32 %v6752_v21, %v6751_v38  ;;  %v6754_v9 = vpop.f32.mrb[154].mxu0  ;;  %v3761_v63 = vpack.c.bf16 %v3743_v57, %v3742_v18 }
 0xc03   :  { %v6755_v10 = vpop.f32.mrb[155].mxu0 }
 0xc04   :  { %v3702_v51 = vadd.f32 %v6753_v56, %v3378_v26  ;;  %v6756_v13 = vadd.f32 %v6755_v10, %v6754_v9  ;;  %7367 = vmatmul.mubr.bf16.gmra.mrb[144].mxu1 %v3761_v63 }
 0xc06   :  { %v3705_v22 = vadd.f32 %v6756_v13, %v3383_v44  ;;  %v3744_v47 = vmax.f32 %v3702_v51, 0.0 }
 0xc08   :  { %v3745_v42 = vmax.f32 %v3705_v22, 0.0  ;;  %v6757_v43 = vpop.f32.mrb[156].mxu0 }
 0xc09   :  { %v6758_v14 = vpop.f32.mrb[157].mxu0 }
 0xc0a   :  { %v6759_v29 = vadd.f32 %v6758_v14, %v6757_v43  ;;  %v6760_v20 = vpop.f32.mrb[158].mxu0  ;;  %v3762_v35 = vpack.c.bf16 %v3745_v42, %v3744_v47 }
 0xc0b   :  { %v6761_v39 = vpop.f32.mrb[159].mxu0 }
 0xc0c   :  { %v3710_v40 = vadd.f32 %v6759_v29, %v3388_v36  ;;  %v6762_v46 = vadd.f32 %v6761_v39, %v6760_v20  ;;  %7370 = vmatprep.mubr.bf16.mxu1 %v3762_v35 }
 0xc0e   :  { %v3713_v4 = vadd.f32 %v6762_v46, %v3393_v52  ;;  %v3746_v8 = vmax.f32 %v3710_v40, 0.0 }
 0xc10   :  { %v3747_v2 = vmax.f32 %v3713_v4, 0.0 }
 0xc12   :  { %v3763_v0 = vpack.c.bf16 %v3747_v2, %v3746_v8 }
 0xc14   :  { %7371 = vmatmul.mubr.bf16.gmra.mrb[148].mxu1 %v3763_v0 }
 0xc15   :  { %7390 = vmatprep.mubr.bf16.mxu1 %v8562_v49 }
 0xc1c   :  { %7391 = vmatmul.mubr.bf16.vlgmr.msra.gmra.mrb[152].mxu1 %v8565_v16 }
 0xc1d   :  { %7394 = vmatprep.mubr.bf16.mxu1 %v8568_v19 }
 0xc24   :  { %7395 = vmatmul.mubr.bf16.gmra.mrb[156].mxu1 %v8571_v33 }
 0xc25   :  { %7398 = vmatprep.mubr.bf16.mxu1 %v8574_v62 }
 0xc2c   :  { %7399 = vmatmul.mubr.bf16.gmra.mrb[160].mxu1 %v8577_v6 }
 0xc2d   :  { %7402 = vmatprep.mubr.bf16.mxu1 %v8580_v23 }
 0xc34   :  { %7403 = vmatmul.mubr.bf16.gmra.mrb[164].mxu1 %v8583_v58 }
 0xc35   :  { %7406 = vmatprep.mubr.bf16.mxu1 %v8586_v31 }
 0xc3c   :  { %7407 = vmatmul.mubr.bf16.gmra.mrb[168].mxu1 %v8589_v37 }
 0xc3d   :  { %7410 = vmatprep.mubr.bf16.mxu1 %v8592_v60 }
 0xc44   :  { %7411 = vmatmul.mubr.bf16.gmra.mrb[172].mxu1 %v8595_v59 }
 0xc45   :  { %7414 = vmatprep.mubr.bf16.mxu1 %v3760_v24 }
 0xc4c   :  { %7415 = vmatmul.mubr.bf16.gmra.mrb[176].mxu1 %v3761_v63 }
 0xc4d   :  { %7418 = vmatprep.mubr.bf16.mxu1 %v3762_v35 }
 0xc54   :  { %7419 = vmatmul.mubr.bf16.gmra.mrb[180].mxu1 %v3763_v0 }
 0xc55   :  { %4583 = vmatprep.mubr.bf16.mxu1 %v7798_v32 }
 0xc77   :  { %v7344_v49 = vpop.f32.mrb[120].mxu1 }
 0xc78   :  { %v3862_v16 = vpop.f32.mrb[121].mxu1 }
 0xc79   :  { %v7345_v19 = vpop.f32.mrb[122].mxu1 }
 0xc7a   :  { %v3865_v33 = vpop.f32.mrb[123].mxu1 }
 0xc87   :  { %v7348_v62 = vpop.f32.mrb[124].mxu1 }
 0xc88   :  { %v3878_v6 = vpop.f32.mrb[125].mxu1 }
 0xc89   :  { %v7349_v23 = vpop.f32.mrb[126].mxu1 }
 0xc8a   :  { %v3881_v58 = vpop.f32.mrb[127].mxu1 }
 0xc97   :  { %v7352_v3 = vpop.f32.mrb[128].mxu1 }
 0xc98   :  { %v3894_v31 = vpop.f32.mrb[129].mxu1 }
 0xc99   :  { %v7353_v25 = vpop.f32.mrb[130].mxu1 }
 0xc9a   :  { %v3897_v37 = vpop.f32.mrb[131].mxu1 }
 0xca7   :  { %v8610_v45 = vpop.f32.mrb[132].mxu1 }
 0xca8   :  { %v8612_v60 = vpop.f32.mrb[133].mxu1 }
 0xca9   :  { %v7357_v59 = vpop.f32.mrb[134].mxu1 }
 0xcaa   :  { %v3913_v34 = vpop.f32.mrb[135].mxu1 }
 0xcb7   :  { %v8614_v11 = vpop.f32.mrb[136].mxu1 }
 0xcb8   :  { %v8616_v28 = vpop.f32.mrb[137].mxu1 }
 0xcb9   :  { %v8618_v5 = vpop.f32.mrb[138].mxu1 }
 0xcba   :  { %v8620_v53 = vpop.f32.mrb[139].mxu1 }
 0xcc7   :  { %v8622_v50 = vpop.f32.mrb[140].mxu1 }
 0xcc8   :  { %v8624_v1 = vpop.f32.mrb[141].mxu1 }
 0xcc9   :  { %v8626_v48 = vpop.f32.mrb[142].mxu1 }
 0xcca   :  { %v8628_v15 = vpop.f32.mrb[143].mxu1 }
 0xcd7   :  { %v8630_v24 = vpop.f32.mrb[144].mxu1 }
 0xcd8   :  { %v8632_v12 = vpop.f32.mrb[145].mxu1 }
 0xcd9   :  { %v8634_v61 = vpop.f32.mrb[146].mxu1 }
 0xcda   :  { %v8636_v41 = vpop.f32.mrb[147].mxu1 }
 0xce7   :  { %v8638_v27 = vpop.f32.mrb[148].mxu1 }
 0xce8   :  { %v8640_v30 = vpop.f32.mrb[149].mxu1 }
 0xce9   :  { %v8642_v55 = vpop.f32.mrb[150].mxu1 }
 0xcea   :  { %v8644_v18 = vpop.f32.mrb[151].mxu1 }
 0xcef   :  { %v7392_v57 = vpop.f32.mrb[152].mxu1 }
 0xcf0   :  { %v4216_v38 = vmax.f32 %v7344_v49, %v7392_v57  ;;  %v4087_v21 = vpop.f32.mrb[153].mxu1 }
 0xcf1   :  { %v4214_v56 = vmax.f32 %v3862_v16, %v4087_v21  ;;  %v7393_v9 = vpop.f32.mrb[154].mxu1 }
 0xcf2   :  { %v4217_v63 = vmax.f32 %v7345_v19, %v7393_v9  ;;  %v4090_v26 = vpop.f32.mrb[155].mxu1 }
 0xcf3   :  { %v4215_v10 = vmax.f32 %v3865_v33, %v4090_v26 }
 0xcf4   :  { %v4263_v51 = vpack.c.bf16 %v4217_v63, %v4216_v38 }
 0xcf5   :  { %v4262_v13 = vpack.c.bf16 %v4215_v10, %v4214_v56 }
 0xcf7   :  { %v7396_v44 = vpop.f32.mrb[156].mxu1 }
 0xcf8   :  { %v4220_v22 = vmax.f32 %v7348_v62, %v7396_v44  ;;  %v4103_v47 = vpop.f32.mrb[157].mxu1 }
 0xcf9   :  { %v4218_v42 = vmax.f32 %v3878_v6, %v4103_v47  ;;  %v7397_v43 = vpop.f32.mrb[158].mxu1 }
 0xcfa   :  { %v4221_v14 = vmax.f32 %v7349_v23, %v7397_v43  ;;  %v4106_v29 = vpop.f32.mrb[159].mxu1 }
 0xcfb   :  { %v4219_v20 = vmax.f32 %v3881_v58, %v4106_v29 }
 0xcfc   :  { %v8646_v35 = vpack.c.bf16 %v4221_v14, %v4220_v22 }
 0xcfd   :  { %v4264_v36 = vpack.c.bf16 %v4219_v20, %v4218_v42 }
 0xcff   :  { %v7400_v39 = vpop.f32.mrb[160].mxu1 }
 0xd00   :  { %v4224_v40 = vmax.f32 %v7352_v3, %v7400_v39  ;;  %v4119_v46 = vpop.f32.mrb[161].mxu1 }
 0xd01   :  { %v4222_v52 = vmax.f32 %v3894_v31, %v4119_v46  ;;  %v7401_v4 = vpop.f32.mrb[162].mxu1  ;;  %v7801_v46 = vld [vmem:[#allocation2 + $0x824] ss:$8 sps:$4 sm:$0xff]  }
 0xd02   :  { %v4225_v8 = vmax.f32 %v7353_v25, %v7401_v4  ;;  %v4122_v2 = vpop.f32.mrb[163].mxu1  ;;  %v7804_v4 = vld [vmem:[#allocation2 + $0x820] ss:$8 sps:$4 sm:$0xff]  }
 0xd03   :  { %v4223_v0 = vmax.f32 %v3897_v37, %v4122_v2  ;;  %v7807_v2 = vld [vmem:[#allocation2 + $0x834] ss:$8 sps:$4 sm:$0xff]  }
 0xd04   :  { %v8648_v49 = vpack.c.bf16 %v4225_v8, %v4224_v40  ;;  %v7805_v8 = vld [vmem:[#allocation2 + $0x7b4] ss:$8 sps:$4 sm:$0xff]  }
 0xd05   :  { %v4266_v16 = vpack.c.bf16 %v4223_v0, %v4222_v52  ;;  %v7803_v52 = vld [vmem:[#allocation2 + $0x7a0] ss:$8 sps:$4 sm:$0xff]   ;;  %v7809_v0 = vld [vmem:[#allocation2 + $0x7b0] ss:$8 sps:$4 sm:$0xff]  }
 0xd07   :  { %v7404_v19 = vpop.f32.mrb[164].mxu1 }
 0xd08   :  { %v4228_v33 = vmax.f32 %v8610_v45, %v7404_v19  ;;  %v4135_v62 = vpop.f32.mrb[165].mxu1  ;;  %v7813_v19 = vld [vmem:[#allocation2 + $0x844] ss:$8 sps:$4 sm:$0xff]  }
 0xd09   :  { %v4226_v6 = vmax.f32 %v8612_v60, %v4135_v62  ;;  %v7405_v23 = vpop.f32.mrb[166].mxu1  ;;  %v7816_v62 = vld [vmem:[#allocation2 + $0x840] ss:$8 sps:$4 sm:$0xff]  }
 0xd0a   :  { %v4229_v58 = vmax.f32 %v7357_v59, %v7405_v23  ;;  %v4138_v7 = vpop.f32.mrb[167].mxu1  ;;  %v7819_v23 = vld [vmem:[#allocation2 + $0x854] ss:$8 sps:$4 sm:$0xff]  }
 0xd0b   :  { %v4227_v32 = vmax.f32 %v3913_v34, %v4138_v7  ;;  %v7822_v7 = vld [vmem:[#allocation2 + $0x850] ss:$8 sps:$4 sm:$0xff]  }
 0xd0c   :  { %v8652_v3 = vpack.c.bf16 %v4229_v58, %v4228_v33  ;;  %v7815_v33 = vld [vmem:[#allocation2 + $0x7c0] ss:$8 sps:$4 sm:$0xff]   ;;  %v7821_v58 = vld [vmem:[#allocation2 + $0x7d0] ss:$8 sps:$4 sm:$0xff]  }
 0xd0d   :  { %v8654_v31 = vpack.c.bf16 %v4227_v32, %v4226_v6  ;;  %v7817_v6 = vld [vmem:[#allocation2 + $0x7d4] ss:$8 sps:$4 sm:$0xff]   ;;  %v7823_v32 = vld [vmem:[#allocation2 + $0x7e4] ss:$8 sps:$4 sm:$0xff]  }
 0xd0f   :  { %v7408_v25 = vpop.f32.mrb[168].mxu1 }
 0xd10   :  { %v4232_v37 = vmax.f32 %v8614_v11, %v7408_v25  ;;  %v4151_v57 = vpop.f32.mrb[169].mxu1  ;;  %v7828_v25 = vld [vmem:[#allocation2 + $0x860] ss:$8 sps:$4 sm:$0xff]  }
 0xd11   :  { %v4230_v38 = vmax.f32 %v8616_v28, %v4151_v57  ;;  %v7409_v21 = vpop.f32.mrb[170].mxu1  ;;  %v7831_v57 = vld [vmem:[#allocation2 + $0x874] ss:$8 sps:$4 sm:$0xff]  }
 0xd12   :  { %v4233_v45 = vmax.f32 %v8618_v5, %v7409_v21  ;;  %v4154_v56 = vpop.f32.mrb[171].mxu1  ;;  %v7834_v21 = vld [vmem:[#allocation2 + $0x870] ss:$8 sps:$4 sm:$0xff]  }
 0xd13   :  { %v4231_v60 = vmax.f32 %v8620_v53, %v4154_v56  ;;  %v7837_v56 = vld [vmem:[#allocation2 + $0x884] ss:$8 sps:$4 sm:$0xff]  }
 0xd14   :  { %v4271_v9 = vpack.c.bf16 %v4233_v45, %v4232_v37  ;;  %v7829_v37 = vld [vmem:[#allocation2 + $0x7f4] ss:$8 sps:$4 sm:$0xff]   ;;  %v7835_v45 = vld [vmem:[#allocation2 + $0x804] ss:$8 sps:$4 sm:$0xff]  }
 0xd15   :  { %v4270_v59 = vpack.c.bf16 %v4231_v60, %v4230_v38  ;;  %v7833_v38 = vld [vmem:[#allocation2 + $0x7f0] ss:$8 sps:$4 sm:$0xff]   ;;  %v7839_v60 = vld [vmem:[#allocation2 + $0x800] ss:$8 sps:$4 sm:$0xff]  }
 0xd17   :  { %v7412_v63 = vpop.f32.mrb[172].mxu1  ;;  %6811 = vmatprep.subr.bf16.mxu0 %v4270_v59  ;;  %6875 = vmatprep.subr.bf16.mxu1 %v4270_v59  ;;  %v7842_v59 = vld [vmem:[#allocation2 + $0x8a0] ss:$8 sps:$4 sm:$0xff]  }
 0xd18   :  { %v4236_v34 = vmax.f32 %v8622_v50, %v7412_v63  ;;  %v4167_v26 = vpop.f32.mrb[173].mxu1  ;;  %6812 = vmatpush3.bf16.msra.mxu0 %v4262_v13  ;;  %6876 = vmatpush3.bf16.msra.mxu1 %v4262_v13  ;;  %v7843_v63 = vld [vmem:[#allocation2 + $0x8b0] ss:$8 sps:$4 sm:$0xff]  }
 0xd19   :  { %v4234_v11 = vmax.f32 %v8624_v1, %v4167_v26  ;;  %v7413_v10 = vpop.f32.mrb[174].mxu1  ;;  %6813 = vmatprep.subr.bf16.mxu0 %v4271_v9  ;;  %6877 = vmatprep.subr.bf16.mxu1 %v4271_v9  ;;  %v7840_v9 = vld [vmem:[#allocation2 + $0x880] ss:$8 sps:$4 sm:$0xff]   ;;  %v7845_v26 = vld [vmem:[#allocation2 + $0x8d0] ss:$8 sps:$4 sm:$0xff]  }
 0xd1a   :  { %v4237_v28 = vmax.f32 %v8626_v48, %v7413_v10  ;;  %v4170_v5 = vpop.f32.mrb[175].mxu1 }
 0xd1b   :  { %v4235_v53 = vmax.f32 %v8628_v15, %v4170_v5 }
 0xd1c   :  { %v4273_v44 = vpack.c.bf16 %v4237_v28, %v4236_v34  ;;  %6814 = vmatpush3.bf16.msra.mxu0 %v4263_v51  ;;  %6878 = vmatpush3.bf16.msra.mxu1 %v4263_v51  ;;  %v7844_v34 = vld [vmem:[#allocation2 + $0x8c0] ss:$8 sps:$4 sm:$0xff]  }
 0xd1d   :  { %v4272_v22 = vpack.c.bf16 %v4235_v53, %v4234_v11  ;;  %v7846_v11 = vld [vmem:[#allocation2 + $0x8e0] ss:$8 sps:$4 sm:$0xff]  }
 0xd1f   :  { %v7416_v47 = vpop.f32.mrb[176].mxu1  ;;  %6815 = vmatprep.subr.bf16.mxu0 %v4272_v22  ;;  %6879 = vmatprep.subr.bf16.mxu1 %v4272_v22 }
 0xd20   :  { %v4240_v50 = vmax.f32 %v8630_v24, %v7416_v47  ;;  %v4183_v13 = vpop.f32.mrb[177].mxu1  ;;  %6816 = vmatpush3.bf16.msra.mxu0 %v4264_v36  ;;  %6880 = vmatpush3.bf16.msra.mxu1 %v4264_v36 }
 0xd21   :  { %v4238_v1 = vmax.f32 %v8632_v12, %v4183_v13  ;;  %v7417_v42 = vpop.f32.mrb[178].mxu1  ;;  %6817 = vmatprep.subr.bf16.mxu0 %v4273_v44  ;;  %6881 = vmatprep.subr.bf16.mxu1 %v4273_v44 }
 0xd22   :  { %v4241_v48 = vmax.f32 %v8634_v61, %v7417_v42  ;;  %v4186_v15 = vpop.f32.mrb[179].mxu1 }
 0xd23   :  { %v4239_v43 = vmax.f32 %v8636_v41, %v4186_v15 }
 0xd24   :  { %v4275_v51 = vpack.c.bf16 %v4241_v48, %v4240_v50  ;;  %6818 = vmatpush3.bf16.msra.mxu0 %v8646_v35  ;;  %6882 = vmatpush3.bf16.msra.mxu1 %v8646_v35 }
 0xd25   :  { %v4274_v14 = vpack.c.bf16 %v4239_v43, %v4238_v1 }
 0xd27   :  { %v7420_v24 = vpop.f32.mrb[180].mxu1  ;;  %6819 = vmatprep.subr.bf16.mxu0 %v4274_v14  ;;  %6883 = vmatprep.subr.bf16.mxu1 %v4274_v14 }
 0xd28   :  { %v4244_v29 = vmax.f32 %v8638_v27, %v7420_v24  ;;  %v4199_v12 = vpop.f32.mrb[181].mxu1  ;;  %6820 = vmatpush3.bf16.msra.mxu0 %v4266_v16  ;;  %6884 = vmatpush3.bf16.msra.mxu1 %v4266_v16  ;;  %v7841_v27 = vld [vmem:[#allocation2 + $0x890] ss:$8 sps:$4 sm:$0xff]   ;;  %v7811_v16 = vld [vmem:[#allocation2 + $0x7c4] ss:$8 sps:$4 sm:$0xff]  }
 0xd29   :  { %v4242_v20 = vmax.f32 %v8640_v30, %v4199_v12  ;;  %v7421_v61 = vpop.f32.mrb[182].mxu1  ;;  %6821 = vmatprep.subr.bf16.mxu0 %v4275_v51  ;;  %6885 = vmatprep.subr.bf16.mxu1 %v4275_v51  ;;  %v7793_v30 = vld [vmem:[#allocation2 + $0x790] ss:$8 sps:$4 sm:$0xff]  }
 0xd2a   :  { %v4245_v41 = vmax.f32 %v8642_v55, %v7421_v61  ;;  %v4202_v36 = vpop.f32.mrb[183].mxu1  ;;  %v7796_v55 = vld [vmem:[#allocation2 + $0x810] ss:$8 sps:$4 sm:$0xff]  }
 0xd2b   :  { %v4243_v39 = vmax.f32 %v8644_v18, %v4202_v36  ;;  %v7799_v18 = vld [vmem:[#allocation2 + $0x7a4] ss:$8 sps:$4 sm:$0xff]  }
 0xd2c   :  { %v4277_v35 = vpack.c.bf16 %v4245_v41, %v4244_v29  ;;  %6822 = vmatpush3.bf16.msra.mxu0 %v8648_v49  ;;  %6886 = vmatpush3.bf16.msra.mxu1 %v8648_v49  ;;  %v7810_v49 = vld [vmem:[#allocation2 + $0x830] ss:$8 sps:$4 sm:$0xff]  }
 0xd2d   :  { %v4276_v40 = vpack.c.bf16 %v4243_v39, %v4242_v20 }
 0xd2f   :  { %6823 = vmatprep.subr.bf16.mxu0 %v4276_v40  ;;  %6887 = vmatprep.subr.bf16.mxu1 %v4276_v40 }
 0xd30   :  { %6824 = vmatpush3.bf16.msra.mxu0 %v8654_v31  ;;  %6888 = vmatpush3.bf16.msra.mxu1 %v8654_v31  ;;  %v7827_v31 = vld [vmem:[#allocation2 + $0x7e0] ss:$8 sps:$4 sm:$0xff]  }
 0xd31   :  { %6825 = vmatprep.subr.bf16.mxu0 %v4277_v35  ;;  %6889 = vmatprep.subr.bf16.mxu1 %v4277_v35 }
 0xd34   :  { %6826 = vmatpush3.bf16.msra.mxu0 %v8652_v3  ;;  %6890 = vmatpush3.bf16.msra.mxu1 %v8652_v3  ;;  %v7825_v3 = vld [vmem:[#allocation2 + $0x864] ss:$8 sps:$4 sm:$0xff]  }
 0xd35   :  { %7422 = vmatprep.subr.bf16.mxu0 %v7841_v27  ;;  %7446 = vmatprep.subr.bf16.mxu1 %v7845_v26 }
 0xd37   :  { %4391 = vmatmul.mubr.bf16.vlgmr.msra.gmra.mrb[160].mxu0 %v7793_v30  ;;  %4584 = vmatmul.mubr.bf16.vlgmr.msra.gmra.mrb[184].mxu1 %v7796_v55 }
 0xd38   :  { %4398 = vmatprep.mubr.bf16.mxu0 %v7799_v18  ;;  %4591 = vmatprep.mubr.bf16.mxu1 %v7801_v46 }
 0xd39   :  { %7423 = vmatpush3.bf16.msra.mxu0 %v7841_v27  ;;  %7447 = vmatpush3.bf16.msra.mxu1 %v7845_v26 }
 0xd3a   :  { %7424 = vmatprep.subr.bf16.mxu0 %v7842_v59  ;;  %7448 = vmatprep.subr.bf16.mxu1 %v7846_v11 }
 0xd3d   :  { %7425 = vmatpush3.bf16.msra.mxu0 %v7842_v59  ;;  %7449 = vmatpush3.bf16.msra.mxu1 %v7846_v11 }
 0xd3e   :  { %7426 = vmatprep.subr.bf16.mxu0 %v7843_v63 }
 0xd3f   :  { %4399 = vmatmul.mubr.bf16.gmra.mrb[164].mxu0 %v7803_v52  ;;  %4592 = vmatmul.mubr.bf16.gmra.mrb[188].mxu1 %v7804_v4 }
 0xd40   :  { %4406 = vmatprep.mubr.bf16.mxu0 %v7805_v8  ;;  %4599 = vmatprep.mubr.bf16.mxu1 %v7807_v2 }
 0xd41   :  { %7427 = vmatpush3.bf16.msra.mxu0 %v7843_v63 }
 0xd42   :  { %7428 = vmatprep.subr.bf16.mxu0 %v7844_v34 }
 0xd45   :  { %7429 = vmatpush3.bf16.msra.mxu0 %v7844_v34 }
 0xd47   :  { %4407 = vmatmul.mubr.bf16.gmra.mrb[168].mxu0 %v7809_v0  ;;  %4600 = vmatmul.mubr.bf16.gmra.mrb[192].mxu1 %v7810_v49 }
 0xd48   :  { %4414 = vmatprep.mubr.bf16.mxu0 %v7811_v16  ;;  %4607 = vmatprep.mubr.bf16.mxu1 %v7813_v19 }
 0xd4f   :  { %4415 = vmatmul.mubr.bf16.gmra.mrb[172].mxu0 %v7815_v33  ;;  %4608 = vmatmul.mubr.bf16.gmra.mrb[196].mxu1 %v7816_v62 }
 0xd50   :  { %4422 = vmatprep.mubr.bf16.mxu0 %v7817_v6  ;;  %4615 = vmatprep.mubr.bf16.mxu1 %v7819_v23 }
 0xd57   :  { %4423 = vmatmul.mubr.bf16.gmra.mrb[176].mxu0 %v7821_v58  ;;  %4616 = vmatmul.mubr.bf16.gmra.mrb[200].mxu1 %v7822_v7 }
 0xd58   :  { %4430 = vmatprep.mubr.bf16.mxu0 %v7823_v32  ;;  %4623 = vmatprep.mubr.bf16.mxu1 %v7825_v3 }
 0xd5f   :  { %4431 = vmatmul.mubr.bf16.gmra.mrb[180].mxu0 %v7827_v31  ;;  %4624 = vmatmul.mubr.bf16.gmra.mrb[204].mxu1 %v7828_v25 }
 0xd60   :  { %4438 = vmatprep.mubr.bf16.mxu0 %v7829_v37  ;;  %4631 = vmatprep.mubr.bf16.mxu1 %v7831_v57 }
 0xd67   :  { %4439 = vmatmul.mubr.bf16.gmra.mrb[184].mxu0 %v7833_v38  ;;  %4632 = vmatmul.mubr.bf16.gmra.mrb[208].mxu1 %v7834_v21 }
 0xd68   :  { %4446 = vmatprep.mubr.bf16.mxu0 %v7835_v45  ;;  %4639 = vmatprep.mubr.bf16.mxu1 %v7837_v56 }
 0xd6f   :  { %4447 = vmatmul.mubr.bf16.gmra.mrb[188].mxu0 %v7839_v60  ;;  %4640 = vmatmul.mubr.bf16.gmra.mrb[212].mxu1 %v7840_v9 }
 0xe0a   :  { %v6827_v10 = vpop.f32.mrb[160].mxu0  ;;  %v6891_v28 = vpop.f32.mrb[184].mxu1 }
 0xe0b   :  { %v6828_v5 = vpop.f32.mrb[161].mxu0  ;;  %v6892_v53 = vpop.f32.mrb[185].mxu1 }
 0xe0c   :  { %v6829_v44 = vadd.f32 %v6828_v5, %v6827_v10  ;;  %v6893_v22 = vadd.f32 %v6892_v53, %v6891_v28  ;;  %v6830_v47 = vpop.f32.mrb[162].mxu0  ;;  %v6894_v50 = vpop.f32.mrb[186].mxu1 }
 0xe0d   :  { %v6831_v13 = vpop.f32.mrb[163].mxu0  ;;  %v6895_v1 = vpop.f32.mrb[187].mxu1 }
 0xe0e   :  { %v4648_v42 = vmax.f32 %v6829_v44, %v6893_v22  ;;  %v6832_v48 = vadd.f32 %v6831_v13, %v6830_v47  ;;  %v6896_v15 = vadd.f32 %v6895_v1, %v6894_v50 }
 0xe10   :  { %v4649_v43 = vmax.f32 %v6832_v48, %v6896_v15 }
 0xe12   :  { %v4664_v51 = vpack.c.bf16 %v4649_v43, %v4648_v42  ;;  %v6833_v14 = vpop.f32.mrb[164].mxu0  ;;  %v6897_v24 = vpop.f32.mrb[188].mxu1 }
 0xe13   :  { %v6834_v29 = vpop.f32.mrb[165].mxu0  ;;  %v6898_v12 = vpop.f32.mrb[189].mxu1 }
 0xe14   :  { %v6835_v20 = vadd.f32 %v6834_v29, %v6833_v14  ;;  %v6899_v61 = vadd.f32 %v6898_v12, %v6897_v24  ;;  %v6836_v41 = vpop.f32.mrb[166].mxu0  ;;  %v6900_v36 = vpop.f32.mrb[190].mxu1  ;;  %7430 = vmatprep.mubr.msk.bf16.mxu0 %vm4709_vm4, %v4664_v51 }
 0xe15   :  { %v6837_v39 = vpop.f32.mrb[167].mxu0  ;;  %v6901_v35 = vpop.f32.mrb[191].mxu1 }
 0xe16   :  { %v4650_v40 = vmax.f32 %v6835_v20, %v6899_v61  ;;  %v6838_v27 = vadd.f32 %v6837_v39, %v6836_v41  ;;  %v6902_v30 = vadd.f32 %v6901_v35, %v6900_v36 }
 0xe18   :  { %v4651_v55 = vmax.f32 %v6838_v27, %v6902_v30 }
 0xe1a   :  { %v4665_v18 = vpack.c.bf16 %v4651_v55, %v4650_v40  ;;  %v6839_v46 = vpop.f32.mrb[168].mxu0  ;;  %v6903_v52 = vpop.f32.mrb[192].mxu1 }
 0xe1b   :  { %v6840_v4 = vpop.f32.mrb[169].mxu0  ;;  %v6904_v8 = vpop.f32.mrb[193].mxu1 }
 0xe1c   :  { %v6841_v2 = vadd.f32 %v6840_v4, %v6839_v46  ;;  %v6905_v0 = vadd.f32 %v6904_v8, %v6903_v52  ;;  %v6842_v49 = vpop.f32.mrb[170].mxu0  ;;  %v6906_v16 = vpop.f32.mrb[194].mxu1  ;;  %7431 = vmatmul.mubr.msk.bf16.vlgmr.msra.gmra.mrb[192].mxu0 %vm4709_vm4, %v4665_v18 }
 0xe1d   :  { %v6843_v19 = vpop.f32.mrb[171].mxu0  ;;  %v6907_v33 = vpop.f32.mrb[195].mxu1 }
 0xe1e   :  { %v4652_v62 = vmax.f32 %v6841_v2, %v6905_v0  ;;  %v6844_v6 = vadd.f32 %v6843_v19, %v6842_v49  ;;  %v6908_v23 = vadd.f32 %v6907_v33, %v6906_v16 }
 0xe20   :  { %v4653_v58 = vmax.f32 %v6844_v6, %v6908_v23 }
 0xe22   :  { %v4666_v7 = vpack.c.bf16 %v4653_v58, %v4652_v62  ;;  %v6845_v32 = vpop.f32.mrb[172].mxu0  ;;  %v6909_v3 = vpop.f32.mrb[196].mxu1 }
 0xe23   :  { %v6846_v31 = vpop.f32.mrb[173].mxu0  ;;  %v6910_v25 = vpop.f32.mrb[197].mxu1 }
 0xe24   :  { %v6847_v37 = vadd.f32 %v6846_v31, %v6845_v32  ;;  %v6911_v57 = vadd.f32 %v6910_v25, %v6909_v3  ;;  %v6848_v38 = vpop.f32.mrb[174].mxu0  ;;  %v6912_v21 = vpop.f32.mrb[198].mxu1  ;;  %7434 = vmatprep.mubr.msk.bf16.mxu0 %vm4709_vm4, %v4666_v7 }
 0xe25   :  { %v6849_v45 = vpop.f32.mrb[175].mxu0  ;;  %v6913_v56 = vpop.f32.mrb[199].mxu1 }
 0xe26   :  { %v4654_v60 = vmax.f32 %v6847_v37, %v6911_v57  ;;  %v6850_v9 = vadd.f32 %v6849_v45, %v6848_v38  ;;  %v6914_v59 = vadd.f32 %v6913_v56, %v6912_v21 }
 0xe28   :  { %v4655_v63 = vmax.f32 %v6850_v9, %v6914_v59 }
 0xe2a   :  { %v4667_v34 = vpack.c.bf16 %v4655_v63, %v4654_v60  ;;  %v6851_v26 = vpop.f32.mrb[176].mxu0  ;;  %v6915_v11 = vpop.f32.mrb[200].mxu1  ;;  %v7847_v63 = vld [vmem:[#allocation2 + $0x8f0] ss:$8 sps:$4 sm:$0xff]  }
 0xe2b   :  { %v6852_v10 = vpop.f32.mrb[177].mxu0  ;;  %v6916_v28 = vpop.f32.mrb[201].mxu1  ;;  %7450 = vmatprep.subr.bf16.mxu1 %v7847_v63 }
 0xe2c   :  { %v6853_v5 = vadd.f32 %v6852_v10, %v6851_v26  ;;  %v6917_v53 = vadd.f32 %v6916_v28, %v6915_v11  ;;  %v6854_v44 = vpop.f32.mrb[178].mxu0  ;;  %v6918_v22 = vpop.f32.mrb[202].mxu1  ;;  %7435 = vmatmul.mubr.msk.bf16.gmra.mrb[196].mxu0 %vm4709_vm4, %v4667_v34  ;;  %7451 = vmatpush3.bf16.msra.mxu1 %v7847_v63  ;;  %v7848_v34 = vld [vmem:[#allocation2 + $0x900] ss:$8 sps:$4 sm:$0xff]   ;;  %v6375_v11 = vld [vmem:[#allocation5 + $0x488] ss:$0 sm:$0xff] }
 0xe2d   :  { %v6855_v47 = vpop.f32.mrb[179].mxu0  ;;  %v6919_v50 = vpop.f32.mrb[203].mxu1  ;;  %7452 = vmatprep.subr.bf16.mxu1 %v7848_v34 }
 0xe2e   :  { %v4656_v13 = vmax.f32 %v6853_v5, %v6917_v53  ;;  %v6856_v1 = vadd.f32 %v6855_v47, %v6854_v44  ;;  %v6920_v42 = vadd.f32 %v6919_v50, %v6918_v22 }
 0xe30   :  { %v4657_v48 = vmax.f32 %v6856_v1, %v6920_v42  ;;  %7453 = vmatpush3.bf16.msra.mxu1 %v7848_v34 }
 0xe32   :  { %v4668_v15 = vpack.c.bf16 %v4657_v48, %v4656_v13  ;;  %v6857_v43 = vpop.f32.mrb[180].mxu0  ;;  %v6921_v51 = vpop.f32.mrb[204].mxu1 }
 0xe33   :  { %v6858_v14 = vpop.f32.mrb[181].mxu0  ;;  %v6922_v24 = vpop.f32.mrb[205].mxu1 }
 0xe34   :  { %v6859_v29 = vadd.f32 %v6858_v14, %v6857_v43  ;;  %v6923_v12 = vadd.f32 %v6922_v24, %v6921_v51  ;;  %v6860_v20 = vpop.f32.mrb[182].mxu0  ;;  %v6924_v61 = vpop.f32.mrb[206].mxu1  ;;  %7438 = vmatprep.mubr.msk.bf16.mxu0 %vm4709_vm4, %v4668_v15 }
 0xe35   :  { %v6861_v41 = vpop.f32.mrb[183].mxu0  ;;  %v6925_v36 = vpop.f32.mrb[207].mxu1 }
 0xe36   :  { %v4658_v39 = vmax.f32 %v6859_v29, %v6923_v12  ;;  %v6862_v35 = vadd.f32 %v6861_v41, %v6860_v20  ;;  %v6926_v40 = vadd.f32 %v6925_v36, %v6924_v61 }
 0xe38   :  { %v4659_v27 = vmax.f32 %v6862_v35, %v6926_v40 }
 0xe3a   :  { %v4669_v30 = vpack.c.bf16 %v4659_v27, %v4658_v39  ;;  %v6863_v55 = vpop.f32.mrb[184].mxu0  ;;  %v6927_v18 = vpop.f32.mrb[208].mxu1 }
 0xe3b   :  { %v6864_v46 = vpop.f32.mrb[185].mxu0  ;;  %v6928_v52 = vpop.f32.mrb[209].mxu1 }
 0xe3c   :  { %v6865_v4 = vadd.f32 %v6864_v46, %v6863_v55  ;;  %v6929_v8 = vadd.f32 %v6928_v52, %v6927_v18  ;;  %v6866_v2 = vpop.f32.mrb[186].mxu0  ;;  %v6930_v0 = vpop.f32.mrb[210].mxu1  ;;  %7439 = vmatmul.mubr.msk.bf16.gmra.mrb[200].mxu0 %vm4709_vm4, %v4669_v30 }
 0xe3d   :  { %v6867_v49 = vpop.f32.mrb[187].mxu0  ;;  %v6931_v16 = vpop.f32.mrb[211].mxu1 }
 0xe3e   :  { %v4660_v19 = vmax.f32 %v6865_v4, %v6929_v8  ;;  %v6868_v33 = vadd.f32 %v6867_v49, %v6866_v2  ;;  %v6932_v62 = vadd.f32 %v6931_v16, %v6930_v0 }
 0xe40   :  { %v4661_v6 = vmax.f32 %v6868_v33, %v6932_v62  ;;  %v7849_v33 = vld [vmem:[#allocation2 + $0x910] ss:$8 sps:$4 sm:$0xff]  }
 0xe42   :  { %v4670_v23 = vpack.c.bf16 %v4661_v6, %v4660_v19  ;;  %v6869_v58 = vpop.f32.mrb[188].mxu0  ;;  %v6933_v7 = vpop.f32.mrb[212].mxu1  ;;  %v6388_v6 = vld [vmem:[#allocation5 + $0x490] ss:$0 sm:$0xff] }
 0xe43   :  { %v6870_v32 = vpop.f32.mrb[189].mxu0  ;;  %v6934_v3 = vpop.f32.mrb[213].mxu1 }
 0xe44   :  { %v6871_v31 = vadd.f32 %v6870_v32, %v6869_v58  ;;  %v6935_v25 = vadd.f32 %v6934_v3, %v6933_v7  ;;  %v6872_v37 = vpop.f32.mrb[190].mxu0  ;;  %v6936_v57 = vpop.f32.mrb[214].mxu1  ;;  %7442 = vmatprep.mubr.msk.bf16.mxu0 %vm4709_vm4, %v4670_v23 }
 0xe45   :  { %v6873_v38 = vpop.f32.mrb[191].mxu0  ;;  %v6937_v21 = vpop.f32.mrb[215].mxu1 }
 0xe46   :  { %v4662_v45 = vmax.f32 %v6871_v31, %v6935_v25  ;;  %v6874_v56 = vadd.f32 %v6873_v38, %v6872_v37  ;;  %v6938_v60 = vadd.f32 %v6937_v21, %v6936_v57 }
 0xe48   :  { %v4663_v9 = vmax.f32 %v6874_v56, %v6938_v60 }
 0xe4a   :  { %v4671_v59 = vpack.c.bf16 %v4663_v9, %v4662_v45 }
 0xe4c   :  { %7443 = vmatmul.mubr.msk.bf16.gmra.mrb[204].mxu0 %vm4709_vm4, %v4671_v59 }
 0xe4d   :  { %7486 = vmatprep.mubr.bf16.mxu0 %v7849_v33 }
 0xeef   :  { %v7432_v26 = vpop.f32.mrb[192].mxu0 }
 0xef0   :  { %v4768_v10 = vpop.f32.mrb[193].mxu0  ;;  %v4777_v5 = vadd.f32 %v7432_v26, %v6375_v11 }
 0xef1   :  { %v7433_v28 = vpop.f32.mrb[194].mxu0  ;;  %v4769_v22 = vadd.f32 %v6375_v11, %v4768_v10 }
 0xef2   :  { %v4780_v53 = vadd.f32 %v7433_v28, %v6375_v11  ;;  %v4771_v44 = vpop.f32.mrb[195].mxu0 }
 0xef3   :  { %v4772_v47 = vadd.f32 %v6375_v11, %v4771_v44 }
 0xef4   :  { %v4832_v50 = vpack.c.bf16 %v4780_v53, %v4777_v5 }
 0xef5   :  { %v4831_v13 = vpack.c.bf16 %v4772_v47, %v4769_v22 }
 0xef7   :  { %7454 = vmatprep.mubr.msk.bf16.mxu1 %vm4709_vm4, %v4831_v13 }
 0xef8   :  { %7455 = vmatmul.mubr.msk.bf16.vlgmr.msra.gmra.mrb[216].mxu1 %vm4709_vm4, %v4832_v50 }
 0xeff   :  { %v7436_v1 = vpop.f32.mrb[196].mxu0 }
 0xf00   :  { %v4784_v42 = vpop.f32.mrb[197].mxu0  ;;  %v4793_v15 = vadd.f32 %v7436_v1, %v6375_v11 }
 0xf01   :  { %v7437_v48 = vpop.f32.mrb[198].mxu0  ;;  %v4785_v14 = vadd.f32 %v6375_v11, %v4784_v42 }
 0xf02   :  { %v4796_v43 = vadd.f32 %v7437_v48, %v6375_v11  ;;  %v4787_v51 = vpop.f32.mrb[199].mxu0 }
 0xf03   :  { %v4788_v24 = vadd.f32 %v6375_v11, %v4787_v51 }
 0xf04   :  { %v4834_v29 = vpack.c.bf16 %v4796_v43, %v4793_v15 }
 0xf05   :  { %v4833_v12 = vpack.c.bf16 %v4788_v24, %v4785_v14 }
 0xf07   :  { %7458 = vmatprep.mubr.msk.bf16.mxu1 %vm4709_vm4, %v4833_v12 }
 0xf08   :  { %7459 = vmatmul.mubr.msk.bf16.gmra.mrb[220].mxu1 %vm4709_vm4, %v4834_v29 }
 0xf0f   :  { %v7440_v20 = vpop.f32.mrb[200].mxu0 }
 0xf10   :  { %v4800_v61 = vpop.f32.mrb[201].mxu0  ;;  %v4809_v36 = vadd.f32 %v7440_v20, %v6375_v11  ;;  %v7850_v20 = vld [vmem:[#allocation2 + $0x920] ss:$8 sps:$4 sm:$0xff]  }
 0xf11   :  { %v7441_v41 = vpop.f32.mrb[202].mxu0  ;;  %v4801_v40 = vadd.f32 %v6375_v11, %v4800_v61  ;;  %v7851_v61 = vld [vmem:[#allocation2 + $0x930] ss:$8 sps:$4 sm:$0xff]  }
 0xf12   :  { %v4812_v39 = vadd.f32 %v7441_v41, %v6375_v11  ;;  %v4803_v35 = vpop.f32.mrb[203].mxu0  ;;  %v7852_v41 = vld [vmem:[#allocation2 + $0x940] ss:$8 sps:$4 sm:$0xff]  }
 0xf13   :  { %v4804_v27 = vadd.f32 %v6375_v11, %v4803_v35  ;;  %v7855_v35 = vld [vmem:[#allocation2 + $0x970] ss:$8 sps:$4 sm:$0xff]  }
 0xf14   :  { %v4836_v30 = vpack.c.bf16 %v4812_v39, %v4809_v36  ;;  %v7853_v36 = vld [vmem:[#allocation2 + $0x950] ss:$8 sps:$4 sm:$0xff]   ;;  %v7854_v39 = vld [vmem:[#allocation2 + $0x960] ss:$8 sps:$4 sm:$0xff]  }
 0xf15   :  { %v4835_v55 = vpack.c.bf16 %v4804_v27, %v4801_v40  ;;  %v7856_v40 = vld [vmem:[#allocation2 + $0x980] ss:$8 sps:$4 sm:$0xff]   ;;  %v7857_v27 = vld [vmem:[#allocation2 + $0x990] ss:$8 sps:$4 sm:$0xff]  }
 0xf17   :  { %7462 = vmatprep.mubr.msk.bf16.mxu1 %vm4709_vm4, %v4835_v55  ;;  %v5045_v55 = vpop.permute.xlu1 %5044 }
 0xf18   :  { %7463 = vmatmul.mubr.msk.bf16.gmra.mrb[224].mxu1 %vm4709_vm4, %v4836_v30  ;;  %v5040_v30 = vpop.permute.xlu0 %5039 }
 0xf1f   :  { %v7444_v18 = vpop.f32.mrb[204].mxu0 }
 0xf20   :  { %v4816_v46 = vpop.f32.mrb[205].mxu0  ;;  %v4825_v4 = vadd.f32 %v7444_v18, %v6375_v11  ;;  %v5050_v18 = vpop.permute.xlu0 %5049 }
 0xf21   :  { %v7445_v52 = vpop.f32.mrb[206].mxu0  ;;  %v4817_v0 = vadd.f32 %v6375_v11, %v4816_v46  ;;  %v5055_v46 = vpop.permute.xlu1 %5054 }
 0xf22   :  { %v4828_v8 = vadd.f32 %v7445_v52, %v6375_v11  ;;  %v4819_v2 = vpop.f32.mrb[207].mxu0 }
 0xf23   :  { %v4820_v49 = vadd.f32 %v6375_v11, %v4819_v2 }
 0xf24   :  { %v4838_v16 = vpack.c.bf16 %v4828_v8, %v4825_v4  ;;  %v5060_v52 = vpop.permute.xlu0 %5059 }
 0xf25   :  { %v4837_v19 = vpack.c.bf16 %v4820_v49, %v4817_v0  ;;  %v5065_v4 = vpop.permute.xlu1 %5064 }
 0xf27   :  { %7466 = vmatprep.mubr.msk.bf16.mxu1 %vm4709_vm4, %v4837_v19 }
 0xf28   :  { %7467 = vmatmul.mubr.msk.bf16.gmra.mrb[228].mxu1 %vm4709_vm4, %v4838_v16  ;;  %v5070_v2 = vpop.permute.xlu0 %5069 }
 0xf29   :  { %7518 = vmatprep.mubr.bf16.mxu1 %v7857_v27  ;;  %v5075_v49 = vpop.permute.xlu1 %5074  ;;  %v7863_v27 = vld [vmem:[#allocation2 + $0x9e0] ss:$8 sps:$4 sm:$0xff]  }
 0xfcb   :  { %v7456_v62 = vpop.f32.mrb[216].mxu1 }
 0xfcc   :  { %v4934_v23 = vpop.f32.mrb[217].mxu1  ;;  %v4943_v7 = vadd.f32 %v7456_v62, %v6388_v6 }
 0xfcd   :  { %v7457_v58 = vpop.f32.mrb[218].mxu1  ;;  %v4935_v31 = vadd.f32 %v6388_v6, %v4934_v23 }
 0xfce   :  { %v4946_v32 = vadd.f32 %v7457_v58, %v6388_v6  ;;  %v4937_v3 = vpop.f32.mrb[219].mxu1 }
 0xfcf   :  { %v4938_v25 = vadd.f32 %v6388_v6, %v4937_v3  ;;  %v5085_v3 = vpop.permute.xlu1 %5084 }
 0xfd0   :  { %v5014_v37 = vpack.c.bf16 %v4946_v32, %v4943_v7  ;;  %v5080_v32 = vpop.permute.xlu0 %5079 }
 0xfd1   :  { %v5013_v57 = vpack.c.bf16 %v4938_v25, %v4935_v31 }
 0xfd3   :  { %7470 = vmatprep.subr.bf16.mxu0 %v5013_v57 }
 0xfd4   :  { %7471 = vmatpush3.bf16.msra.mxu0 %v5013_v57 }
 0xfd5   :  { %7472 = vmatprep.subr.bf16.mxu0 %v5014_v37 }
 0xfd8   :  { %7473 = vmatpush3.bf16.msra.mxu0 %v5014_v37 }
 0xfdb   :  { %v7460_v38 = vpop.f32.mrb[220].mxu1 }
 0xfdc   :  { %v4950_v21 = vpop.f32.mrb[221].mxu1  ;;  %v4959_v56 = vadd.f32 %v7460_v38, %v6388_v6 }
 0xfdd   :  { %v7461_v45 = vpop.f32.mrb[222].mxu1  ;;  %v4951_v59 = vadd.f32 %v6388_v6, %v4950_v21 }
 0xfde   :  { %v4962_v60 = vadd.f32 %v7461_v45, %v6388_v6  ;;  %v4953_v9 = vpop.f32.mrb[223].mxu1 }
 0xfdf   :  { %v4954_v63 = vadd.f32 %v6388_v6, %v4953_v9 }
 0xfe0   :  { %v5016_v34 = vpack.c.bf16 %v4962_v60, %v4959_v56  ;;  %v5090_v60 = vpop.permute.xlu0 %5089 }
 0xfe1   :  { %v5015_v26 = vpack.c.bf16 %v4954_v63, %v4951_v59  ;;  %v5095_v59 = vpop.permute.xlu1 %5094 }
 0xfe3   :  { %7474 = vmatprep.subr.bf16.mxu0 %v5015_v26 }
 0xfe4   :  { %7475 = vmatpush3.bf16.msra.mxu0 %v5015_v26 }
 0xfe5   :  { %7476 = vmatprep.subr.bf16.mxu0 %v5016_v34 }
 0xfe8   :  { %7477 = vmatpush3.bf16.msra.mxu0 %v5016_v34 }
 0xfeb   :  { %v7464_v11 = vpop.f32.mrb[224].mxu1 }
 0xfec   :  { %v4966_v10 = vpop.f32.mrb[225].mxu1  ;;  %v4975_v5 = vadd.f32 %v7464_v11, %v6388_v6 }
 0xfed   :  { %v7465_v28 = vpop.f32.mrb[226].mxu1  ;;  %v4967_v22 = vadd.f32 %v6388_v6, %v4966_v10  ;;  %v5100_v10 = vpop.permute.xlu0 %5099 }
 0xfee   :  { %v4978_v53 = vadd.f32 %v7465_v28, %v6388_v6  ;;  %v4969_v44 = vpop.f32.mrb[227].mxu1 }
 0xfef   :  { %v4970_v47 = vadd.f32 %v6388_v6, %v4969_v44  ;;  %v5105_v44 = vpop.permute.xlu1 %5104 }
 0xff0   :  { %v5018_v50 = vpack.c.bf16 %v4978_v53, %v4975_v5 }
 0xff1   :  { %v5017_v13 = vpack.c.bf16 %v4970_v47, %v4967_v22 }
 0xff3   :  { %7478 = vmatprep.subr.bf16.mxu0 %v5017_v13 }
 0xff4   :  { %7479 = vmatpush3.bf16.msra.mxu0 %v5017_v13 }
 0xff5   :  { %7480 = vmatprep.subr.bf16.mxu0 %v5018_v50 }
 0xff8   :  { %7481 = vmatpush3.bf16.msra.mxu0 %v5018_v50 }
 0xffb   :  { %v7468_v1 = vpop.f32.mrb[228].mxu1 }
 0xffc   :  { %v4982_v42 = vpop.f32.mrb[229].mxu1  ;;  %v4991_v15 = vadd.f32 %v7468_v1, %v6388_v6 }
 0xffd   :  { %v7469_v48 = vpop.f32.mrb[230].mxu1  ;;  %v4983_v14 = vadd.f32 %v6388_v6, %v4982_v42  ;;  %v5110_v42 = vpop.permute.xlu0 %5109 }
 0xffe   :  { %v4994_v43 = vadd.f32 %v7469_v48, %v6388_v6  ;;  %v4985_v51 = vpop.f32.mrb[231].mxu1 }
 0xfff   :  { %v4986_v24 = vadd.f32 %v6388_v6, %v4985_v51 }
0x1000   :  { %v5020_v29 = vpack.c.bf16 %v4994_v43, %v4991_v15  ;;  %v5115_v15 = vpop.permute.xlu1 %5114 }
0x1001   :  { %v5019_v12 = vpack.c.bf16 %v4986_v24, %v4983_v14 }
0x1003   :  { %7482 = vmatprep.subr.bf16.mxu0 %v5019_v12 }
0x1004   :  { %7483 = vmatpush3.bf16.msra.mxu0 %v5019_v12 }
0x1005   :  { %7484 = vmatprep.subr.bf16.mxu0 %v5020_v29 }
0x1008   :  { %7485 = vmatpush3.bf16.msra.mxu0 %v5020_v29 }
0x100b   :  { %7487 = vmatmul.mubr.bf16.vlgmr.msra.gmra.mrb[208].mxu0 %v7850_v20 }
0x100c   :  { %7490 = vmatprep.mubr.bf16.mxu0 %v7851_v61 }
0x1013   :  { %7491 = vmatmul.mubr.bf16.gmra.mrb[212].mxu0 %v7852_v41  ;;  %v7858_v41 = vld [vmem:[#allocation2 + $0x9a0] ss:$8 sps:$4 sm:$0xff]  }
0x1014   :  { %7494 = vmatprep.mubr.bf16.mxu0 %v7853_v36  ;;  %v7859_v36 = vld [vmem:[#allocation2 + $0x9b0] ss:$8 sps:$4 sm:$0xff]  }
0x101b   :  { %7495 = vmatmul.mubr.bf16.gmra.mrb[216].mxu0 %v7854_v39  ;;  %v7860_v39 = vld [vmem:[#allocation2 + $0x9c0] ss:$8 sps:$4 sm:$0xff]  }
0x101c   :  { %7498 = vmatprep.mubr.bf16.mxu0 %v7855_v35  ;;  %v7861_v35 = vld [vmem:[#allocation2 + $0x9d0] ss:$8 sps:$4 sm:$0xff]  }
0x1023   :  { %7499 = vmatmul.mubr.bf16.gmra.mrb[220].mxu0 %v7856_v40  ;;  %v7862_v40 = vld [vmem:[#allocation2 + $0x9f0] ss:$8 sps:$4 sm:$0xff]  }
0x1024   :  { %7538 = vmatprep.subr.bf16.mxu0 %v7862_v40 }
0x1025   :  { %7539 = vmatpush3.bf16.msra.mxu0 %v7862_v40 }
0x10de   :  { %v7488_v8 = vpop.f32.mrb[208].mxu0 }
0x10df   :  { %v5199_v0 = vpop.f32.mrb[209].mxu0  ;;  %v5208_v19 = vadd.f32 %v7488_v8, %v5050_v18  ;;  %v5294_v18 = vpop.permute.xlu1 %5293 }
0x10e0   :  { %v7489_v16 = vpop.f32.mrb[210].mxu0  ;;  %v5200_v6 = vadd.f32 %v5199_v0, %v5040_v30  ;;  %v7864_v30 = vld [vmem:[#allocation2 + $0xa00] ss:$8 sps:$4 sm:$0xff]  }
0x10e1   :  { %v5211_v33 = vadd.f32 %v7489_v16, %v5055_v46  ;;  %v5202_v62 = vpop.f32.mrb[211].mxu0  ;;  %7540 = vmatprep.subr.bf16.mxu0 %v7864_v30 }
0x10e2   :  { %v5203_v23 = vadd.f32 %v5202_v62, %v5045_v55  ;;  %7541 = vmatpush3.bf16.msra.mxu0 %v7864_v30  ;;  %v5289_v55 = vpop.permute.xlu0 %5288 }
0x10e3   :  { %v5271_v58 = vpack.c.bf16 %v5211_v33, %v5208_v19 }
0x10e4   :  { %v5270_v7 = vpack.c.bf16 %v5203_v23, %v5200_v6 }
0x10e6   :  { %v7492_v31 = vpop.f32.mrb[212].mxu0  ;;  %7502 = vmatprep.subr.bf16.mxu1 %v5270_v7  ;;  %v5299_v46 = vpop.permute.xlu0 %5298 }
0x10e7   :  { %v5215_v25 = vpop.f32.mrb[213].mxu0  ;;  %7503 = vmatpush3.bf16.msra.mxu1 %v5270_v7  ;;  %v5224_v57 = vadd.f32 %v7492_v31, %v5070_v2 }
0x10e8   :  { %v7493_v37 = vpop.f32.mrb[214].mxu0  ;;  %7504 = vmatprep.subr.bf16.mxu1 %v5271_v58  ;;  %v5216_v45 = vadd.f32 %v5215_v25, %v5060_v52  ;;  %v5304_v52 = vpop.permute.xlu1 %5303 }
0x10e9   :  { %v5227_v38 = vadd.f32 %v7493_v37, %v5075_v49  ;;  %v5218_v21 = vpop.f32.mrb[215].mxu0 }
0x10ea   :  { %v5219_v56 = vadd.f32 %v5218_v21, %v5065_v4  ;;  %v5309_v0 = vpop.permute.xlu0 %5308 }
0x10eb   :  { %v5273_v9 = vpack.c.bf16 %v5227_v38, %v5224_v57  ;;  %7505 = vmatpush3.bf16.msra.mxu1 %v5271_v58 }
0x10ec   :  { %v5272_v63 = vpack.c.bf16 %v5219_v56, %v5216_v45  ;;  %v5314_v62 = vpop.permute.xlu1 %5313 }
0x10ee   :  { %v7496_v34 = vpop.f32.mrb[216].mxu0  ;;  %7506 = vmatprep.subr.bf16.mxu1 %v5272_v63  ;;  %v5319_v31 = vpop.permute.xlu0 %5318 }
0x10ef   :  { %v5231_v26 = vpop.f32.mrb[217].mxu0  ;;  %7507 = vmatpush3.bf16.msra.mxu1 %v5272_v63  ;;  %v5240_v28 = vadd.f32 %v7496_v34, %v5090_v60 }
0x10f0   :  { %v7497_v11 = vpop.f32.mrb[218].mxu0  ;;  %7508 = vmatprep.subr.bf16.mxu1 %v5273_v9  ;;  %v5232_v22 = vadd.f32 %v5231_v26, %v5080_v32  ;;  %v5324_v21 = vpop.permute.xlu1 %5323 }
0x10f1   :  { %v5243_v5 = vadd.f32 %v7497_v11, %v5095_v59  ;;  %v5234_v53 = vpop.f32.mrb[219].mxu0 }
0x10f2   :  { %v5235_v47 = vadd.f32 %v5234_v53, %v5085_v3  ;;  %v7866_v53 = vld [vmem:[#allocation2 + $0xa30] ss:$8 sps:$4 sm:$0xff]  }
0x10f3   :  { %v5275_v50 = vpack.c.bf16 %v5243_v5, %v5240_v28  ;;  %7509 = vmatpush3.bf16.msra.mxu1 %v5273_v9  ;;  %v7865_v5 = vld [vmem:[#allocation2 + $0xa10] ss:$8 sps:$4 sm:$0xff]  }
0x10f4   :  { %v5274_v13 = vpack.c.bf16 %v5235_v47, %v5232_v22 }
0x10f6   :  { %v7500_v1 = vpop.f32.mrb[220].mxu0  ;;  %7510 = vmatprep.subr.bf16.mxu1 %v5274_v13 }
0x10f7   :  { %v5247_v48 = vpop.f32.mrb[221].mxu0  ;;  %7511 = vmatpush3.bf16.msra.mxu1 %v5274_v13  ;;  %v5256_v51 = vadd.f32 %v7500_v1, %v5110_v42 }
0x10f8   :  { %v7501_v43 = vpop.f32.mrb[222].mxu0  ;;  %7512 = vmatprep.subr.bf16.mxu1 %v5275_v50  ;;  %v5248_v29 = vadd.f32 %v5247_v48, %v5100_v10 }
0x10f9   :  { %v5259_v14 = vadd.f32 %v7501_v43, %v5115_v15  ;;  %v5250_v24 = vpop.f32.mrb[223].mxu0 }
0x10fa   :  { %v5251_v12 = vadd.f32 %v5250_v24, %v5105_v44 }
0x10fb   :  { %v5277_v20 = vpack.c.bf16 %v5259_v14, %v5256_v51  ;;  %7513 = vmatpush3.bf16.msra.mxu1 %v5275_v50 }
0x10fc   :  { %v5276_v61 = vpack.c.bf16 %v5251_v12, %v5248_v29 }
0x10fe   :  { %7514 = vmatprep.subr.bf16.mxu1 %v5276_v61 }
0x10ff   :  { %7515 = vmatpush3.bf16.msra.mxu1 %v5276_v61 }
0x1100   :  { %7516 = vmatprep.subr.bf16.mxu1 %v5277_v20 }
0x1103   :  { %7517 = vmatpush3.bf16.msra.mxu1 %v5277_v20 }
0x1104   :  { %7526 = vmatprep.subr.bf16.mxu1 %v7861_v35 }
0x1106   :  { %7519 = vmatmul.mubr.bf16.vlgmr.msra.gmra.mrb[232].mxu1 %v7858_v41 }
0x1107   :  { %7522 = vmatprep.mubr.bf16.mxu1 %v7859_v36  ;;  %7527 = vmatpush3.bf16.msra.mxu1 %v7861_v35 }
0x1108   :  { %7528 = vmatprep.subr.bf16.mxu1 %v7863_v27 }
0x110b   :  { %7529 = vmatpush3.bf16.msra.mxu1 %v7863_v27 }
0x110e   :  { %7523 = vmatmul.mubr.bf16.gmra.mrb[236].mxu1 %v7860_v39 }
0x11d9   :  { %v7520_v4 = vpop.f32.mrb[232].mxu1 }
0x11da   :  { %v5393_v8 = vadd.f32 %v7520_v4, %v5299_v46  ;;  %v5384_v2 = vpop.f32.mrb[233].mxu1  ;;  %v7867_v4 = vld [vmem:[#allocation2 + $0xa20] ss:$8 sps:$4 sm:$0xff]  }
0x11db   :  { %v5385_v49 = vadd.f32 %v5384_v2, %v5289_v55  ;;  %v7521_v16 = vpop.f32.mrb[234].mxu1  ;;  %v7869_v2 = vld [vmem:[#allocation2 + $0xa50] ss:$8 sps:$4 sm:$0xff]  }
0x11dc   :  { %v5396_v19 = vadd.f32 %v7521_v16, %v5304_v52  ;;  %v5387_v33 = vpop.f32.mrb[235].mxu1  ;;  %v5417_v23 = vmax.f32 %v5393_v8, 0.0  ;;  %v7868_v8 = vld [vmem:[#allocation2 + $0xa40] ss:$8 sps:$4 sm:$0xff]  }
0x11dd   :  { %v5388_v6 = vadd.f32 %v5387_v33, %v5294_v18  ;;  %v5415_v7 = vmax.f32 %v5385_v49, 0.0 }
0x11de   :  { %v5418_v58 = vmax.f32 %v5396_v19, 0.0 }
0x11df   :  { %v5416_v32 = vmax.f32 %v5388_v6, 0.0 }
0x11e0   :  { %v5424_v3 = vpack.c.bf16 %v5418_v58, %v5417_v23 }
0x11e1   :  { %v5423_v25 = vpack.c.bf16 %v5416_v32, %v5415_v7  ;;  %v7524_v37 = vpop.f32.mrb[236].mxu1 }
0x11e2   :  { %v5409_v57 = vadd.f32 %v7524_v37, %v5319_v31  ;;  %v5400_v38 = vpop.f32.mrb[237].mxu1  ;;  %v7870_v37 = vld [vmem:[#allocation2 + $0xa60] ss:$8 sps:$4 sm:$0xff]  }
0x11e3   :  { %v5401_v45 = vadd.f32 %v5400_v38, %v5309_v0  ;;  %v7525_v56 = vpop.f32.mrb[238].mxu1  ;;  %7530 = vmatprep.mubr.msk.bf16.mxu1 %vm65_vm0, %v5423_v25  ;;  %7542 = vmatprep.mubr.msk.bf16.mxu0 %vm65_vm0, %v5423_v25  ;;  %v6433_v38 = vld [vmem:[#allocation5 + $0x558] ss:$0 sm:$0xff] }
0x11e4   :  { %v5412_v60 = vadd.f32 %v7525_v56, %v5324_v21  ;;  %v5403_v9 = vpop.f32.mrb[239].mxu1  ;;  %7531 = vmatmul.mubr.msk.bf16.vlgmr.msra.gmra.mrb[240].mxu1 %vm65_vm0, %v5424_v3  ;;  %7543 = vmatmul.mubr.msk.bf16.vlgmr.msra.gmra.mrb[224].mxu0 %vm65_vm0, %v5424_v3  ;;  %v5421_v63 = vmax.f32 %v5409_v57, 0.0 }
0x11e5   :  { %v5404_v59 = vadd.f32 %v5403_v9, %v5314_v62  ;;  %v5419_v26 = vmax.f32 %v5401_v45, 0.0 }
0x11e6   :  { %v5422_v34 = vmax.f32 %v5412_v60, 0.0 }
0x11e7   :  { %v5420_v11 = vmax.f32 %v5404_v59, 0.0 }
0x11e8   :  { %v5426_v10 = vpack.c.bf16 %v5422_v34, %v5421_v63 }
0x11e9   :  { %v5425_v28 = vpack.c.bf16 %v5420_v11, %v5419_v26  ;;  %v7871_v11 = vld [vmem:[#allocation2 + $0xa70] ss:$8 sps:$4 sm:$0xff]  }
0x11eb   :  { %7534 = vmatprep.mubr.msk.bf16.mxu1 %vm65_vm0, %v5425_v28  ;;  %7546 = vmatprep.mubr.msk.bf16.mxu0 %vm65_vm0, %v5425_v28  ;;  %v6437_v28 = vld [vmem:[#allocation5 + $0x560] ss:$0 sm:$0xff] }
0x11ec   :  { %7535 = vmatmul.mubr.msk.bf16.gmra.mrb[244].mxu1 %vm65_vm0, %v5426_v10  ;;  %7547 = vmatmul.mubr.msk.bf16.gmra.mrb[228].mxu0 %vm65_vm0, %v5426_v10 }
0x11ed   :  { %7558 = vmatprep.mubr.msk.bf16.mxu1 %vm4709_vm4, %v7865_v5  ;;  %7570 = vmatprep.mubr.msk.bf16.mxu0 %vm4709_vm4, %v7866_v53 }
0x12b7   :  { %v7532_v44 = vpop.f32.mrb[240].mxu1  ;;  %v7544_v22 = vpop.f32.mrb[224].mxu0 }
0x12b8   :  { %v5603_v47 = vmax.f32 %v7532_v44, %v7544_v22  ;;  %v5489_v50 = vpop.f32.mrb[241].mxu1  ;;  %v5570_v13 = vpop.f32.mrb[225].mxu0 }
0x12b9   :  { %v5601_v1 = vmax.f32 %v5489_v50, %v5570_v13  ;;  %v7533_v42 = vpop.f32.mrb[242].mxu1  ;;  %v7545_v48 = vpop.f32.mrb[226].mxu0 }
0x12ba   :  { %v5604_v15 = vmax.f32 %v7533_v42, %v7545_v48  ;;  %v5492_v43 = vpop.f32.mrb[243].mxu1  ;;  %v5573_v51 = vpop.f32.mrb[227].mxu0  ;;  %v7872_v48 = vld [vmem:[#allocation2 + $0xa80] ss:$8 sps:$4 sm:$0xff]  }
0x12bb   :  { %v5602_v14 = vmax.f32 %v5492_v43, %v5573_v51  ;;  %v5914_v43 = vpop.permute.xlu1 %5913 }
0x12bc   :  { %v5614_v24 = vpack.c.bf16 %v5604_v15, %v5603_v47  ;;  %v5909_v15 = vpop.permute.xlu0 %5908 }
0x12bd   :  { %v5613_v29 = vpack.c.bf16 %v5602_v14, %v5601_v1 }
0x12bf   :  { %v7536_v12 = vpop.f32.mrb[244].mxu1  ;;  %v7548_v20 = vpop.f32.mrb[228].mxu0  ;;  %7550 = vmatprep.subr.bf16.mxu1 %v5613_v29  ;;  %7562 = vmatprep.subr.bf16.mxu0 %v5613_v29 }
0x12c0   :  { %v5607_v61 = vmax.f32 %v7536_v12, %v7548_v20  ;;  %v5505_v41 = vpop.f32.mrb[245].mxu1  ;;  %v5586_v36 = vpop.f32.mrb[229].mxu0  ;;  %7551 = vmatpush3.bf16.msra.mxu1 %v5613_v29  ;;  %7563 = vmatpush3.bf16.msra.mxu0 %v5613_v29 }
0x12c1   :  { %v5605_v39 = vmax.f32 %v5505_v41, %v5586_v36  ;;  %v7537_v35 = vpop.f32.mrb[246].mxu1  ;;  %v7549_v40 = vpop.f32.mrb[230].mxu0  ;;  %7552 = vmatprep.subr.bf16.mxu1 %v5614_v24  ;;  %7564 = vmatprep.subr.bf16.mxu0 %v5614_v24 }
0x12c2   :  { %v5608_v27 = vmax.f32 %v7537_v35, %v7549_v40  ;;  %v5508_v30 = vpop.f32.mrb[247].mxu1  ;;  %v5589_v55 = vpop.f32.mrb[231].mxu0 }
0x12c3   :  { %v5606_v18 = vmax.f32 %v5508_v30, %v5589_v55  ;;  %v5919_v14 = vpop.permute.xlu0 %5918  ;;  %v5924_v29 = vpop.permute.xlu1 %5923 }
0x12c4   :  { %v5616_v46 = vpack.c.bf16 %v5608_v27, %v5607_v61  ;;  %7553 = vmatpush3.bf16.msra.mxu1 %v5614_v24  ;;  %7565 = vmatpush3.bf16.msra.mxu0 %v5614_v24  ;;  %v5991_v27 = vld [vmem:[#allocation2 + $0xa90] sm:$0xf] }
0x12c5   :  { %v5615_v52 = vpack.c.bf16 %v5606_v18, %v5605_v39  ;;  %v6043_v18 = vld [vmem:[#allocation5 + $0x590] sm:$0xff] }
0x12c7   :  { %7554 = vmatprep.subr.bf16.mxu1 %v5615_v52  ;;  %7566 = vmatprep.subr.bf16.mxu0 %v5615_v52  ;;  %v5998_v30 = vpop.permute.xlu0 %5997 }
0x12c8   :  { %7555 = vmatpush3.bf16.msra.mxu1 %v5615_v52  ;;  %7567 = vmatpush3.bf16.msra.mxu0 %v5615_v52 }
0x12c9   :  { %7556 = vmatprep.subr.bf16.mxu1 %v5616_v46  ;;  %7568 = vmatprep.subr.bf16.mxu0 %v5616_v46 }
0x12cc   :  { %7557 = vmatpush3.bf16.msra.mxu1 %v5616_v46  ;;  %7569 = vmatpush3.bf16.msra.mxu0 %v5616_v46 }
0x12cd   :  { %7574 = vmatprep.subr.bf16.mxu1 %v7869_v2  ;;  %7580 = vmatprep.subr.bf16.mxu0 %v7870_v37 }
0x12cf   :  { %7559 = vmatmul.mubr.msk.bf16.vlgmr.msra.gmra.mrb[248].mxu1 %vm4709_vm4, %v7867_v4  ;;  %7571 = vmatmul.mubr.msk.bf16.vlgmr.msra.gmra.mrb[232].mxu0 %vm4709_vm4, %v7868_v8 }
0x12d0   :  { %7575 = vmatpush3.bf16.msra.mxu1 %v7869_v2  ;;  %7581 = vmatpush3.bf16.msra.mxu0 %v7870_v37 }
0x12d1   :  { %7594 = vmatprep.subr.bf16.mxu0 %v7958_v54 }
0x13a2   :  { %v7560_v0 = vpop.f32.mrb[248].mxu1  ;;  %v7572_v49 = vpop.f32.mrb[232].mxu0 }
0x13a3   :  { %v5753_v16 = vmax.f32 %v7560_v0, %v7572_v49  ;;  %v5667_v19 = vpop.f32.mrb[249].mxu1  ;;  %v5736_v33 = vpop.f32.mrb[233].mxu0 }
0x13a4   :  { %v5751_v62 = vmax.f32 %v5667_v19, %v5736_v33  ;;  %v7561_v6 = vpop.f32.mrb[250].mxu1  ;;  %v7573_v23 = vpop.f32.mrb[234].mxu0  ;;  %v6446_v33 = vld [vmem:[#allocation5 + $0x598] ss:$0 sm:$0xff] }
0x13a5   :  { %v5754_v58 = vmax.f32 %v7561_v6, %v7573_v23  ;;  %v5670_v7 = vpop.f32.mrb[251].mxu1  ;;  %v5739_v32 = vpop.f32.mrb[235].mxu0 }
0x13a6   :  { %v5752_v3 = vmax.f32 %v5670_v7, %v5739_v32 }
0x13a7   :  { %v5756_v31 = vpack.c.bf16 %v5754_v58, %v5753_v16 }
0x13a8   :  { %v5755_v25 = vpack.c.bf16 %v5752_v3, %v5751_v62  ;;  %v6249_v3 = vld [vmem:[#allocation5 + $0x270] ss:$0 sm:$0xff] }
0x13aa   :  { %7576 = vmatprep.mubr.msk.bf16.mxu1 %vm5770_vm5, %v5755_v25 }
0x13ab   :  { %7577 = vmatmul.mubr.msk.bf16.vlgmr.msra.gmra.mrb[252].mxu1 %vm5770_vm5, %v5756_v31  ;;  %v2457_v31 = vadd.f32 %v6249_v3, %v8467_v17 }
0x13ac   :  { %7590 = vmatprep.mubr.msk.bf16.mxu1 %vm65_vm0, %v7871_v11 }
0x147e   :  { %v7578_v57 = vpop.f32.mrb[252].mxu1 }
0x147f   :  { %v5811_v21 = vpop.f32.mrb[253].mxu1  ;;  %v5820_v56 = vadd.f32 %v7578_v57, %v6433_v38 }
0x1480   :  { %v7579_v45 = vpop.f32.mrb[254].mxu1  ;;  %v5812_v59 = vadd.f32 %v6433_v38, %v5811_v21 }
0x1481   :  { %v5823_v60 = vadd.f32 %v7579_v45, %v6433_v38  ;;  %v5814_v9 = vpop.f32.mrb[255].mxu1 }
0x1482   :  { %v5815_v63 = vadd.f32 %v6433_v38, %v5814_v9 }
0x1483   :  { %v5827_v34 = vpack.c.bf16 %v5823_v60, %v5820_v56 }
0x1484   :  { %v5826_v26 = vpack.c.bf16 %v5815_v63, %v5812_v59 }
0x1486   :  { %7582 = vmatprep.mubr.msk.bf16.mxu0 %vm5770_vm5, %v5826_v26 }
0x1487   :  { %7583 = vmatmul.mubr.msk.bf16.vlgmr.msra.gmra.mrb[236].mxu0 %vm5770_vm5, %v5827_v34 }
0x1488   :  { %7598 = vmatprep.mubr.msk.bf16.mxu0 %vm7959_vm3, %v7958_v54 }
0x155a   :  { %v7584_v10 = vpop.f32.mrb[236].mxu0 }
0x155b   :  { %v5881_v5 = vpop.f32.mrb[237].mxu0  ;;  %v5890_v44 = vadd.f32 %v7584_v10, %v6437_v28 }
0x155c   :  { %v7585_v53 = vpop.f32.mrb[238].mxu0  ;;  %v5882_v50 = vadd.f32 %v6437_v28, %v5881_v5 }
0x155d   :  { %v5893_v22 = vadd.f32 %v7585_v53, %v6437_v28  ;;  %v5884_v47 = vpop.f32.mrb[239].mxu0 }
0x155e   :  { %v5885_v13 = vadd.f32 %v6437_v28, %v5884_v47 }
0x155f   :  { %v5901_v1 = vpack.c.bf16 %v5893_v22, %v5890_v44 }
0x1560   :  { %v5900_v42 = vpack.c.bf16 %v5885_v13, %v5882_v50 }
0x1562   :  { %7586 = vmatprep.subr.bf16.mxu1 %v5900_v42 }
0x1563   :  { %7587 = vmatpush3.bf16.msra.mxu1 %v5900_v42 }
0x1564   :  { %7588 = vmatprep.subr.bf16.mxu1 %v5901_v1 }
0x1567   :  { %7589 = vmatpush3.bf16.msra.mxu1 %v5901_v1 }
0x1568   :  { %7602 = vmatprep.subr.bf16.mxu1 %v7958_v54 }
0x156a   :  { %7591 = vmatmul.mubr.msk.bf16.vlgmr.msra.gmra.mrb[0].mxu1 %vm65_vm0, %v7872_v48 }
0x156b   :  { %7604 = vmatprep.mubr.msk.bf16.mxu1 %vm7959_vm3, %v7958_v54 }
0x163d   :  { %v7592_v51 = vpop.f32.mrb[0].mxu1 }
0x163e   :  { %v5976_v24 = vpop.f32.mrb[1].mxu1  ;;  %v5985_v20 = vadd.f32 %v7592_v51, %v5919_v14 }
0x163f   :  { %v7593_v12 = vpop.f32.mrb[2].mxu1  ;;  %v5977_v36 = vadd.f32 %v5976_v24, %v5909_v15 }
0x1640   :  { %v5988_v61 = vadd.f32 %v7593_v12, %v5924_v29  ;;  %v5979_v41 = vpop.f32.mrb[3].mxu1 }
0x1641   :  { %v5980_v39 = vadd.f32 %v5979_v41, %v5914_v43 }
0x1642   :  { %v5993_v35 = vpack.c.bf16 %v5988_v61, %v5985_v20 }
0x1643   :  { %v5992_v40 = vpack.c.bf16 %v5980_v39, %v5977_v36 }
0x1645   :  { %7595 = vmatpush3.bf16.msra.mxu0 %v5992_v40 }
0x1646   :  { %7596 = vmatprep.subr.bf16.mxu0 %v7958_v54  ;;  %v6048_v54 = vld [vmem:[#allocation2 + $0xaa0] sm:$0x1] }
0x1649   :  { %7597 = vmatpush3.bf16.msra.mxu0 %v5993_v35 }
0x164c   :  { %7599 = vmatmul.mubr.msk.bf16.vlgmr.msra.gmra.mrb[240].mxu0 %vm65_vm0, %v5991_v27 }
0x171f   :  { %v6037_v55 = vpop.f32.mrb[240].mxu0 }
0x1720   :  { %v6038_v46 = vadd.f32 %v6037_v55, %v5998_v30  ;;  %v7600_v52 = vpop.f32.mrb[241].mxu0 }
0x1721   :  { %v6040_v4 = vpop.f32.mrb[242].mxu0 }
0x1722   :  { %v6044_v8 = vmul.f32 %v6043_v18, %v6038_v46  ;;  %v7601_v2 = vpop.f32.mrb[243].mxu0 }
0x1724   :  { %v6045_v0 = vsel %vm124_vm2, %v6044_v8, 0.0 }
0x1725   :  { %6046 = vadd.xlane.f32.xlu1 %v6045_v0 }
0x17b2   :  { %v6047_v49 = vpop.xlane.xlu1 %6046 }
0x17b3   :  { %v6049_v16 = vpack.c.bf16 %v6047_v49, %v6047_v49 }
0x17b5   :  { %v6061_v19 = vsel %vm6059_vm6, %v6049_v16, 0 }
0x17b6   :  { %7603 = vmatpush3.bf16.msra.mxu1 %v6061_v19 }
0x17b9   :  { %7605 = vmatmul.mubr.msk.bf16.vlgmr.msra.gmra.mrb[4].mxu1 %vm6055_vm7, %v6048_v54 }
0x188c   :  { %v6097_v62 = vpop.f32.mrb[4].mxu1 }
0x188d   :  { %v6098_v6 = vadd.f32 %v6446_v33, %v6097_v62  ;;  %v7606_v23 = vpop.f32.mrb[5].mxu1 }
0x188e   :  { %v6100_v58 = vpop.f32.mrb[6].mxu1 }
0x188f   :  { %v6103_v7 = vmax.f32 %v6098_v6, 0.0  ;;  %v7607_v32 = vpop.f32.mrb[7].mxu1 }
0x1891   :  { %6106 = vperm.xlu0 %7639, %v6103_v7  }
0x1910   :  { %v6107_v25 = vpop.permute.xlu0 %6106 }
0x1911   :  { %v6109_v37 = vadd.f32 %v6107_v25, %v2457_v31 }
0x1913   :  { %v6448_v57 = vmul.f32 -1.442695, %v6109_v37 }
0x1915   :  { %7873 = vpow2.f32 %v6448_v57 }
0x191f   :  { %v7874_v38 = vpop.eup %7873 }
0x1920   :  { %v6113_v21 = vadd.f32 1.0, %v7874_v38 }
0x1922   :  { %7875 = vrcp.f32 %v6113_v21 }
0x192c   :  { %v7876_v45 = vpop.eup %7875 }
0x192d   :  { %6117 = vst.msk [vmem:[#allocation7] sm:$0x3] %vm6116_vm8, %v7876_v45 }
0x192e   :  { %7936 = shalt.err (!%p7933_p6)
}
0x192f   :  { %s7937_s29 = scalar_lea.hbm %s8739_s3, 32 }
0x1930   :  { %p7938_p7 = scmp.ne.s32.totalorder %s8739_s3, %s7937_s29  ;;  %p7941_p8 = scmp.lt.u32.totalorder %s7937_s29, %s8739_s3 }
0x1932   :  { %p7943_p9 = pnand %p7941_p8, %p7938_p7 }
0x1934   :  { %7946 = shalt.err (!%p7943_p9)
}
0x1935   :  { %6127 = dma.vmem_to_hbm [thread:$0]  %s6125_s25, 32, %s8739_s3, [#allocation4]  }
0x1936   :  { %7951 = dma.done.wait [#allocation4], 32  }
0x1937   :  { %7952 = vsyncadd [#allocation4], 4294967264 }
0x1938   :  { %6131 = vsyncpa [#allocation3], 1 }
0x1939   :  { %6132 = vsyncpa [#allocation6], 1 }
0x193a   :  { %6133 = vsyncpa [#allocation4], 1 }

</bundles_post_ra>
